<compile_context>
chip_gen: v7x
topology: tpu7x:2x2x1
jax: 0.10.0
libtpu: 0.0.40
codegen_flags: <defaults>
</compile_context>

<pallas_src>
import functools

import numpy as np
import jax
import jax.numpy as jnp
from jax.experimental import pallas as pl
from jax.experimental.pallas import tpu as pltpu


_VMEM_SPEC = pl.BlockSpec(memory_space=pltpu.MemorySpace.VMEM)


# ----------------------------------------------------------------------------
# Fused Pallas kernel: project_edges + self-loop fill + 3x GATv2Conv
# ----------------------------------------------------------------------------
def _gat_layer(x, ep_flat, mask, wl_ref, bl_ref, wr_ref, br_ref, we_ref,
               a_ref, bias_ref, *, heads, apply_relu):
    """One GATv2Conv layer (heads=H, concat=False => mean over heads).

    x:       [N, Fin]   node features (VMEM-resident value)
    ep_flat: [N*N, Dp]  projected edge attrs incl. self-loop fill (row=target)
    mask:    [N, N]     adjacency mask incl. self loops (float 0/1)
    wl/bl:   lin_l (applied to SOURCE nodes, also the message value)
    wr/br:   lin_r (applied to TARGET nodes)
    we:      lin_edge (no bias)
    a_ref:   [H*C, H]   block-diagonal attention matrix (att vectors per head)
    bias:    [1, C]     output bias (concat=False)
    """
    n = mask.shape[0]
    hc = wl_ref.shape[1]
    c = hc // heads

    xl = jnp.dot(x, wl_ref[...], preferred_element_type=jnp.float32) + bl_ref[...]
    xr = jnp.dot(x, wr_ref[...], preferred_element_type=jnp.float32) + br_ref[...]
    epl = jnp.dot(ep_flat, we_ref[...], preferred_element_type=jnp.float32)

    # g[i, j, :] = leaky_relu(lin_l(x_j) + lin_r(x_i) + lin_edge(e_ij)),
    # built once for all heads.
    g = xl[None, :, :] + xr[:, None, :] + epl.reshape(n, n, hc)
    g = jnp.where(g > 0, g, 0.2 * g)                       # leaky_relu(0.2)

    # Attention logits for all heads via one MXU matmul (block-diagonal att),
    # instead of per-head XLU lane reductions.
    logits = jnp.dot(g.reshape(n * n, hc), a_ref[...],
                     preferred_element_type=jnp.float32)    # [N*N, H]
    logits3 = logits.reshape(n, n, heads)                   # [tgt, src, H]

    neg = jnp.float32(-1e30)
    acc = jnp.zeros((n, c), jnp.float32)
    for h in range(heads):                                  # static unroll (H=2)
        lh = jnp.where(mask > 0, logits3[:, :, h], neg)     # [N, N]
        m = jnp.max(lh, axis=1, keepdims=True)
        p = jnp.exp(lh - m)                                 # masked entries -> 0
        denom = jnp.sum(p, axis=1, keepdims=True)           # >= 1 (self loop)

        # Per-head source transform via a static weight-ref slice; the extra
        # tiny matmul runs on the otherwise idle MXU and avoids slicing the
        # live 64-lane xl activation.
        xl_h = (jnp.dot(x, wl_ref[:, h * c:(h + 1) * c],
                        preferred_element_type=jnp.float32)
                + bl_ref[:, h * c:(h + 1) * c])             # [N, C]

        # Deferred softmax normalization: unnormalized aggregate first, then
        # scale rows with an (approx) EUP reciprocal.
        unnorm = jnp.dot(p, xl_h, preferred_element_type=jnp.float32)
        acc = acc + unnorm * pl.reciprocal(denom, approx=True)

    out = acc * (1.0 / heads) + bias_ref[...]
    if apply_relu:
        out = jnp.maximum(out, 0.0)
    return out


def _gnn10_kernel(x_ref, ea_ref, adj_ref, pw_ref, pb_ref,
                  w1l, b1l, w1r, b1r, w1e, a1, c1b,
                  w2l, b2l, w2r, b2r, w2e, a2, c2b,
                  w3l, b3l, w3r, b3r, w3e, a3, c3b,
                  o_ref, *, heads):
    n = adj_ref.shape[0]
    adj = adj_ref[...]

    # project_edges (shared across the three conv layers), done once in VMEM.
    ep = (jnp.dot(ea_ref[...], pw_ref[...], preferred_element_type=jnp.float32)
          + pb_ref[...])
    dp = ep.shape[1]
    ep3 = ep.reshape(n, n, dp)

    # GATv2Conv add_self_loops with fill_value='mean' on the projected attrs.
    cnt = jnp.maximum(jnp.sum(adj, axis=1, keepdims=True), 1.0)       # [N, 1]
    loop_attr = jnp.sum(ep3 * adj[:, :, None], axis=1) / cnt          # [N, Dp]
    rows = jax.lax.broadcasted_iota(jnp.int32, (n, n), 0)
    cols = jax.lax.broadcasted_iota(jnp.int32, (n, n), 1)
    eye = (rows == cols).astype(jnp.float32)
    ep3 = ep3 * (1.0 - eye)[:, :, None] + eye[:, :, None] * loop_attr[:, None, :]
    mask = jnp.minimum(adj + eye, 1.0)
    ep_flat = ep3.reshape(n * n, dp)

    x = x_ref[...]
    x = _gat_layer(x, ep_flat, mask, w1l, b1l, w1r, b1r, w1e, a1, c1b,
                   heads=heads, apply_relu=True)
    x = _gat_layer(x, ep_flat, mask, w2l, b2l, w2r, b2r, w2e, a2, c2b,
                   heads=heads, apply_relu=True)
    x = _gat_layer(x, ep_flat, mask, w3l, b3l, w3r, b3r, w3e, a3, c3b,
                   heads=heads, apply_relu=False)
    o_ref[...] = x.astype(o_ref.dtype)


def _att_blockdiag(att):
    """[H, C] attention vectors -> block-diagonal [H*C, H] matrix."""
    h, c = att.shape
    return (jnp.eye(h, dtype=att.dtype)[:, None, :] * att[:, :, None]).reshape(h * c, h)


def gnn10_fused(x, ea_flat, adj, params):
    """Edge projection + self-loop fill + 3 GATv2 layers in one pallas_call."""
    n = x.shape[0]
    heads = params["conv1"]["att"].shape[0]
    out_dim = params["conv3"]["bias"].shape[0]

    args = [x, ea_flat, adj, params["proj_w"], params["proj_b"].reshape(1, -1)]
    for name in ("conv1", "conv2", "conv3"):
        p = params[name]
        args += [p["wl"], p["bl"].reshape(1, -1),
                 p["wr"], p["br"].reshape(1, -1),
                 p["we"], _att_blockdiag(p["att"]),
                 p["bias"].reshape(1, -1)]

    kern = functools.partial(_gnn10_kernel, heads=heads)
    return pl.pallas_call(
        kern,
        out_shape=jax.ShapeDtypeStruct((n, out_dim), jnp.float32),
        in_specs=[_VMEM_SPEC] * len(args),
        out_specs=_VMEM_SPEC,
    )(*args)
    # TODO(synk): for large graphs, add a target-node-tile grid (BlockSpec over
    # rows of mask/ep, "parallel" on v7x) and bf16 MXU operands on v6e/v7x.


# ----------------------------------------------------------------------------
# Parameter init (deterministic, synthetic — no checkpoint load)
# ----------------------------------------------------------------------------
def _glorot(key, shape):
    fan_in, fan_out = shape[0], shape[-1]
    return (jax.random.normal(key, shape, jnp.float32)
            * jnp.sqrt(2.0 / (fan_in + fan_out)))


def _make_conv(keys, in_dim, out_ch, edge_proj_dim, heads):
    return {
        "wl": _glorot(keys[0], (in_dim, heads * out_ch)),
        "bl": jnp.zeros((heads * out_ch,), jnp.float32),
        "wr": _glorot(keys[1], (in_dim, heads * out_ch)),
        "br": jnp.zeros((heads * out_ch,), jnp.float32),
        "we": _glorot(keys[2], (edge_proj_dim, heads * out_ch)),
        "att": _glorot(keys[3], (heads, out_ch)),
        "bias": jnp.zeros((out_ch,), jnp.float32),
    }


def init_params(key, *, in_dim, out_dim, edge_dim, edge_proj_dim, middle_dim,
                vocab_size, emb_dim, heads):
    ks = jax.random.split(key, 16)
    return {
        # embedding_init='random': vocab extended by 4 special tokens
        "embedding": jax.random.normal(ks[0], (vocab_size + 4, emb_dim),
                                       jnp.float32) * 0.02,
        "proj_w": _glorot(ks[1], (edge_dim, edge_proj_dim)),
        "proj_b": jnp.zeros((edge_proj_dim,), jnp.float32),
        "conv1": _make_conv(ks[2:6], in_dim, middle_dim, edge_proj_dim, heads),
        "conv2": _make_conv(ks[6:10], middle_dim, middle_dim, edge_proj_dim, heads),
        "conv3": _make_conv(ks[10:14], middle_dim, out_dim, edge_proj_dim, heads),
        "logit_scale": jnp.log(1.0 / 0.07),   # unused in forward
    }


# ----------------------------------------------------------------------------
# Forward (eval mode)
# ----------------------------------------------------------------------------
def gnn10_forward(params, tokens, eattr_dense, adj_mask, master_idx):
    # tokens_to_embeddings_batched: embed node token ids, pool over tokens.
    # TODO(synk): exact pooling of tokens_to_embeddings_batched unknown; using mean.
    x = params["embedding"][tokens].mean(axis=1)          # [N, emb_dim]
    n = x.shape[0]
    de = eattr_dense.shape[-1]

    # dropout_node_keep_master_nodes: identity in eval mode (training=False).

    # Everything else (edge projection, self-loop mean fill, mask, 3x GATv2)
    # runs inside one fused Pallas kernel.
    h = gnn10_fused(x, eattr_dense.reshape(n * n, de), adj_mask, params)

    # global_master_pool: take the master node of each graph.
    # TODO(synk): assumes master node == first node of each graph.
    return h[master_idx]


# ----------------------------------------------------------------------------
# Driver
# ----------------------------------------------------------------------------
if __name__ == "__main__":
    NUM_GRAPHS, N_PER_GRAPH = 2, 8
    N = NUM_GRAPHS * N_PER_GRAPH
    T = 4                       # tokens per node
    EMB_DIM = IN_DIM = 32
    MIDDLE_DIM = 32
    OUT_DIM = 32
    EDGE_DIM = 8
    EDGE_PROJ_DIM = 16
    VOCAB = 64
    HEADS = 2

    key = jax.random.PRNGKey(0)
    kp, kt, ke = jax.random.split(key, 3)

    params = init_params(kp, in_dim=IN_DIM, out_dim=OUT_DIM, edge_dim=EDGE_DIM,
                         edge_proj_dim=EDGE_PROJ_DIM, middle_dim=MIDDLE_DIM,
                         vocab_size=VOCAB, emb_dim=EMB_DIM, heads=HEADS)

    tokens = jax.random.randint(kt, (N, T), 0, VOCAB + 4, dtype=jnp.int32)

    # Synthetic graph: per-graph directed ring + edges into the master node (node 0).
    adj_np = np.zeros((N, N), np.float32)          # adj[i, j] = 1  <=>  edge j -> i
    for g in range(NUM_GRAPHS):
        base = g * N_PER_GRAPH
        for v in range(N_PER_GRAPH):
            src = base + v
            dst = base + (v + 1) % N_PER_GRAPH
            adj_np[dst, src] = 1.0
            if v != 0:
                adj_np[base, src] = 1.0            # every node feeds the master
    adj = jnp.asarray(adj_np)
    eattr_dense = jax.random.normal(ke, (N, N, EDGE_DIM), jnp.float32) * adj[:, :, None]
    master_idx = jnp.array([g * N_PER_GRAPH for g in range(NUM_GRAPHS)], jnp.int32)

    fwd = jax.jit(gnn10_forward)
    out = fwd(params, tokens, eattr_dense, adj, master_idx)
    out = jax.block_until_ready(out)
    assert out.shape == (NUM_GRAPHS, OUT_DIM) and out.dtype == jnp.float32
    assert bool(jnp.all(jnp.isfinite(out)))
    print("KERNEL_OK")
</pallas_src>

<mosaic_0001>
module attributes {stable_mosaic.version = 11 : i64} {
  func.func @_gnn10_kernel(%arg0: memref<16x32xf32, #tpu.memory_space<vmem>>, %arg1: memref<256x8xf32, #tpu.memory_space<vmem>>, %arg2: memref<16x16xf32, #tpu.memory_space<vmem>>, %arg3: memref<8x16xf32, #tpu.memory_space<vmem>>, %arg4: memref<1x16xf32, #tpu.memory_space<vmem>>, %arg5: memref<32x64xf32, #tpu.memory_space<vmem>>, %arg6: memref<1x64xf32, #tpu.memory_space<vmem>>, %arg7: memref<32x64xf32, #tpu.memory_space<vmem>>, %arg8: memref<1x64xf32, #tpu.memory_space<vmem>>, %arg9: memref<16x64xf32, #tpu.memory_space<vmem>>, %arg10: memref<64x2xf32, #tpu.memory_space<vmem>>, %arg11: memref<1x32xf32, #tpu.memory_space<vmem>>, %arg12: memref<32x64xf32, #tpu.memory_space<vmem>>, %arg13: memref<1x64xf32, #tpu.memory_space<vmem>>, %arg14: memref<32x64xf32, #tpu.memory_space<vmem>>, %arg15: memref<1x64xf32, #tpu.memory_space<vmem>>, %arg16: memref<16x64xf32, #tpu.memory_space<vmem>>, %arg17: memref<64x2xf32, #tpu.memory_space<vmem>>, %arg18: memref<1x32xf32, #tpu.memory_space<vmem>>, %arg19: memref<32x64xf32, #tpu.memory_space<vmem>>, %arg20: memref<1x64xf32, #tpu.memory_space<vmem>>, %arg21: memref<32x64xf32, #tpu.memory_space<vmem>>, %arg22: memref<1x64xf32, #tpu.memory_space<vmem>>, %arg23: memref<16x64xf32, #tpu.memory_space<vmem>>, %arg24: memref<64x2xf32, #tpu.memory_space<vmem>>, %arg25: memref<1x32xf32, #tpu.memory_space<vmem>>, %arg26: memref<16x32xf32, #tpu.memory_space<vmem>>) attributes {dimension_semantics = [], scalar_prefetch = 0 : i64, scratch_operands = 0 : i64, tpu.core_type = #tpu.core_type<tc>} {
    %c0 = arith.constant 0 : index
    %c0_0 = arith.constant 0 : index
    %0 = vector.load %arg2[%c0, %c0_0] : memref<16x16xf32, #tpu.memory_space<vmem>>, vector<16x16xf32>
    %c0_1 = arith.constant 0 : index
    %c0_2 = arith.constant 0 : index
    %1 = vector.load %arg1[%c0_1, %c0_2] : memref<256x8xf32, #tpu.memory_space<vmem>>, vector<256x8xf32>
    %c0_3 = arith.constant 0 : index
    %c0_4 = arith.constant 0 : index
    %2 = vector.load %arg3[%c0_3, %c0_4] : memref<8x16xf32, #tpu.memory_space<vmem>>, vector<8x16xf32>
    %cst = arith.constant dense<0.000000e+00> : vector<256x16xf32>
    %3 = tpu.matmul %1, %2, %cst {dimension_numbers = #tpu.dot_dimension_numbers<[1], [0], [0], [1], [0, 0, 1, 1], [], []>} : vector<256x8xf32>, vector<8x16xf32>, vector<256x16xf32> -> vector<256x16xf32>
    %c0_5 = arith.constant 0 : index
    %c0_6 = arith.constant 0 : index
    %4 = vector.load %arg4[%c0_5, %c0_6] : memref<1x16xf32, #tpu.memory_space<vmem>>, vector<1x16xf32>
    %5 = vector.broadcast %4 : vector<1x16xf32> to vector<256x16xf32>
    %6 = arith.addf %3, %5 : vector<256x16xf32>
    %7 = vector.shape_cast %6 : vector<256x16xf32> to vector<16x16x16xf32>
    %cst_7 = arith.constant dense<0.000000e+00> : vector<16xf32>
    %8 = vector.multi_reduction <add>, %0, %cst_7 [1] : vector<16x16xf32> to vector<16xf32>
    %9 = vector.shape_cast %8 : vector<16xf32> to vector<16x1xf32>
    %cst_8 = arith.constant 1.000000e+00 : f32
    %10 = vector.broadcast %cst_8 : f32 to vector<16x1xf32>
    %11 = arith.maximumf %9, %10 : vector<16x1xf32>
    %12 = vector.shape_cast %0 : vector<16x16xf32> to vector<16x16x1xf32>
    %13 = vector.broadcast %12 : vector<16x16x1xf32> to vector<16x16x16xf32>
    %14 = arith.mulf %7, %13 : vector<16x16x16xf32>
    %cst_9 = arith.constant dense<0.000000e+00> : vector<16x16xf32>
    %15 = vector.multi_reduction <add>, %14, %cst_9 [1] : vector<16x16x16xf32> to vector<16x16xf32>
    %16 = vector.broadcast %11 : vector<16x1xf32> to vector<16x16xf32>
    %17 = arith.divf %15, %16 : vector<16x16xf32>
    %18 = tpu.iota {dimensions = array<i32: 0>} : vector<16x16xi32>
    %19 = tpu.iota {dimensions = array<i32: 1>} : vector<16x16xi32>
    %20 = arith.cmpi eq, %18, %19 : vector<16x16xi32>
    %21 = arith.extui %20 : vector<16x16xi1> to vector<16x16xi32>
    %22 = arith.sitofp %21 : vector<16x16xi32> to vector<16x16xf32>
    %cst_10 = arith.constant 1.000000e+00 : f32
    %23 = vector.broadcast %cst_10 : f32 to vector<16x16xf32>
    %24 = arith.subf %23, %22 : vector<16x16xf32>
    %25 = vector.shape_cast %24 : vector<16x16xf32> to vector<16x16x1xf32>
    %26 = vector.broadcast %25 : vector<16x16x1xf32> to vector<16x16x16xf32>
    %27 = arith.mulf %7, %26 : vector<16x16x16xf32>
    %28 = vector.shape_cast %22 : vector<16x16xf32> to vector<16x16x1xf32>
    %29 = vector.shape_cast %17 : vector<16x16xf32> to vector<16x1x16xf32>
    %30 = vector.broadcast %28 : vector<16x16x1xf32> to vector<16x16x16xf32>
    %31 = vector.broadcast %29 : vector<16x1x16xf32> to vector<16x16x16xf32>
    %32 = arith.mulf %30, %31 : vector<16x16x16xf32>
    %33 = arith.addf %27, %32 : vector<16x16x16xf32>
    %34 = arith.addf %0, %22 : vector<16x16xf32>
    %cst_11 = arith.constant 1.000000e+00 : f32
    %35 = vector.broadcast %cst_11 : f32 to vector<16x16xf32>
    %36 = arith.minimumf %34, %35 : vector<16x16xf32>
    %37 = vector.shape_cast %33 : vector<16x16x16xf32> to vector<256x16xf32>
    %c0_12 = arith.constant 0 : index
    %c0_13 = arith.constant 0 : index
    %38 = vector.load %arg0[%c0_12, %c0_13] : memref<16x32xf32, #tpu.memory_space<vmem>>, vector<16x32xf32>
    %c0_14 = arith.constant 0 : index
    %c0_15 = arith.constant 0 : index
    %39 = vector.load %arg5[%c0_14, %c0_15] : memref<32x64xf32, #tpu.memory_space<vmem>>, vector<32x64xf32>
    %cst_16 = arith.constant dense<0.000000e+00> : vector<16x64xf32>
    %40 = tpu.matmul %38, %39, %cst_16 {dimension_numbers = #tpu.dot_dimension_numbers<[1], [0], [0], [1], [0, 0, 1, 1], [], []>} : vector<16x32xf32>, vector<32x64xf32>, vector<16x64xf32> -> vector<16x64xf32>
    %c0_17 = arith.constant 0 : index
    %c0_18 = arith.constant 0 : index
    %41 = vector.load %arg6[%c0_17, %c0_18] : memref<1x64xf32, #tpu.memory_space<vmem>>, vector<1x64xf32>
    %42 = vector.broadcast %41 : vector<1x64xf32> to vector<16x64xf32>
    %43 = arith.addf %40, %42 : vector<16x64xf32>
    %c0_19 = arith.constant 0 : index
    %c0_20 = arith.constant 0 : index
    %44 = vector.load %arg7[%c0_19, %c0_20] : memref<32x64xf32, #tpu.memory_space<vmem>>, vector<32x64xf32>
    %cst_21 = arith.constant dense<0.000000e+00> : vector<16x64xf32>
    %45 = tpu.matmul %38, %44, %cst_21 {dimension_numbers = #tpu.dot_dimension_numbers<[1], [0], [0], [1], [0, 0, 1, 1], [], []>} : vector<16x32xf32>, vector<32x64xf32>, vector<16x64xf32> -> vector<16x64xf32>
    %c0_22 = arith.constant 0 : index
    %c0_23 = arith.constant 0 : index
    %46 = vector.load %arg8[%c0_22, %c0_23] : memref<1x64xf32, #tpu.memory_space<vmem>>, vector<1x64xf32>
    %47 = vector.broadcast %46 : vector<1x64xf32> to vector<16x64xf32>
    %48 = arith.addf %45, %47 : vector<16x64xf32>
    %c0_24 = arith.constant 0 : index
    %c0_25 = arith.constant 0 : index
    %49 = vector.load %arg9[%c0_24, %c0_25] : memref<16x64xf32, #tpu.memory_space<vmem>>, vector<16x64xf32>
    %cst_26 = arith.constant dense<0.000000e+00> : vector<256x64xf32>
    %50 = tpu.matmul %37, %49, %cst_26 {dimension_numbers = #tpu.dot_dimension_numbers<[1], [0], [0], [1], [0, 0, 1, 1], [], []>} : vector<256x16xf32>, vector<16x64xf32>, vector<256x64xf32> -> vector<256x64xf32>
    %51 = vector.shape_cast %43 : vector<16x64xf32> to vector<1x16x64xf32>
    %52 = vector.shape_cast %48 : vector<16x64xf32> to vector<16x1x64xf32>
    %53 = vector.broadcast %51 : vector<1x16x64xf32> to vector<16x16x64xf32>
    %54 = vector.broadcast %52 : vector<16x1x64xf32> to vector<16x16x64xf32>
    %55 = arith.addf %53, %54 : vector<16x16x64xf32>
    %56 = vector.shape_cast %50 : vector<256x64xf32> to vector<16x16x64xf32>
    %57 = arith.addf %55, %56 : vector<16x16x64xf32>
    %cst_27 = arith.constant 0.000000e+00 : f32
    %58 = vector.broadcast %cst_27 : f32 to vector<16x16x64xf32>
    %59 = arith.cmpf ogt, %57, %58 : vector<16x16x64xf32>
    %cst_28 = arith.constant 2.000000e-01 : f32
    %60 = vector.broadcast %cst_28 : f32 to vector<16x16x64xf32>
    %61 = arith.mulf %60, %57 : vector<16x16x64xf32>
    %62 = arith.select %59, %57, %61 : vector<16x16x64xi1>, vector<16x16x64xf32>
    %63 = vector.shape_cast %62 : vector<16x16x64xf32> to vector<256x64xf32>
    %c0_29 = arith.constant 0 : index
    %c0_30 = arith.constant 0 : index
    %64 = vector.load %arg10[%c0_29, %c0_30] : memref<64x2xf32, #tpu.memory_space<vmem>>, vector<64x2xf32>
    %cst_31 = arith.constant dense<0.000000e+00> : vector<256x2xf32>
    %65 = tpu.matmul %63, %64, %cst_31 {dimension_numbers = #tpu.dot_dimension_numbers<[1], [0], [0], [1], [0, 0, 1, 1], [], []>} : vector<256x64xf32>, vector<64x2xf32>, vector<256x2xf32> -> vector<256x2xf32>
    %66 = vector.shape_cast %65 : vector<256x2xf32> to vector<16x16x2xf32>
    %cst_32 = arith.constant 0.000000e+00 : f32
    %67 = vector.broadcast %cst_32 : f32 to vector<16x32xf32>
    %cst_33 = arith.constant 0.000000e+00 : f32
    %68 = vector.broadcast %cst_33 : f32 to vector<16x16xf32>
    %69 = arith.cmpf ogt, %36, %68 : vector<16x16xf32>
    %70 = vector.extract_strided_slice %66 {offsets = [0, 0, 0], sizes = [16, 16, 1], strides = [1, 1, 1]} : vector<16x16x2xf32> to vector<16x16x1xf32>
    %71 = vector.shape_cast %70 : vector<16x16x1xf32> to vector<16x16xf32>
    %cst_34 = arith.constant -1.000000e+30 : f32
    %72 = vector.broadcast %cst_34 : f32 to vector<16x16xf32>
    %73 = arith.select %69, %71, %72 : vector<16x16xi1>, vector<16x16xf32>
    %cst_35 = arith.constant dense<0xFF800000> : vector<16xf32>
    %74 = vector.multi_reduction <maximumf>, %73, %cst_35 [1] : vector<16x16xf32> to vector<16xf32>
    %75 = vector.shape_cast %74 : vector<16xf32> to vector<16x1xf32>
    %76 = vector.broadcast %75 : vector<16x1xf32> to vector<16x16xf32>
    %77 = arith.subf %73, %76 : vector<16x16xf32>
    %78 = math.exp %77 : vector<16x16xf32>
    %cst_36 = arith.constant dense<0.000000e+00> : vector<16xf32>
    %79 = vector.multi_reduction <add>, %78, %cst_36 [1] : vector<16x16xf32> to vector<16xf32>
    %80 = vector.shape_cast %79 : vector<16xf32> to vector<16x1xf32>
    %c0_37 = arith.constant 0 : index
    %c0_38 = arith.constant 0 : index
    %81 = vector.load %arg5[%c0_37, %c0_38] : memref<32x64xf32, #tpu.memory_space<vmem>>, vector<32x32xf32>
    %cst_39 = arith.constant dense<0.000000e+00> : vector<16x32xf32>
    %82 = tpu.matmul %38, %81, %cst_39 {dimension_numbers = #tpu.dot_dimension_numbers<[1], [0], [0], [1], [0, 0, 1, 1], [], []>} : vector<16x32xf32>, vector<32x32xf32>, vector<16x32xf32> -> vector<16x32xf32>
    %c0_40 = arith.constant 0 : index
    %c0_41 = arith.constant 0 : index
    %83 = vector.load %arg6[%c0_40, %c0_41] : memref<1x64xf32, #tpu.memory_space<vmem>>, vector<1x32xf32>
    %84 = vector.broadcast %83 : vector<1x32xf32> to vector<16x32xf32>
    %85 = arith.addf %82, %84 : vector<16x32xf32>
    %cst_42 = arith.constant dense<0.000000e+00> : vector<16x32xf32>
    %86 = tpu.matmul %78, %85, %cst_42 {dimension_numbers = #tpu.dot_dimension_numbers<[1], [0], [0], [1], [0, 0, 1, 1], [], []>} : vector<16x16xf32>, vector<16x32xf32>, vector<16x32xf32> -> vector<16x32xf32>
    %87 = tpu.reciprocal %80 {approx = true} : vector<16x1xf32> -> vector<16x1xf32>
    %88 = vector.broadcast %87 : vector<16x1xf32> to vector<16x32xf32>
    %89 = arith.mulf %86, %88 : vector<16x32xf32>
    %90 = arith.addf %67, %89 : vector<16x32xf32>
    %cst_43 = arith.constant 0.000000e+00 : f32
    %91 = vector.broadcast %cst_43 : f32 to vector<16x16xf32>
    %92 = arith.cmpf ogt, %36, %91 : vector<16x16xf32>
    %93 = vector.extract_strided_slice %66 {offsets = [0, 0, 1], sizes = [16, 16, 1], strides = [1, 1, 1]} : vector<16x16x2xf32> to vector<16x16x1xf32>
    %94 = vector.shape_cast %93 : vector<16x16x1xf32> to vector<16x16xf32>
    %cst_44 = arith.constant -1.000000e+30 : f32
    %95 = vector.broadcast %cst_44 : f32 to vector<16x16xf32>
    %96 = arith.select %92, %94, %95 : vector<16x16xi1>, vector<16x16xf32>
    %cst_45 = arith.constant dense<0xFF800000> : vector<16xf32>
    %97 = vector.multi_reduction <maximumf>, %96, %cst_45 [1] : vector<16x16xf32> to vector<16xf32>
    %98 = vector.shape_cast %97 : vector<16xf32> to vector<16x1xf32>
    %99 = vector.broadcast %98 : vector<16x1xf32> to vector<16x16xf32>
    %100 = arith.subf %96, %99 : vector<16x16xf32>
    %101 = math.exp %100 : vector<16x16xf32>
    %cst_46 = arith.constant dense<0.000000e+00> : vector<16xf32>
    %102 = vector.multi_reduction <add>, %101, %cst_46 [1] : vector<16x16xf32> to vector<16xf32>
    %103 = vector.shape_cast %102 : vector<16xf32> to vector<16x1xf32>
    %c0_47 = arith.constant 0 : index
    %c32 = arith.constant 32 : index
    %104 = vector.load %arg5[%c0_47, %c32] : memref<32x64xf32, #tpu.memory_space<vmem>>, vector<32x32xf32>
    %cst_48 = arith.constant dense<0.000000e+00> : vector<16x32xf32>
    %105 = tpu.matmul %38, %104, %cst_48 {dimension_numbers = #tpu.dot_dimension_numbers<[1], [0], [0], [1], [0, 0, 1, 1], [], []>} : vector<16x32xf32>, vector<32x32xf32>, vector<16x32xf32> -> vector<16x32xf32>
    %c0_49 = arith.constant 0 : index
    %c32_50 = arith.constant 32 : index
    %106 = vector.load %arg6[%c0_49, %c32_50] : memref<1x64xf32, #tpu.memory_space<vmem>>, vector<1x32xf32>
    %107 = vector.broadcast %106 : vector<1x32xf32> to vector<16x32xf32>
    %108 = arith.addf %105, %107 : vector<16x32xf32>
    %cst_51 = arith.constant dense<0.000000e+00> : vector<16x32xf32>
    %109 = tpu.matmul %101, %108, %cst_51 {dimension_numbers = #tpu.dot_dimension_numbers<[1], [0], [0], [1], [0, 0, 1, 1], [], []>} : vector<16x16xf32>, vector<16x32xf32>, vector<16x32xf32> -> vector<16x32xf32>
    %110 = tpu.reciprocal %103 {approx = true} : vector<16x1xf32> -> vector<16x1xf32>
    %111 = vector.broadcast %110 : vector<16x1xf32> to vector<16x32xf32>
    %112 = arith.mulf %109, %111 : vector<16x32xf32>
    %113 = arith.addf %90, %112 : vector<16x32xf32>
    %cst_52 = arith.constant 5.000000e-01 : f32
    %114 = vector.broadcast %cst_52 : f32 to vector<16x32xf32>
    %115 = arith.mulf %113, %114 : vector<16x32xf32>
    %c0_53 = arith.constant 0 : index
    %c0_54 = arith.constant 0 : index
    %116 = vector.load %arg11[%c0_53, %c0_54] : memref<1x32xf32, #tpu.memory_space<vmem>>, vector<1x32xf32>
    %117 = vector.broadcast %116 : vector<1x32xf32> to vector<16x32xf32>
    %118 = arith.addf %115, %117 : vector<16x32xf32>
    %cst_55 = arith.constant 0.000000e+00 : f32
    %119 = vector.broadcast %cst_55 : f32 to vector<16x32xf32>
    %120 = arith.maximumf %118, %119 : vector<16x32xf32>
    %c0_56 = arith.constant 0 : index
    %c0_57 = arith.constant 0 : index
    %121 = vector.load %arg12[%c0_56, %c0_57] : memref<32x64xf32, #tpu.memory_space<vmem>>, vector<32x64xf32>
    %cst_58 = arith.constant dense<0.000000e+00> : vector<16x64xf32>
    %122 = tpu.matmul %120, %121, %cst_58 {dimension_numbers = #tpu.dot_dimension_numbers<[1], [0], [0], [1], [0, 0, 1, 1], [], []>} : vector<16x32xf32>, vector<32x64xf32>, vector<16x64xf32> -> vector<16x64xf32>
    %c0_59 = arith.constant 0 : index
    %c0_60 = arith.constant 0 : index
    %123 = vector.load %arg13[%c0_59, %c0_60] : memref<1x64xf32, #tpu.memory_space<vmem>>, vector<1x64xf32>
    %124 = vector.broadcast %123 : vector<1x64xf32> to vector<16x64xf32>
    %125 = arith.addf %122, %124 : vector<16x64xf32>
    %c0_61 = arith.constant 0 : index
    %c0_62 = arith.constant 0 : index
    %126 = vector.load %arg14[%c0_61, %c0_62] : memref<32x64xf32, #tpu.memory_space<vmem>>, vector<32x64xf32>
    %cst_63 = arith.constant dense<0.000000e+00> : vector<16x64xf32>
    %127 = tpu.matmul %120, %126, %cst_63 {dimension_numbers = #tpu.dot_dimension_numbers<[1], [0], [0], [1], [0, 0, 1, 1], [], []>} : vector<16x32xf32>, vector<32x64xf32>, vector<16x64xf32> -> vector<16x64xf32>
    %c0_64 = arith.constant 0 : index
    %c0_65 = arith.constant 0 : index
    %128 = vector.load %arg15[%c0_64, %c0_65] : memref<1x64xf32, #tpu.memory_space<vmem>>, vector<1x64xf32>
    %129 = vector.broadcast %128 : vector<1x64xf32> to vector<16x64xf32>
    %130 = arith.addf %127, %129 : vector<16x64xf32>
    %c0_66 = arith.constant 0 : index
    %c0_67 = arith.constant 0 : index
    %131 = vector.load %arg16[%c0_66, %c0_67] : memref<16x64xf32, #tpu.memory_space<vmem>>, vector<16x64xf32>
    %cst_68 = arith.constant dense<0.000000e+00> : vector<256x64xf32>
    %132 = tpu.matmul %37, %131, %cst_68 {dimension_numbers = #tpu.dot_dimension_numbers<[1], [0], [0], [1], [0, 0, 1, 1], [], []>} : vector<256x16xf32>, vector<16x64xf32>, vector<256x64xf32> -> vector<256x64xf32>
    %133 = vector.shape_cast %125 : vector<16x64xf32> to vector<1x16x64xf32>
    %134 = vector.shape_cast %130 : vector<16x64xf32> to vector<16x1x64xf32>
    %135 = vector.broadcast %133 : vector<1x16x64xf32> to vector<16x16x64xf32>
    %136 = vector.broadcast %134 : vector<16x1x64xf32> to vector<16x16x64xf32>
    %137 = arith.addf %135, %136 : vector<16x16x64xf32>
    %138 = vector.shape_cast %132 : vector<256x64xf32> to vector<16x16x64xf32>
    %139 = arith.addf %137, %138 : vector<16x16x64xf32>
    %cst_69 = arith.constant 0.000000e+00 : f32
    %140 = vector.broadcast %cst_69 : f32 to vector<16x16x64xf32>
    %141 = arith.cmpf ogt, %139, %140 : vector<16x16x64xf32>
    %cst_70 = arith.constant 2.000000e-01 : f32
    %142 = vector.broadcast %cst_70 : f32 to vector<16x16x64xf32>
    %143 = arith.mulf %142, %139 : vector<16x16x64xf32>
    %144 = arith.select %141, %139, %143 : vector<16x16x64xi1>, vector<16x16x64xf32>
    %145 = vector.shape_cast %144 : vector<16x16x64xf32> to vector<256x64xf32>
    %c0_71 = arith.constant 0 : index
    %c0_72 = arith.constant 0 : index
    %146 = vector.load %arg17[%c0_71, %c0_72] : memref<64x2xf32, #tpu.memory_space<vmem>>, vector<64x2xf32>
    %cst_73 = arith.constant dense<0.000000e+00> : vector<256x2xf32>
    %147 = tpu.matmul %145, %146, %cst_73 {dimension_numbers = #tpu.dot_dimension_numbers<[1], [0], [0], [1], [0, 0, 1, 1], [], []>} : vector<256x64xf32>, vector<64x2xf32>, vector<256x2xf32> -> vector<256x2xf32>
    %148 = vector.shape_cast %147 : vector<256x2xf32> to vector<16x16x2xf32>
    %cst_74 = arith.constant 0.000000e+00 : f32
    %149 = vector.broadcast %cst_74 : f32 to vector<16x32xf32>
    %cst_75 = arith.constant 0.000000e+00 : f32
    %150 = vector.broadcast %cst_75 : f32 to vector<16x16xf32>
    %151 = arith.cmpf ogt, %36, %150 : vector<16x16xf32>
    %152 = vector.extract_strided_slice %148 {offsets = [0, 0, 0], sizes = [16, 16, 1], strides = [1, 1, 1]} : vector<16x16x2xf32> to vector<16x16x1xf32>
    %153 = vector.shape_cast %152 : vector<16x16x1xf32> to vector<16x16xf32>
    %cst_76 = arith.constant -1.000000e+30 : f32
    %154 = vector.broadcast %cst_76 : f32 to vector<16x16xf32>
    %155 = arith.select %151, %153, %154 : vector<16x16xi1>, vector<16x16xf32>
    %cst_77 = arith.constant dense<0xFF800000> : vector<16xf32>
    %156 = vector.multi_reduction <maximumf>, %155, %cst_77 [1] : vector<16x16xf32> to vector<16xf32>
    %157 = vector.shape_cast %156 : vector<16xf32> to vector<16x1xf32>
    %158 = vector.broadcast %157 : vector<16x1xf32> to vector<16x16xf32>
    %159 = arith.subf %155, %158 : vector<16x16xf32>
    %160 = math.exp %159 : vector<16x16xf32>
    %cst_78 = arith.constant dense<0.000000e+00> : vector<16xf32>
    %161 = vector.multi_reduction <add>, %160, %cst_78 [1] : vector<16x16xf32> to vector<16xf32>
    %162 = vector.shape_cast %161 : vector<16xf32> to vector<16x1xf32>
    %c0_79 = arith.constant 0 : index
    %c0_80 = arith.constant 0 : index
    %163 = vector.load %arg12[%c0_79, %c0_80] : memref<32x64xf32, #tpu.memory_space<vmem>>, vector<32x32xf32>
    %cst_81 = arith.constant dense<0.000000e+00> : vector<16x32xf32>
    %164 = tpu.matmul %120, %163, %cst_81 {dimension_numbers = #tpu.dot_dimension_numbers<[1], [0], [0], [1], [0, 0, 1, 1], [], []>} : vector<16x32xf32>, vector<32x32xf32>, vector<16x32xf32> -> vector<16x32xf32>
    %c0_82 = arith.constant 0 : index
    %c0_83 = arith.constant 0 : index
    %165 = vector.load %arg13[%c0_82, %c0_83] : memref<1x64xf32, #tpu.memory_space<vmem>>, vector<1x32xf32>
    %166 = vector.broadcast %165 : vector<1x32xf32> to vector<16x32xf32>
    %167 = arith.addf %164, %166 : vector<16x32xf32>
    %cst_84 = arith.constant dense<0.000000e+00> : vector<16x32xf32>
    %168 = tpu.matmul %160, %167, %cst_84 {dimension_numbers = #tpu.dot_dimension_numbers<[1], [0], [0], [1], [0, 0, 1, 1], [], []>} : vector<16x16xf32>, vector<16x32xf32>, vector<16x32xf32> -> vector<16x32xf32>
    %169 = tpu.reciprocal %162 {approx = true} : vector<16x1xf32> -> vector<16x1xf32>
    %170 = vector.broadcast %169 : vector<16x1xf32> to vector<16x32xf32>
    %171 = arith.mulf %168, %170 : vector<16x32xf32>
    %172 = arith.addf %149, %171 : vector<16x32xf32>
    %cst_85 = arith.constant 0.000000e+00 : f32
    %173 = vector.broadcast %cst_85 : f32 to vector<16x16xf32>
    %174 = arith.cmpf ogt, %36, %173 : vector<16x16xf32>
    %175 = vector.extract_strided_slice %148 {offsets = [0, 0, 1], sizes = [16, 16, 1], strides = [1, 1, 1]} : vector<16x16x2xf32> to vector<16x16x1xf32>
    %176 = vector.shape_cast %175 : vector<16x16x1xf32> to vector<16x16xf32>
    %cst_86 = arith.constant -1.000000e+30 : f32
    %177 = vector.broadcast %cst_86 : f32 to vector<16x16xf32>
    %178 = arith.select %174, %176, %177 : vector<16x16xi1>, vector<16x16xf32>
    %cst_87 = arith.constant dense<0xFF800000> : vector<16xf32>
    %179 = vector.multi_reduction <maximumf>, %178, %cst_87 [1] : vector<16x16xf32> to vector<16xf32>
    %180 = vector.shape_cast %179 : vector<16xf32> to vector<16x1xf32>
    %181 = vector.broadcast %180 : vector<16x1xf32> to vector<16x16xf32>
    %182 = arith.subf %178, %181 : vector<16x16xf32>
    %183 = math.exp %182 : vector<16x16xf32>
    %cst_88 = arith.constant dense<0.000000e+00> : vector<16xf32>
    %184 = vector.multi_reduction <add>, %183, %cst_88 [1] : vector<16x16xf32> to vector<16xf32>
    %185 = vector.shape_cast %184 : vector<16xf32> to vector<16x1xf32>
    %c0_89 = arith.constant 0 : index
    %c32_90 = arith.constant 32 : index
    %186 = vector.load %arg12[%c0_89, %c32_90] : memref<32x64xf32, #tpu.memory_space<vmem>>, vector<32x32xf32>
    %cst_91 = arith.constant dense<0.000000e+00> : vector<16x32xf32>
    %187 = tpu.matmul %120, %186, %cst_91 {dimension_numbers = #tpu.dot_dimension_numbers<[1], [0], [0], [1], [0, 0, 1, 1], [], []>} : vector<16x32xf32>, vector<32x32xf32>, vector<16x32xf32> -> vector<16x32xf32>
    %c0_92 = arith.constant 0 : index
    %c32_93 = arith.constant 32 : index
    %188 = vector.load %arg13[%c0_92, %c32_93] : memref<1x64xf32, #tpu.memory_space<vmem>>, vector<1x32xf32>
    %189 = vector.broadcast %188 : vector<1x32xf32> to vector<16x32xf32>
    %190 = arith.addf %187, %189 : vector<16x32xf32>
    %cst_94 = arith.constant dense<0.000000e+00> : vector<16x32xf32>
    %191 = tpu.matmul %183, %190, %cst_94 {dimension_numbers = #tpu.dot_dimension_numbers<[1], [0], [0], [1], [0, 0, 1, 1], [], []>} : vector<16x16xf32>, vector<16x32xf32>, vector<16x32xf32> -> vector<16x32xf32>
    %192 = tpu.reciprocal %185 {approx = true} : vector<16x1xf32> -> vector<16x1xf32>
    %193 = vector.broadcast %192 : vector<16x1xf32> to vector<16x32xf32>
    %194 = arith.mulf %191, %193 : vector<16x32xf32>
    %195 = arith.addf %172, %194 : vector<16x32xf32>
    %cst_95 = arith.constant 5.000000e-01 : f32
    %196 = vector.broadcast %cst_95 : f32 to vector<16x32xf32>
    %197 = arith.mulf %195, %196 : vector<16x32xf32>
    %c0_96 = arith.constant 0 : index
    %c0_97 = arith.constant 0 : index
    %198 = vector.load %arg18[%c0_96, %c0_97] : memref<1x32xf32, #tpu.memory_space<vmem>>, vector<1x32xf32>
    %199 = vector.broadcast %198 : vector<1x32xf32> to vector<16x32xf32>
    %200 = arith.addf %197, %199 : vector<16x32xf32>
    %cst_98 = arith.constant 0.000000e+00 : f32
    %201 = vector.broadcast %cst_98 : f32 to vector<16x32xf32>
    %202 = arith.maximumf %200, %201 : vector<16x32xf32>
    %c0_99 = arith.constant 0 : index
    %c0_100 = arith.constant 0 : index
    %203 = vector.load %arg19[%c0_99, %c0_100] : memref<32x64xf32, #tpu.memory_space<vmem>>, vector<32x64xf32>
    %cst_101 = arith.constant dense<0.000000e+00> : vector<16x64xf32>
    %204 = tpu.matmul %202, %203, %cst_101 {dimension_numbers = #tpu.dot_dimension_numbers<[1], [0], [0], [1], [0, 0, 1, 1], [], []>} : vector<16x32xf32>, vector<32x64xf32>, vector<16x64xf32> -> vector<16x64xf32>
    %c0_102 = arith.constant 0 : index
    %c0_103 = arith.constant 0 : index
    %205 = vector.load %arg20[%c0_102, %c0_103] : memref<1x64xf32, #tpu.memory_space<vmem>>, vector<1x64xf32>
    %206 = vector.broadcast %205 : vector<1x64xf32> to vector<16x64xf32>
    %207 = arith.addf %204, %206 : vector<16x64xf32>
    %c0_104 = arith.constant 0 : index
    %c0_105 = arith.constant 0 : index
    %208 = vector.load %arg21[%c0_104, %c0_105] : memref<32x64xf32, #tpu.memory_space<vmem>>, vector<32x64xf32>
    %cst_106 = arith.constant dense<0.000000e+00> : vector<16x64xf32>
    %209 = tpu.matmul %202, %208, %cst_106 {dimension_numbers = #tpu.dot_dimension_numbers<[1], [0], [0], [1], [0, 0, 1, 1], [], []>} : vector<16x32xf32>, vector<32x64xf32>, vector<16x64xf32> -> vector<16x64xf32>
    %c0_107 = arith.constant 0 : index
    %c0_108 = arith.constant 0 : index
    %210 = vector.load %arg22[%c0_107, %c0_108] : memref<1x64xf32, #tpu.memory_space<vmem>>, vector<1x64xf32>
    %211 = vector.broadcast %210 : vector<1x64xf32> to vector<16x64xf32>
    %212 = arith.addf %209, %211 : vector<16x64xf32>
    %c0_109 = arith.constant 0 : index
    %c0_110 = arith.constant 0 : index
    %213 = vector.load %arg23[%c0_109, %c0_110] : memref<16x64xf32, #tpu.memory_space<vmem>>, vector<16x64xf32>
    %cst_111 = arith.constant dense<0.000000e+00> : vector<256x64xf32>
    %214 = tpu.matmul %37, %213, %cst_111 {dimension_numbers = #tpu.dot_dimension_numbers<[1], [0], [0], [1], [0, 0, 1, 1], [], []>} : vector<256x16xf32>, vector<16x64xf32>, vector<256x64xf32> -> vector<256x64xf32>
    %215 = vector.shape_cast %207 : vector<16x64xf32> to vector<1x16x64xf32>
    %216 = vector.shape_cast %212 : vector<16x64xf32> to vector<16x1x64xf32>
    %217 = vector.broadcast %215 : vector<1x16x64xf32> to vector<16x16x64xf32>
    %218 = vector.broadcast %216 : vector<16x1x64xf32> to vector<16x16x64xf32>
    %219 = arith.addf %217, %218 : vector<16x16x64xf32>
    %220 = vector.shape_cast %214 : vector<256x64xf32> to vector<16x16x64xf32>
    %221 = arith.addf %219, %220 : vector<16x16x64xf32>
    %cst_112 = arith.constant 0.000000e+00 : f32
    %222 = vector.broadcast %cst_112 : f32 to vector<16x16x64xf32>
    %223 = arith.cmpf ogt, %221, %222 : vector<16x16x64xf32>
    %cst_113 = arith.constant 2.000000e-01 : f32
    %224 = vector.broadcast %cst_113 : f32 to vector<16x16x64xf32>
    %225 = arith.mulf %224, %221 : vector<16x16x64xf32>
    %226 = arith.select %223, %221, %225 : vector<16x16x64xi1>, vector<16x16x64xf32>
    %227 = vector.shape_cast %226 : vector<16x16x64xf32> to vector<256x64xf32>
    %c0_114 = arith.constant 0 : index
    %c0_115 = arith.constant 0 : index
    %228 = vector.load %arg24[%c0_114, %c0_115] : memref<64x2xf32, #tpu.memory_space<vmem>>, vector<64x2xf32>
    %cst_116 = arith.constant dense<0.000000e+00> : vector<256x2xf32>
    %229 = tpu.matmul %227, %228, %cst_116 {dimension_numbers = #tpu.dot_dimension_numbers<[1], [0], [0], [1], [0, 0, 1, 1], [], []>} : vector<256x64xf32>, vector<64x2xf32>, vector<256x2xf32> -> vector<256x2xf32>
    %230 = vector.shape_cast %229 : vector<256x2xf32> to vector<16x16x2xf32>
    %cst_117 = arith.constant 0.000000e+00 : f32
    %231 = vector.broadcast %cst_117 : f32 to vector<16x32xf32>
    %cst_118 = arith.constant 0.000000e+00 : f32
    %232 = vector.broadcast %cst_118 : f32 to vector<16x16xf32>
    %233 = arith.cmpf ogt, %36, %232 : vector<16x16xf32>
    %234 = vector.extract_strided_slice %230 {offsets = [0, 0, 0], sizes = [16, 16, 1], strides = [1, 1, 1]} : vector<16x16x2xf32> to vector<16x16x1xf32>
    %235 = vector.shape_cast %234 : vector<16x16x1xf32> to vector<16x16xf32>
    %cst_119 = arith.constant -1.000000e+30 : f32
    %236 = vector.broadcast %cst_119 : f32 to vector<16x16xf32>
    %237 = arith.select %233, %235, %236 : vector<16x16xi1>, vector<16x16xf32>
    %cst_120 = arith.constant dense<0xFF800000> : vector<16xf32>
    %238 = vector.multi_reduction <maximumf>, %237, %cst_120 [1] : vector<16x16xf32> to vector<16xf32>
    %239 = vector.shape_cast %238 : vector<16xf32> to vector<16x1xf32>
    %240 = vector.broadcast %239 : vector<16x1xf32> to vector<16x16xf32>
    %241 = arith.subf %237, %240 : vector<16x16xf32>
    %242 = math.exp %241 : vector<16x16xf32>
    %cst_121 = arith.constant dense<0.000000e+00> : vector<16xf32>
    %243 = vector.multi_reduction <add>, %242, %cst_121 [1] : vector<16x16xf32> to vector<16xf32>
    %244 = vector.shape_cast %243 : vector<16xf32> to vector<16x1xf32>
    %c0_122 = arith.constant 0 : index
    %c0_123 = arith.constant 0 : index
    %245 = vector.load %arg19[%c0_122, %c0_123] : memref<32x64xf32, #tpu.memory_space<vmem>>, vector<32x32xf32>
    %cst_124 = arith.constant dense<0.000000e+00> : vector<16x32xf32>
    %246 = tpu.matmul %202, %245, %cst_124 {dimension_numbers = #tpu.dot_dimension_numbers<[1], [0], [0], [1], [0, 0, 1, 1], [], []>} : vector<16x32xf32>, vector<32x32xf32>, vector<16x32xf32> -> vector<16x32xf32>
    %c0_125 = arith.constant 0 : index
    %c0_126 = arith.constant 0 : index
    %247 = vector.load %arg20[%c0_125, %c0_126] : memref<1x64xf32, #tpu.memory_space<vmem>>, vector<1x32xf32>
    %248 = vector.broadcast %247 : vector<1x32xf32> to vector<16x32xf32>
    %249 = arith.addf %246, %248 : vector<16x32xf32>
    %cst_127 = arith.constant dense<0.000000e+00> : vector<16x32xf32>
    %250 = tpu.matmul %242, %249, %cst_127 {dimension_numbers = #tpu.dot_dimension_numbers<[1], [0], [0], [1], [0, 0, 1, 1], [], []>} : vector<16x16xf32>, vector<16x32xf32>, vector<16x32xf32> -> vector<16x32xf32>
    %251 = tpu.reciprocal %244 {approx = true} : vector<16x1xf32> -> vector<16x1xf32>
    %252 = vector.broadcast %251 : vector<16x1xf32> to vector<16x32xf32>
    %253 = arith.mulf %250, %252 : vector<16x32xf32>
    %254 = arith.addf %231, %253 : vector<16x32xf32>
    %cst_128 = arith.constant 0.000000e+00 : f32
    %255 = vector.broadcast %cst_128 : f32 to vector<16x16xf32>
    %256 = arith.cmpf ogt, %36, %255 : vector<16x16xf32>
    %257 = vector.extract_strided_slice %230 {offsets = [0, 0, 1], sizes = [16, 16, 1], strides = [1, 1, 1]} : vector<16x16x2xf32> to vector<16x16x1xf32>
    %258 = vector.shape_cast %257 : vector<16x16x1xf32> to vector<16x16xf32>
    %cst_129 = arith.constant -1.000000e+30 : f32
    %259 = vector.broadcast %cst_129 : f32 to vector<16x16xf32>
    %260 = arith.select %256, %258, %259 : vector<16x16xi1>, vector<16x16xf32>
    %cst_130 = arith.constant dense<0xFF800000> : vector<16xf32>
    %261 = vector.multi_reduction <maximumf>, %260, %cst_130 [1] : vector<16x16xf32> to vector<16xf32>
    %262 = vector.shape_cast %261 : vector<16xf32> to vector<16x1xf32>
    %263 = vector.broadcast %262 : vector<16x1xf32> to vector<16x16xf32>
    %264 = arith.subf %260, %263 : vector<16x16xf32>
    %265 = math.exp %264 : vector<16x16xf32>
    %cst_131 = arith.constant dense<0.000000e+00> : vector<16xf32>
    %266 = vector.multi_reduction <add>, %265, %cst_131 [1] : vector<16x16xf32> to vector<16xf32>
    %267 = vector.shape_cast %266 : vector<16xf32> to vector<16x1xf32>
    %c0_132 = arith.constant 0 : index
    %c32_133 = arith.constant 32 : index
    %268 = vector.load %arg19[%c0_132, %c32_133] : memref<32x64xf32, #tpu.memory_space<vmem>>, vector<32x32xf32>
    %cst_134 = arith.constant dense<0.000000e+00> : vector<16x32xf32>
    %269 = tpu.matmul %202, %268, %cst_134 {dimension_numbers = #tpu.dot_dimension_numbers<[1], [0], [0], [1], [0, 0, 1, 1], [], []>} : vector<16x32xf32>, vector<32x32xf32>, vector<16x32xf32> -> vector<16x32xf32>
    %c0_135 = arith.constant 0 : index
    %c32_136 = arith.constant 32 : index
    %270 = vector.load %arg20[%c0_135, %c32_136] : memref<1x64xf32, #tpu.memory_space<vmem>>, vector<1x32xf32>
    %271 = vector.broadcast %270 : vector<1x32xf32> to vector<16x32xf32>
    %272 = arith.addf %269, %271 : vector<16x32xf32>
    %cst_137 = arith.constant dense<0.000000e+00> : vector<16x32xf32>
    %273 = tpu.matmul %265, %272, %cst_137 {dimension_numbers = #tpu.dot_dimension_numbers<[1], [0], [0], [1], [0, 0, 1, 1], [], []>} : vector<16x16xf32>, vector<16x32xf32>, vector<16x32xf32> -> vector<16x32xf32>
    %274 = tpu.reciprocal %267 {approx = true} : vector<16x1xf32> -> vector<16x1xf32>
    %275 = vector.broadcast %274 : vector<16x1xf32> to vector<16x32xf32>
    %276 = arith.mulf %273, %275 : vector<16x32xf32>
    %277 = arith.addf %254, %276 : vector<16x32xf32>
    %cst_138 = arith.constant 5.000000e-01 : f32
    %278 = vector.broadcast %cst_138 : f32 to vector<16x32xf32>
    %279 = arith.mulf %277, %278 : vector<16x32xf32>
    %c0_139 = arith.constant 0 : index
    %c0_140 = arith.constant 0 : index
    %280 = vector.load %arg25[%c0_139, %c0_140] : memref<1x32xf32, #tpu.memory_space<vmem>>, vector<1x32xf32>
    %281 = vector.broadcast %280 : vector<1x32xf32> to vector<16x32xf32>
    %282 = arith.addf %279, %281 : vector<16x32xf32>
    %c0_141 = arith.constant 0 : index
    %c0_142 = arith.constant 0 : index
    %283 = vector.load %arg26[%c0_141, %c0_142] : memref<16x32xf32, #tpu.memory_space<vmem>>, vector<16x32xf32>
    tpu.vector_store %arg26[%c0_141, %c0_142], %282 {strides = array<i32>} : memref<16x32xf32, #tpu.memory_space<vmem>>, vector<16x32xf32>,
    return
  }
}

</mosaic_0001>

<bundles_post_ra>
// kernel: gnn10_forward.1
= control target key start
LH: loop header
LB: loop body
LE: loop exit
PB: predicated region body
PF: predicated region fallthrough
CT: control target
= control target key end

     0   :  { %vm12169_vm0 = vcmask 130048   ;;  %vm125_vm1 = vcmask 64512   ;;  %v456_v0 = vlaneseq  ;;  %v9151_v32 = vmov 0.0   ;;  %s12058_s3 = inlined_call_operand.vmem [shape: f32[8,16], index: 3, kind: input, shape index: {}]   ;;  %s12059_s2 = inlined_call_operand.vmem [shape: f32[16,16], index: 2, kind: input, shape index: {}]   ;;  %s12060_s1 = inlined_call_operand.vmem [shape: f32[256,8], index: 1, kind: input, shape index: {}]   ;;  %s12061_s5 = inlined_call_operand.vmem [shape: f32[32,64], index: 5, kind: input, shape index: {}]   ;;  %s12062_s7 = inlined_call_operand.vmem [shape: f32[32,64], index: 7, kind: input, shape index: {}]   ;;  %s12063_s0 = inlined_call_operand.vmem [shape: f32[16,32], index: 0, kind: input, shape index: {}]   ;;  %s12064_s9 = inlined_call_operand.vmem [shape: f32[16,64], index: 9, kind: input, shape index: {}]   ;;  %s12065_s4 = inlined_call_operand.vmem [shape: f32[1,16], index: 4, kind: input, shape index: {}]   ;;  %s12066_s10 = inlined_call_operand.vmem [shape: f32[64,2], index: 10, kind: input, shape index: {}]   ;;  %s12067_s8 = inlined_call_operand.vmem [shape: f32[1,64], index: 8, kind: input, shape index: {}]   ;;  %s12068_s6 = inlined_call_operand.vmem [shape: f32[1,64], index: 6, kind: input, shape index: {}]   ;;  %s12069_s12 = inlined_call_operand.vmem [shape: f32[32,64], index: 12, kind: input, shape index: {}]   ;;  %s12070_s14 = inlined_call_operand.vmem [shape: f32[32,64], index: 14, kind: input, shape index: {}]   ;;  %s12071_s11 = inlined_call_operand.vmem [shape: f32[1,32], index: 11, kind: input, shape index: {}]   ;;  %s12072_s16 = inlined_call_operand.vmem [shape: f32[16,64], index: 16, kind: input, shape index: {}]   ;;  %s12073_s17 = inlined_call_operand.vmem [shape: f32[64,2], index: 17, kind: input, shape index: {}]   ;;  %s12074_s15 = inlined_call_operand.vmem [shape: f32[1,64], index: 15, kind: input, shape index: {}]   ;;  %s12075_s13 = inlined_call_operand.vmem [shape: f32[1,64], index: 13, kind: input, shape index: {}]   ;;  %s12076_s19 = inlined_call_operand.vmem [shape: f32[32,64], index: 19, kind: input, shape index: {}]   ;;  %s12077_s21 = inlined_call_operand.vmem [shape: f32[32,64], index: 21, kind: input, shape index: {}]   ;;  %s12078_s23 = inlined_call_operand.vmem [shape: f32[16,64], index: 23, kind: input, shape index: {}]   ;;  %s12079_s18 = inlined_call_operand.vmem [shape: f32[1,32], index: 18, kind: input, shape index: {}]   ;;  %s12080_s24 = inlined_call_operand.vmem [shape: f32[64,2], index: 24, kind: input, shape index: {}]   ;;  %s12081_s22 = inlined_call_operand.vmem [shape: f32[1,64], index: 22, kind: input, shape index: {}]   ;;  %s12082_s20 = inlined_call_operand.vmem [shape: f32[1,64], index: 20, kind: input, shape index: {}]   ;;  %s12083_s25 = inlined_call_operand.vmem [shape: f32[1,32], index: 25, kind: input, shape index: {}]   ;;  %s12084_s26 = inlined_call_operand.vmem [shape: f32[16,32], index: 26, kind: output, shape index: {}]  }
   0x1   :  { %12175 = sst [smem:[#allocation38_spill]] %s12058_s3  ;;  %vm1414_vm4 = vcmask 261120   ;;  %vm2253_vm7 = vcmask 523264  }
   0x2   :  { %12176 = sst [smem:[#allocation39_spill]] %s12059_s2  ;;  %v9311_v7 = vshrl.u32 %v456_v0, 7  ;;  %v9360_v22 = vand.u32 127, %v456_v0  ;;  %s9155_s2 = smov 96  }
   0x3   :  { %12177 = sst [smem:[#allocation40_spill]] %s12060_s1 }
   0x4   :  { %12178 = sst [smem:[#allocation41_spill]] %s12061_s5  ;;  %s12186_s5 = sld [smem:[#allocation38_spill]]  ;;  %12189 = vst [vmem:[#allocation2_spill] sm:$0xff] %v9311_v7  ;;  %v9315_v8 = vsub.s32 0, %v9311_v7  ;;  %v9318_v9 = vsub.s32 1, %v9311_v7  ;;  %v9341_v16 = vsub.s32 2, %v9311_v7  ;;  %vm877_vm2 = vcmp.eq.s32.totalorder %v9311_v7, %v9360_v22 }
   0x5   :  { %12179 = sst [smem:[#allocation42_spill]] %s12062_s7  ;;  %s12187_s7 = sld [smem:[#allocation39_spill]]  ;;  %12191 = vst [vmem:[#allocation4_spill] sm:$0xff] %v9360_v22  ;;  %v9364_v23 = vsub.s32 3, %v9311_v7  ;;  %v9371_v25 = vsub.s32 4, %v9311_v7  ;;  %v9388_v30 = vsub.s32 5, %v9311_v7 }
   0x6   :  { %12180 = sst [smem:[#allocation43_spill]] %s12063_s0  ;;  %12190 = vst [vmem:[#allocation3_spill] sm:$0xff] %v9315_v8  ;;  %v9393_v33 = vsel %vm877_vm2, 1.0, %v9151_v32  ;;  %v874_v38 = vadd.s32 8, %v9311_v7  ;;  %v9450_v50 = vsub.s32 6, %v9311_v7  ;;  %v9495_v63 = vsub.s32 7, %v9311_v7 }
   0x7   :  { %12181 = sst [smem:[#allocation44_spill]] %s12064_s9  ;;  %12192 = vst [vmem:[#allocation5_spill] sm:$0xff] %v9393_v33  ;;  %v9403_v36 = vsub.f32 1.0, %v9393_v33  ;;  %v1096_v45 = vrot.slane %v9393_v33, %v9315_v8  ;;  %v1107_v61 = vrot.slane %v9393_v33, %v9318_v9  ;;  %s12194_s30 = sld [smem:[#allocation41_spill]] }
   0x8   :  { %12182 = sst [smem:[#allocation45_spill]] %s12065_s4  ;;  %vm878_vm3 = vcmp.eq.s32.totalorder %v874_v38, %v9360_v22  ;;  %s12195_s28 = sld [smem:[#allocation42_spill]] }
   0x9   :  { %12183 = sst [smem:[#allocation46_spill]] %s12066_s10  ;;  %v888_v40 = vrot.slane %v9403_v36, %v9315_v8  ;;  %v9417_v41 = vsel %vm878_vm3, 1.0, %v9151_v32  ;;  %v899_v58 = vrot.slane %v9403_v36, %v9318_v9  ;;  %s12196_s1 = sld [smem:[#allocation43_spill]] }
   0xa   :  { %12184 = sst [smem:[#allocation47_spill]] %s12067_s8  ;;  %v117_v1 = vld [vmem:[%s12186_s5] sm:$0xff]  ;;  %s12188_s8 = sld [smem:[#allocation40_spill]]  ;;  %12193 = vst [vmem:[#allocation6_spill] sm:$0xff] %v9417_v41 }
   0xb   :  { %12185 = sst [smem:[#allocation48_spill]] %s12068_s6  ;;  %v9297_v2 = vld [vmem:[%s12187_s7] sm:$0xff]  ;;  %8217 = vmatprep.subr.mxu0 %v117_v1  ;;  %v9487_v60 = vld [vmem:[%s12187_s7 + $0x8] sm:$0xff]  ;;  %s12197_s10 = sld [smem:[#allocation44_spill]] }
   0xc   :  { %v448_v4 = vsel %vm12169_vm0, %v9297_v2, 0.0  ;;  %8218 = vmatpush3.msra.mxu0 %v117_v1  ;;  %v459_v11 = vrot.slane %v9297_v2, %v9315_v8  ;;  %v470_v13 = vrot.slane %v9297_v2, %v9318_v9  ;;  %v481_v19 = vrot.slane %v9297_v2, %v9341_v16  ;;  %s12198_s6 = sld [smem:[#allocation45_spill]]  ;;  %s12199_s4 = sld [smem:[#allocation46_spill]] }
   0xd   :  { %449 = vadd.xlane.f32.xlu0 %v448_v4  ;;  %v492_v27 = vrot.slane %v9297_v2, %v9364_v23  ;;  %v503_v29 = vrot.slane %v9297_v2, %v9371_v25  ;;  %v514_v35 = vrot.slane %v9297_v2, %v9388_v30  ;;  %v525_v53 = vrot.slane %v9297_v2, %v9450_v50  ;;  %v1403_v4 = vld [vmem:[%s12194_s30] sm:$0xff]  ;;  %s12232_s27 = sld [smem:[#allocation48_spill]] }
   0xe   :  { %465 = vbcast.lane.b32.xlu1 %v459_v11, 264  ;;  %v451_v62 = vsel %vm12169_vm0, %v9487_v60, 0.0  ;;  %v536_v0 = vrot.slane %v9297_v2, %v9495_v63  ;;  %v910_v1 = vrot.slane %v9403_v36, %v9341_v16  ;;  %v1405_v2 = vld [vmem:[%s12194_s30 + $0x10] sm:$0xff] }
  0x10   :  { %v85_v3 = vld [vmem:[%s12188_s8] sm:$0xff]  ;;  %v86_v5 = vld [vmem:[%s12188_s8 + $0x8] sm:$0xff]  ;;  %v87_v6 = vld [vmem:[%s12188_s8 + $0x10] sm:$0xff] }
  0x11   :  { %8219 = vmatprep.mubr.msk.f32.mxu0 %vm125_vm1, %v85_v3  ;;  %v88_v10 = vld [vmem:[%s12188_s8 + $0x18] sm:$0xff]  ;;  %v89_v12 = vld [vmem:[%s12188_s8 + $0x20] sm:$0xff]  ;;  %v90_v14 = vld [vmem:[%s12188_s8 + $0x28] sm:$0xff]  ;;  %v1118_v3 = vrot.slane %v9393_v33, %v9341_v16 }
  0x12   :  { %8220 = vmatmul.mubr.msk.f32.vlgmr.msra.gmra.mrb[0].mxu0 %vm125_vm1, %v86_v5  ;;  %v91_v15 = vld [vmem:[%s12188_s8 + $0x30] sm:$0xff]  ;;  %472 = vbcast.lane.b32.xlu1 %v470_v13, 256  ;;  %v92_v17 = vld [vmem:[%s12188_s8 + $0x38] sm:$0xff]  ;;  %v93_v18 = vld [vmem:[%s12188_s8 + $0x40] sm:$0xff] }
  0x13   :  { %8222 = vmatprep.mubr.msk.f32.mxu0 %vm125_vm1, %v87_v6  ;;  %v94_v20 = vld [vmem:[%s12188_s8 + $0x48] sm:$0xff]  ;;  %v95_v21 = vld [vmem:[%s12188_s8 + $0x50] sm:$0xff]  ;;  %v96_v24 = vld [vmem:[%s12188_s8 + $0x58] sm:$0xff] }
  0x14   :  { %v97_v26 = vld [vmem:[%s12188_s8 + $0x60] sm:$0xff]  ;;  %v98_v28 = vld [vmem:[%s12188_s8 + $0x68] sm:$0xff]  ;;  %v99_v31 = vld [vmem:[%s12188_s8 + $0x70] sm:$0xff] }
  0x15   :  { %v100_v34 = vld [vmem:[%s12188_s8 + $0x78] sm:$0xff]  ;;  %v101_v37 = vld [vmem:[%s12188_s8 + $0x80] sm:$0xff]  ;;  %v102_v39 = vld [vmem:[%s12188_s8 + $0x88] sm:$0xff] }
  0x16   :  { %8223 = vmatmul.mubr.msk.f32.gmra.mrb[2].mxu0 %vm125_vm1, %v88_v10  ;;  %476 = vbcast.lane.b32.xlu1 %v470_v13, 264  ;;  %v103_v42 = vld [vmem:[%s12188_s8 + $0x90] sm:$0xff]  ;;  %v104_v43 = vld [vmem:[%s12188_s8 + $0x98] sm:$0xff]  ;;  %v105_v44 = vld [vmem:[%s12188_s8 + $0xa0] sm:$0xff]  ;;  %v921_v13 = vrot.slane %v9403_v36, %v9364_v23 }
  0x17   :  { %8225 = vmatprep.mubr.msk.f32.mxu0 %vm125_vm1, %v89_v12  ;;  %v106_v46 = vld [vmem:[%s12188_s8 + $0xa8] sm:$0xff]  ;;  %v107_v47 = vld [vmem:[%s12188_s8 + $0xb0] sm:$0xff]  ;;  %v108_v48 = vld [vmem:[%s12188_s8 + $0xb8] sm:$0xff] }
  0x18   :  { %v109_v49 = vld [vmem:[%s12188_s8 + $0xc0] sm:$0xff]  ;;  %v110_v51 = vld [vmem:[%s12188_s8 + $0xc8] sm:$0xff]  ;;  %v111_v52 = vld [vmem:[%s12188_s8 + $0xd0] sm:$0xff] }
  0x19   :  { %v112_v54 = vld [vmem:[%s12188_s8 + $0xd8] sm:$0xff]  ;;  %v113_v55 = vld [vmem:[%s12188_s8 + $0xe0] sm:$0xff]  ;;  %v114_v56 = vld [vmem:[%s12188_s8 + $0xe8] sm:$0xff] }
  0x1a   :  { %8226 = vmatmul.mubr.msk.f32.gmra.mrb[4].mxu0 %vm125_vm1, %v90_v14  ;;  %483 = vbcast.lane.b32.xlu1 %v481_v19, 256  ;;  %v115_v57 = vld [vmem:[%s12188_s8 + $0xf0] sm:$0xff]  ;;  %v116_v59 = vld [vmem:[%s12188_s8 + $0xf8] sm:$0xff]  ;;  %v1404_v5 = vld [vmem:[%s12194_s30 + $0x8] sm:$0xff] }
  0x1b   :  { %8228 = vmatprep.mubr.msk.f32.mxu0 %vm125_vm1, %v91_v15  ;;  %v8789_v6 = vpack.c.bf16 %v1404_v5, %v1403_v4  ;;  %v1406_v10 = vld [vmem:[%s12194_s30 + $0x18] sm:$0xff]  ;;  %v1496_v14 = vld [vmem:[%s12195_s28] sm:$0xff]  ;;  %v1497_v15 = vld [vmem:[%s12195_s28 + $0x8] sm:$0xff]  ;;  %v1195_v4 = vrot.slane %v9417_v41, %v9318_v9 }
  0x1c   :  { %v8793_v12 = vpack.c.bf16 %v1406_v10, %v1405_v2  ;;  %v1583_v32 = vld [vmem:[%s12197_s10 + $0x8] sm:$0xff] }
  0x1d   :  { %8790 = vmatprep.subr.bf16.mxu1 %v8789_v6 }
  0x1e   :  { %8229 = vmatmul.mubr.msk.f32.gmra.mrb[6].mxu0 %vm125_vm1, %v92_v17  ;;  %487 = vbcast.lane.b32.xlu1 %v481_v19, 264  ;;  %v8797_v17 = vpack.c.bf16 %v1497_v15, %v1496_v14  ;;  %v1402_v19 = vld [vmem:[%s12196_s1 + $0x8] sm:$0xff] }
  0x1f   :  { %8231 = vmatprep.mubr.msk.f32.mxu0 %vm125_vm1, %v93_v18  ;;  %8792 = vmatpush3.bf16.msra.mxu1 %v8789_v6  ;;  %v1401_v18 = vld [vmem:[%s12196_s1] sm:$0xff]  ;;  %v624_v6 = vrot.slane %v9487_v60, %v9495_v63 }
  0x20   :  { %8794 = vmatprep.subr.bf16.mxu1 %v8793_v12  ;;  %8275 = vmatprep.mubr.msk.f32.mxu1 %vm1414_vm4, %v1401_v18 }
  0x22   :  { %8232 = vmatmul.mubr.msk.f32.gmra.mrb[8].mxu0 %vm125_vm1, %v94_v20  ;;  %494 = vbcast.lane.b32.xlu1 %v492_v27, 256  ;;  %v1129_v20 = vrot.slane %v9393_v33, %v9364_v23 }
  0x23   :  { %8234 = vmatprep.mubr.msk.f32.mxu0 %vm125_vm1, %v95_v21  ;;  %461 = vbcast.lane.b32.xlu0 %v459_v11, 256  ;;  %v547_v11 = vrot.slane %v9487_v60, %v9315_v8  ;;  %v1498_v21 = vld [vmem:[%s12195_s28 + $0x10] sm:$0xff] }
  0x24   :  { %8796 = vmatpush3.bf16.msra.mxu1 %v8793_v12 }
  0x25   :  { %8798 = vmatprep.subr.bf16.mxu1 %v8797_v17 }
  0x26   :  { %8235 = vmatmul.mubr.msk.f32.gmra.mrb[10].mxu0 %vm125_vm1, %v96_v24  ;;  %498 = vbcast.lane.b32.xlu1 %v492_v27, 264  ;;  %v1499_v24 = vld [vmem:[%s12195_s28 + $0x18] sm:$0xff]  ;;  %v558_v27 = vrot.slane %v9487_v60, %v9318_v9 }
  0x27   :  { %8237 = vmatprep.mubr.msk.f32.mxu0 %vm125_vm1, %v97_v26  ;;  %505 = vbcast.lane.b32.xlu0 %v503_v29, 256  ;;  %v8801_v26 = vpack.c.bf16 %v1499_v24, %v1498_v21  ;;  %v1228_v24 = vrot.slane %v9417_v41, %v9371_v25 }
  0x28   :  { %8276 = vmatmul.mubr.msk.f32.vlgmr.msra.gmra.mrb[0].mxu1 %vm1414_vm4, %v1402_v19 }
  0x29   :  { %8800 = vmatpush3.bf16.msra.mxu1 %v8797_v17  ;;  %8286 = vmatprep.mubr.msk.f32.mxu1 %vm1414_vm4, %v1401_v18  ;;  %v1217_v17 = vrot.slane %v9417_v41, %v9364_v23 }
  0x2a   :  { %8238 = vmatmul.mubr.msk.f32.gmra.mrb[12].mxu0 %vm125_vm1, %v98_v28  ;;  %509 = vbcast.lane.b32.xlu1 %v503_v29, 264  ;;  %v932_v28 = vrot.slane %v9403_v36, %v9371_v25  ;;  %v1140_v29 = vrot.slane %v9393_v33, %v9371_v25 }
  0x2b   :  { %8240 = vmatprep.mubr.msk.f32.mxu0 %vm125_vm1, %v99_v31  ;;  %516 = vbcast.lane.b32.xlu0 %v514_v35, 256  ;;  %v1582_v31 = vld [vmem:[%s12197_s10] sm:$0xff] }
  0x2c   :  { %8802 = vmatprep.subr.bf16.mxu1 %v8801_v26 }
  0x2d   :  { %8804 = vmatpush3.bf16.msra.mxu1 %v8801_v26 }
  0x2e   :  { %8241 = vmatmul.mubr.msk.f32.gmra.mrb[14].mxu0 %vm125_vm1, %v100_v34  ;;  %520 = vbcast.lane.b32.xlu1 %v514_v35, 264  ;;  %v8805_v34 = vpack.c.bf16 %v1583_v32, %v1582_v31  ;;  %v569_v35 = vrot.slane %v9487_v60, %v9341_v16 }
  0x2f   :  { %8243 = vmatprep.mubr.msk.f32.mxu0 %vm125_vm1, %v101_v37  ;;  %890 = vbcast.lane.b32.xlu0 %v888_v40, 256  ;;  %v943_v37 = vrot.slane %v9403_v36, %v9388_v30 }
  0x30   :  { %8287 = vmatmul.mubr.msk.f32.vlgmr.msra.gmra.mrb[2].mxu1 %vm1414_vm4, %v1402_v19  ;;  %8806 = vmatprep.subr.bf16.mxu1 %v8805_v34 }
  0x31   :  { %8808 = vmatpush3.bf16.msra.mxu1 %v8805_v34 }
  0x32   :  { %8244 = vmatmul.mubr.msk.f32.gmra.mrb[16].mxu0 %vm125_vm1, %v102_v39  ;;  %1098 = vbcast.lane.b32.xlu1 %v1096_v45, 256  ;;  %v1151_v39 = vrot.slane %v9393_v33, %v9388_v30 }
  0x33   :  { %8246 = vmatprep.mubr.msk.f32.mxu0 %vm125_vm1, %v103_v42  ;;  %v580_v42 = vrot.slane %v9487_v60, %v9364_v23 }
  0x36   :  { %8247 = vmatmul.mubr.msk.f32.gmra.mrb[18].mxu0 %vm125_vm1, %v104_v43  ;;  %894 = vbcast.lane.b32.xlu1 %v888_v40, 264 }
  0x37   :  { %8249 = vmatprep.mubr.msk.f32.mxu0 %vm125_vm1, %v105_v44  ;;  %v954_v44 = vrot.slane %v9403_v36, %v9450_v50 }
  0x3a   :  { %8250 = vmatmul.mubr.msk.f32.gmra.mrb[20].mxu0 %vm125_vm1, %v106_v46  ;;  %1102 = vbcast.lane.b32.xlu1 %v1096_v45, 264  ;;  %v1162_v46 = vrot.slane %v9393_v33, %v9450_v50 }
  0x3b   :  { %8252 = vmatprep.mubr.msk.f32.mxu0 %vm125_vm1, %v107_v47 }
  0x3e   :  { %8253 = vmatmul.mubr.msk.f32.gmra.mrb[22].mxu0 %vm125_vm1, %v108_v48  ;;  %527 = vbcast.lane.b32.xlu1 %v525_v53, 256  ;;  %v591_v48 = vrot.slane %v9487_v60, %v9371_v25 }
  0x3f   :  { %8255 = vmatprep.mubr.msk.f32.mxu0 %vm125_vm1, %v109_v49 }
  0x42   :  { %8256 = vmatmul.mubr.msk.f32.gmra.mrb[24].mxu0 %vm125_vm1, %v110_v51  ;;  %531 = vbcast.lane.b32.xlu1 %v525_v53, 264  ;;  %v965_v51 = vrot.slane %v9403_v36, %v9495_v63  ;;  %v1173_v53 = vrot.slane %v9393_v33, %v9495_v63 }
  0x43   :  { %8258 = vmatprep.mubr.msk.f32.mxu0 %vm125_vm1, %v111_v52 }
  0x46   :  { %8259 = vmatmul.mubr.msk.f32.gmra.mrb[26].mxu0 %vm125_vm1, %v112_v54  ;;  %901 = vbcast.lane.b32.xlu1 %v899_v58, 256 }
  0x47   :  { %8261 = vmatprep.mubr.msk.f32.mxu0 %vm125_vm1, %v113_v55  ;;  %v9590_v55 = vsub.f32 1.0, %v9417_v41 }
  0x49   :  { %v976_v36 = vrot.slane %v9590_v55, %v9315_v8  ;;  %v998_v10 = vrot.slane %v9590_v55, %v9341_v16 }
  0x4a   :  { %8262 = vmatmul.mubr.msk.f32.gmra.mrb[28].mxu0 %vm125_vm1, %v114_v56  ;;  %1109 = vbcast.lane.b32.xlu1 %v1107_v61, 256  ;;  %v602_v56 = vrot.slane %v9487_v60, %v9388_v30 }
  0x4b   :  { %8264 = vmatprep.mubr.msk.f32.mxu0 %vm125_vm1, %v115_v57 }
  0x4e   :  { %8265 = vmatmul.mubr.msk.f32.gmra.mrb[30].mxu0 %vm125_vm1, %v116_v59  ;;  %452 = vadd.xlane.f32.xlu0 %v451_v62  ;;  %v1184_v59 = vrot.slane %v9417_v41, %v9315_v8  ;;  %v613_v62 = vrot.slane %v9487_v60, %v9450_v50  ;;  %v1009_v60 = vrot.slane %v9590_v55, %v9364_v23 }
  0x4f   :  { %905 = vbcast.lane.b32.xlu1 %v899_v58, 264  ;;  %v1031_v23 = vrot.slane %v9590_v55, %v9388_v30 }
  0x53   :  { %1113 = vbcast.lane.b32.xlu1 %v1107_v61, 264 }
  0x57   :  { %542 = vbcast.lane.b32.xlu1 %v536_v0, 264 }
  0x5b   :  { %912 = vbcast.lane.b32.xlu1 %v910_v1, 256 }
  0x5f   :  { %1120 = vbcast.lane.b32.xlu1 %v1118_v3, 256 }
  0x63   :  { %916 = vbcast.lane.b32.xlu1 %v910_v1, 264  ;;  %v987_v1 = vrot.slane %v9590_v55, %v9318_v9  ;;  %v1206_v9 = vrot.slane %v9417_v41, %v9341_v16  ;;  %v1020_v16 = vrot.slane %v9590_v55, %v9371_v25  ;;  %v1042_v25 = vrot.slane %v9590_v55, %v9450_v50 }
  0x64   :  { %538 = vbcast.lane.b32.xlu0 %v536_v0, 256 }
  0x67   :  { %1124 = vbcast.lane.b32.xlu1 %v1118_v3, 264 }
  0x68   :  { %549 = vbcast.lane.b32.xlu0 %v547_v11, 256 }
  0x6b   :  { %553 = vbcast.lane.b32.xlu1 %v547_v11, 264 }
  0x6c   :  { %923 = vbcast.lane.b32.xlu0 %v921_v13, 256 }
  0x6f   :  { %1131 = vbcast.lane.b32.xlu1 %v1129_v20, 256 }
  0x70   :  { %927 = vbcast.lane.b32.xlu0 %v921_v13, 264 }
  0x73   :  { %1135 = vbcast.lane.b32.xlu1 %v1129_v20, 264 }
  0x74   :  { %560 = vbcast.lane.b32.xlu0 %v558_v27, 256 }
  0x77   :  { %564 = vbcast.lane.b32.xlu1 %v558_v27, 264 }
  0x78   :  { %934 = vbcast.lane.b32.xlu0 %v932_v28, 256 }
  0x7b   :  { %1142 = vbcast.lane.b32.xlu1 %v1140_v29, 256 }
  0x7c   :  { %938 = vbcast.lane.b32.xlu0 %v932_v28, 264 }
  0x7f   :  { %1146 = vbcast.lane.b32.xlu1 %v1140_v29, 264  ;;  %v1239_v29 = vrot.slane %v9417_v41, %v9388_v30 }
  0x80   :  { %571 = vbcast.lane.b32.xlu0 %v569_v35, 256  ;;  %v9559_v38 = vpop.permute.xlu1 %465 }
  0x83   :  { %575 = vbcast.lane.b32.xlu1 %v569_v35, 264 }
  0x84   :  { %945 = vbcast.lane.b32.xlu0 %v943_v37, 256  ;;  %v9563_v40 = vpop.permute.xlu1 %472 }
  0x87   :  { %1153 = vbcast.lane.b32.xlu1 %v1151_v39, 256 }
  0x88   :  { %949 = vbcast.lane.b32.xlu0 %v943_v37, 264  ;;  %v9567_v43 = vpop.permute.xlu1 %476  ;;  %v9665_v37 = vld [vmem:[%s12198_s6] ss:$0 sm:$0xff]  ;;  %s12227_s6 = sld [smem:[#allocation47_spill]] }
  0x8b   :  { %1157 = vbcast.lane.b32.xlu1 %v1151_v39, 264 }
  0x8c   :  { %582 = vbcast.lane.b32.xlu0 %v580_v42, 256  ;;  %v9571_v45 = vpop.permute.xlu1 %483 }
  0x8f   :  { %586 = vbcast.lane.b32.xlu1 %v580_v42, 264 }
  0x90   :  { %956 = vbcast.lane.b32.xlu0 %v954_v44, 256  ;;  %v9575_v47 = vpop.permute.xlu1 %487 }
  0x93   :  { %1164 = vbcast.lane.b32.xlu1 %v1162_v46, 256 }
  0x94   :  { %960 = vbcast.lane.b32.xlu0 %v954_v44, 264  ;;  %v9579_v49 = vpop.permute.xlu1 %494 }
  0x97   :  { %1168 = vbcast.lane.b32.xlu1 %v1162_v46, 264  ;;  %v1250_v46 = vrot.slane %v9417_v41, %v9450_v50 }
  0x98   :  { %593 = vbcast.lane.b32.xlu0 %v591_v48, 256  ;;  %v9583_v52 = vpop.permute.xlu1 %498 }
  0x9a   :  { %v450_v11 = vpop.xlane.xlu0 %449 }
  0x9b   :  { %597 = vbcast.lane.b32.xlu1 %v591_v48, 264  ;;  %v454_v34 = vmax.f32 %v450_v11, 1.0 }
  0x9c   :  { %967 = vbcast.lane.b32.xlu0 %v965_v51, 256  ;;  %v9587_v54 = vpop.permute.xlu1 %509 }
  0x9d   :  { %v810_v48 = vrot.slane %v454_v34, 1  ;;  %9064 = vrcp.f32 %v454_v34 }
  0x9e   :  { %v462_v14 = vpop.permute.xlu0 %461 }
  0x9f   :  { %1175 = vbcast.lane.b32.xlu1 %v1173_v53, 256  ;;  %9066 = vrcp.f32 %v810_v48  ;;  %v1261_v48 = vrot.slane %v9417_v41, %v9495_v63 }
  0xa0   :  { %971 = vbcast.lane.b32.xlu0 %v965_v51, 264  ;;  %v9594_v57 = vpop.permute.xlu1 %520 }
  0xa2   :  { %v9634_v18 = vpop.permute.xlu0 %505 }
  0xa3   :  { %1179 = vbcast.lane.b32.xlu1 %v1173_v53, 264 }
  0xa4   :  { %604 = vbcast.lane.b32.xlu0 %v602_v56, 256  ;;  %v9598_v58 = vpop.permute.xlu1 %1098 }
  0xa6   :  { %v9642_v21 = vpop.permute.xlu0 %516 }
  0xa7   :  { %608 = vbcast.lane.b32.xlu1 %v602_v56, 264  ;;  %v811_v56 = vrot.slane %v454_v34, 2 }
  0xa8   :  { %978 = vbcast.lane.b32.xlu0 %v976_v36, 256  ;;  %v9602_v61 = vpop.permute.xlu1 %894 }
  0xa9   :  { %9068 = vrcp.f32 %v811_v56 }
  0xaa   :  { %v9650_v27 = vpop.permute.xlu0 %890 }
  0xab   :  { %1186 = vbcast.lane.b32.xlu1 %v1184_v59, 256 }
  0xac   :  { %982 = vbcast.lane.b32.xlu0 %v976_v36, 264  ;;  %v9606_v0 = vpop.permute.xlu1 %1102 }
  0xaf   :  { %1190 = vbcast.lane.b32.xlu1 %v1184_v59, 264 }
  0xb0   :  { %615 = vbcast.lane.b32.xlu0 %v613_v62, 256  ;;  %v9610_v3 = vpop.permute.xlu1 %527 }
  0xb3   :  { %619 = vbcast.lane.b32.xlu1 %v613_v62, 264  ;;  %v812_v62 = vrot.slane %v454_v34, 3 }
  0xb4   :  { %989 = vbcast.lane.b32.xlu0 %v987_v1, 256  ;;  %v9614_v5 = vpop.permute.xlu1 %531 }
  0xb5   :  { %9070 = vrcp.f32 %v812_v62 }
  0xb7   :  { %1197 = vbcast.lane.b32.xlu1 %v1195_v4, 256 }
  0xb8   :  { %993 = vbcast.lane.b32.xlu0 %v987_v1, 264  ;;  %v9618_v2 = vpop.permute.xlu1 %901  ;;  %v1053_v1 = vrot.slane %v9590_v55, %v9495_v63  ;;  %v815_v55 = vrot.slane %v454_v34, 6 }
  0xbb   :  { %1201 = vbcast.lane.b32.xlu1 %v1195_v4, 264 }
  0xbc   :  { %626 = vbcast.lane.b32.xlu0 %v624_v6, 256  ;;  %v9622_v12 = vpop.permute.xlu1 %1109 }
  0xbf   :  { %630 = vbcast.lane.b32.xlu1 %v624_v6, 264  ;;  %v813_v6 = vrot.slane %v454_v34, 4 }
  0xc0   :  { %1000 = vbcast.lane.b32.xlu0 %v998_v10, 256 }
  0xc1   :  { %v9626_v13 = vpop.permute.xlu1 %905  ;;  %9072 = vrcp.f32 %v813_v6 }
  0xc3   :  { %1208 = vbcast.lane.b32.xlu1 %v1206_v9, 256 }
  0xc4   :  { %1004 = vbcast.lane.b32.xlu0 %v998_v10, 264 }
  0xc5   :  { %v9630_v15 = vpop.permute.xlu1 %1113 }
  0xc7   :  { %1212 = vbcast.lane.b32.xlu1 %v1206_v9, 264 }
  0xc8   :  { %1011 = vbcast.lane.b32.xlu0 %v1009_v60, 256 }
  0xc9   :  { %v9636_v19 = vpop.permute.xlu1 %542 }
  0xcb   :  { %1219 = vbcast.lane.b32.xlu1 %v1217_v17, 256 }
  0xcc   :  { %1015 = vbcast.lane.b32.xlu0 %v1009_v60, 264 }
  0xcd   :  { %v9640_v20 = vpop.permute.xlu1 %912 }
  0xcf   :  { %1223 = vbcast.lane.b32.xlu1 %v1217_v17, 264 }
  0xd0   :  { %1022 = vbcast.lane.b32.xlu0 %v1020_v16, 256 }
  0xd1   :  { %v9646_v26 = vpop.permute.xlu1 %1120 }
  0xd3   :  { %1230 = vbcast.lane.b32.xlu1 %v1228_v24, 256 }
  0xd4   :  { %1026 = vbcast.lane.b32.xlu0 %v1020_v16, 264 }
  0xd5   :  { %v9652_v28 = vpop.permute.xlu1 %916 }
  0xd7   :  { %1234 = vbcast.lane.b32.xlu1 %v1228_v24, 264 }
  0xd8   :  { %1033 = vbcast.lane.b32.xlu0 %v1031_v23, 256 }
  0xd9   :  { %v9656_v32 = vpop.permute.xlu1 %1124 }
  0xdb   :  { %v453_v31 = vpop.xlane.xlu0 %452  ;;  %1241 = vbcast.lane.b32.xlu1 %v1239_v29, 256 }
  0xdc   :  { %1037 = vbcast.lane.b32.xlu0 %v1031_v23, 264 }
  0xdd   :  { %v9667_v39 = vpop.permute.xlu1 %553 }
  0xdf   :  { %v9660_v35 = vpop.permute.xlu0 %538  ;;  %1245 = vbcast.lane.b32.xlu1 %v1239_v29, 264  ;;  %v816_v29 = vrot.slane %v454_v34, 7 }
  0xe0   :  { %1044 = vbcast.lane.b32.xlu0 %v1042_v25, 256 }
  0xe1   :  { %v9678_v59 = vpop.permute.xlu1 %1131 }
  0xe3   :  { %v9675_v53 = vpop.permute.xlu0 %549  ;;  %1252 = vbcast.lane.b32.xlu1 %v1250_v46, 256 }
  0xe4   :  { %1048 = vbcast.lane.b32.xlu0 %v1042_v25, 264  ;;  %v9695_v25 = vmax.f32 %v453_v31, 1.0 }
  0xe5   :  { %v8221_v30 = vpop.f32.mrb[0].mxu0  ;;  %v9693_v23 = vpop.permute.xlu1 %1135 }
  0xe6   :  { %v294_v42 = vadd.f32 %v8221_v30, %v9665_v37  ;;  %v288_v44 = vpop.f32.mrb[1].mxu0 }
  0xe7   :  { %v9673_v51 = vadd.f32 %v9665_v37, %v288_v44  ;;  %v9689_v16 = vpop.permute.xlu0 %923  ;;  %1256 = vbcast.lane.b32.xlu1 %v1250_v46, 264 }
  0xe8   :  { %v633_v36 = vmul.f32 %v9559_v38, %v294_v42  ;;  %v814_v38 = vrot.slane %v454_v34, 5  ;;  %1055 = vbcast.lane.b32.xlu0 %v1053_v1, 256 }
  0xe9   :  { %v632_v4 = vmul.f32 %v462_v14, %v9673_v51  ;;  %v8224_v50 = vpop.f32.mrb[2].mxu0  ;;  %v9707_v6 = vpop.permute.xlu1 %564 }
  0xea   :  { %v665_v10 = vsel %vm12169_vm0, %v633_v36, 0.0  ;;  %v9685_v11 = vadd.f32 %v8224_v50, %v9665_v37  ;;  %v298_v9 = vpop.f32.mrb[3].mxu0  ;;  %9074 = vrcp.f32 %v814_v38  ;;  %v2245_v38 = vld [vmem:[%s12199_s4] sm:$0xff] }
  0xeb   :  { %v664_v60 = vsel %vm12169_vm0, %v632_v4, 0.0  ;;  %v299_v17 = vadd.f32 %v9665_v37, %v298_v9  ;;  %v9704_v34 = vpop.permute.xlu0 %927  ;;  %9076 = vrcp.f32 %v815_v55  ;;  %1263 = vbcast.lane.b32.xlu1 %v1261_v48, 256 }
  0xec   :  { %v666_v14 = vadd.f32 %v665_v10, %v664_v60  ;;  %v635_v24 = vmul.f32 %v9567_v43, %v9685_v11  ;;  %1059 = vbcast.lane.b32.xlu0 %v1053_v1, 264  ;;  %9078 = vrcp.f32 %v816_v29  ;;  %v9710_v10 = vmul.f32 %v9602_v61, %v294_v42  ;;  %v9065_v61 = vpop.eup %9064 }
  0xed   :  { %v634_v30 = vmul.f32 %v9563_v40, %v299_v17  ;;  %v8227_v44 = vpop.f32.mrb[4].mxu0  ;;  %9080 = vrcp.f32 %v9695_v25  ;;  %v9726_v42 = vmul.f32 %v9650_v27, %v9673_v51  ;;  %v9742_v27 = vmul.f32 %v9626_v13, %v9685_v11 }
  0xee   :  { %v667_v56 = vrot.slane %v666_v14, 4  ;;  %v674_v36 = vsel %vm12169_vm0, %v635_v24, 0.0  ;;  %v314_v4 = vadd.f32 %v8227_v44, %v9665_v37  ;;  %v308_v43 = vpop.f32.mrb[5].mxu0  ;;  %v9745_v51 = vmul.f32 %v9618_v2, %v299_v17 }
  0xef   :  { %v673_v62 = vsel %vm12169_vm0, %v634_v30, 0.0  ;;  %v309_v31 = vadd.f32 %v9665_v37, %v308_v43  ;;  %v9730_v30 = vpop.permute.xlu0 %560  ;;  %1267 = vbcast.lane.b32.xlu1 %v1261_v48, 264 }
  0xf0   :  { %v668_v40 = vadd.f32 %v667_v56, %v666_v14  ;;  %v675_v50 = vadd.f32 %v674_v36, %v673_v62  ;;  %v637_v63 = vmul.f32 %v9575_v47, %v314_v4  ;;  %v9732_v56 = vpop.eup %9066 }
  0xf1   :  { %v636_v46 = vmul.f32 %v9571_v45, %v309_v31  ;;  %v8230_v9 = vpop.f32.mrb[6].mxu0  ;;  %v2246_v45 = vld [vmem:[%s12199_s4 + $0x8] sm:$0xff]  ;;  %v9738_v41 = vpop.eup %9068  ;;  %v9757_v2 = vmul.f32 %v9640_v20, %v309_v31 }
  0xf2   :  { %v669_v60 = vrot.slane %v668_v40, 2  ;;  %v676_v55 = vrot.slane %v675_v50, 4  ;;  %v683_v47 = vsel %vm12169_vm0, %v637_v63, 0.0  ;;  %v9719_v14 = vadd.f32 %v8230_v9, %v9665_v37  ;;  %v318_v1 = vpop.f32.mrb[7].mxu0  ;;  %v9736_v9 = vpop.permute.xlu1 %1142 }
  0xf3   :  { %v682_v24 = vsel %vm12169_vm0, %v636_v46, 0.0  ;;  %v319_v29 = vadd.f32 %v9665_v37, %v318_v1  ;;  %v8809_v44 = vpack.c.bf16 %v2246_v45, %v2245_v38  ;;  %v9748_v46 = vmul.f32 %v9652_v28, %v314_v4  ;;  %v9751_v38 = vpop.eup %9070  ;;  %v935_v4 = vpop.permute.xlu0 %934 }
  0xf4   :  { %v670_v36 = vadd.f32 %v669_v60, %v668_v40  ;;  %v677_v43 = vadd.f32 %v676_v55, %v675_v50  ;;  %v684_v62 = vadd.f32 %v683_v47, %v682_v24  ;;  %v639_v63 = vmul.f32 %v9583_v52, %v9719_v14  ;;  %v9754_v11 = vpop.eup %9072 }
  0xf5   :  { %v638_v40 = vmul.f32 %v9579_v49, %v319_v29  ;;  %v8233_v50 = vpop.f32.mrb[8].mxu0  ;;  %8810 = vmatprep.subr.bf16.mxu0 %v8809_v44  ;;  %v9762_v1 = vpop.eup %9074  ;;  %v9769_v20 = vmul.f32 %v9689_v16, %v319_v29 }
  0xf6   :  { %v671_v52 = vrot.slane %v670_v36, 1  ;;  %v678_v60 = vrot.slane %v677_v43, 2  ;;  %v685_v55 = vrot.slane %v684_v62, 4  ;;  %v692_v47 = vsel %vm12169_vm0, %v639_v63, 0.0  ;;  %v328_v13 = vpop.f32.mrb[9].mxu0  ;;  %8812 = vmatpush3.bf16.msra.mxu0 %v8809_v44  ;;  %v9764_v33 = vpop.permute.xlu1 %1146 }
  0xf7   :  { %v691_v28 = vsel %vm12169_vm0, %v638_v40, 0.0  ;;  %v334_v49 = vadd.f32 %v8233_v50, %v9665_v37  ;;  %v329_v17 = vadd.f32 %v9665_v37, %v328_v13  ;;  %v9766_v44 = vpop.eup %9076  ;;  %v939_v29 = vpop.permute.xlu0 %938 }
  0xf8   :  { %v672_v45 = vadd.f32 %v671_v52, %v670_v36  ;;  %v679_v24 = vadd.f32 %v678_v60, %v677_v43  ;;  %v686_v63 = vadd.f32 %v685_v55, %v684_v62  ;;  %v693_v48 = vadd.f32 %v692_v47, %v691_v28  ;;  %v9775_v22 = vpop.eup %9078 }
  0xf9   :  { %v641_v31 = vmul.f32 %v9587_v54, %v334_v49  ;;  %v640_v40 = vmul.f32 %v9634_v18, %v329_v17  ;;  %v9773_v50 = vmul.f32 %v935_v4, %v329_v17  ;;  %v8236_v13 = vpop.f32.mrb[10].mxu0  ;;  %12200 = vst [vmem:[#allocation7_spill] sm:$0xff] %v9775_v22  ;;  %v9777_v55 = vpop.eup %9080 }
  0xfa   :  { %v841_v36 = vmul.f32 %v9065_v61, %v672_v45  ;;  %v680_v43 = vrot.slane %v679_v24, 1  ;;  %v687_v62 = vrot.slane %v686_v63, 2  ;;  %v694_v52 = vrot.slane %v693_v48, 4  ;;  %v338_v60 = vpop.f32.mrb[11].mxu0  ;;  %12201 = vst [vmem:[#allocation8_spill] sm:$0xff] %v9777_v55  ;;  %v9786_v45 = vpop.permute.xlu1 %575 }
  0xfb   :  { %v701_v47 = vsel %vm12169_vm0, %v641_v31, 0.0  ;;  %v700_v16 = vsel %vm12169_vm0, %v640_v40, 0.0  ;;  %v9782_v54 = vadd.f32 %v8236_v13, %v9665_v37  ;;  %v339_v18 = vadd.f32 %v9665_v37, %v338_v60 }
  0xfc   :  { %v1272_v28 = vrot.slane %v841_v36, %v9315_v8  ;;  %v681_v17 = vadd.f32 %v680_v43, %v679_v24  ;;  %v688_v61 = vadd.f32 %v687_v62, %v686_v63  ;;  %v695_v4 = vadd.f32 %v694_v52, %v693_v48 }
  0xfd   :  { %v702_v7 = vadd.f32 %v701_v47, %v700_v16  ;;  %v643_v55 = vmul.f32 %v9594_v57, %v9782_v54  ;;  %v642_v31 = vmul.f32 %v9642_v21, %v339_v18  ;;  %v9791_v40 = vmul.f32 %v939_v29, %v334_v49  ;;  %v8239_v13 = vpop.f32.mrb[12].mxu0  ;;  %v9798_v57 = vpop.permute.xlu0 %571 }
  0xfe   :  { %v1333_v22 = vmul.f32 %v1272_v28, %v9598_v58  ;;  %v1334_v60 = vmul.f32 %v1272_v28, %v9606_v0  ;;  %v843_v36 = vmul.f32 %v9732_v56, %v681_v17  ;;  %v689_v24 = vrot.slane %v688_v61, 1  ;;  %v348_v63 = vpop.f32.mrb[13].mxu0  ;;  %v9806_v47 = vpop.permute.xlu1 %1153 }
  0xff   :  { %v696_v48 = vrot.slane %v695_v4, 2  ;;  %v703_v43 = vrot.slane %v702_v7, 4  ;;  %v710_v62 = vsel %vm12169_vm0, %v643_v55, 0.0  ;;  %v709_v52 = vsel %vm12169_vm0, %v642_v31, 0.0 }
 0x100   :  { %v9801_v21 = vadd.f32 %v1333_v22, %v9726_v42  ;;  %v9804_v49 = vrot.slane %v843_v36, %v9315_v8  ;;  %v690_v58 = vadd.f32 %v689_v24, %v688_v61  ;;  %v711_v0 = vadd.f32 %v710_v62, %v709_v52 }
 0x101   :  { %v697_v56 = vadd.f32 %v696_v48, %v695_v4  ;;  %v704_v16 = vadd.f32 %v703_v43, %v702_v7  ;;  %v9809_v29 = vadd.f32 %v8239_v13, %v9665_v37  ;;  %v9812_v55 = vadd.f32 %v9665_v37, %v348_v63  ;;  %v8242_v28 = vpop.f32.mrb[14].mxu0  ;;  %v946_v24 = vpop.permute.xlu0 %945 }
 0x102   :  { %12202 = vst [vmem:[#allocation9_spill] sm:$0xff] %v9801_v21  ;;  %v1335_v22 = vmul.f32 %v9804_v49, %v9622_v12  ;;  %v845_v42 = vmul.f32 %v9738_v41, %v690_v58  ;;  %v712_v17 = vrot.slane %v711_v0, 4  ;;  %v9818_v61 = vadd.f32 %v8242_v28, %v9665_v37  ;;  %v358_v31 = vpop.f32.mrb[15].mxu0  ;;  %8293 = vmatprep.mubr.msk.f32.mxu1 %vm12169_vm0, %v9801_v21  ;;  %v9834_v43 = vpop.permute.xlu1 %1157 }
 0x103   :  { %v698_v7 = vrot.slane %v697_v56, 1  ;;  %v705_v4 = vrot.slane %v704_v16, 2  ;;  %v645_v13 = vmul.f32 %v9614_v5, %v9809_v29  ;;  %v644_v36 = vmul.f32 %v9610_v3, %v9812_v55 }
 0x104   :  { %v9827_v12 = vadd.f32 %v1335_v22, %v9745_v51  ;;  %v9830_v41 = vrot.slane %v845_v42, %v9315_v8  ;;  %v713_v63 = vadd.f32 %v712_v17, %v711_v0  ;;  %v647_v48 = vmul.f32 %v9636_v19, %v9818_v61 }
 0x105   :  { %v699_v62 = vadd.f32 %v698_v7, %v697_v56  ;;  %v706_v52 = vadd.f32 %v705_v4, %v704_v16  ;;  %v719_v5 = vsel %vm12169_vm0, %v645_v13, 0.0  ;;  %v718_v58 = vsel %vm12169_vm0, %v644_v36, 0.0  ;;  %v8245_v3 = vpop.f32.mrb[16].mxu0  ;;  %v950_v16 = vpop.permute.xlu0 %949 }
 0x106   :  { %12203 = vst [vmem:[#allocation10_spill] sm:$0xff] %v9827_v12  ;;  %v1337_v51 = vmul.f32 %v9830_v41, %v9646_v26  ;;  %v714_v28 = vrot.slane %v713_v63, 2  ;;  %v720_v22 = vadd.f32 %v719_v5, %v718_v58  ;;  %v728_v42 = vsel %vm12169_vm0, %v647_v48, 0.0  ;;  %v368_v0 = vpop.f32.mrb[17].mxu0  ;;  %v9853_v36 = vpop.permute.xlu1 %586 }
 0x107   :  { %v847_v17 = vmul.f32 %v9751_v38, %v699_v62  ;;  %v707_v19 = vrot.slane %v706_v52, 1  ;;  %v9843_v21 = vadd.f32 %v9665_v37, %v358_v31  ;;  %v9845_v56 = vmul.f32 %v946_v24, %v339_v18 }
 0x108   :  { %v9848_v7 = vadd.f32 %v1337_v51, %v9757_v2  ;;  %v715_v4 = vadd.f32 %v714_v28, %v713_v63  ;;  %v721_v13 = vrot.slane %v720_v22, 4  ;;  %v9851_v26 = vadd.f32 %v1334_v60, %v9710_v10 }
 0x109   :  { %v9856_v48 = vrot.slane %v847_v17, %v9315_v8  ;;  %v708_v38 = vadd.f32 %v707_v19, %v706_v52  ;;  %v646_v31 = vmul.f32 %v9660_v35, %v9843_v21  ;;  %v9861_v18 = vadd.f32 %v8245_v3, %v9665_v37  ;;  %v8248_v24 = vpop.f32.mrb[18].mxu0  ;;  %v9877_v3 = vpop.permute.xlu0 %582 }
 0x10a   :  { %12204 = vst [vmem:[#allocation11_spill] sm:$0xff] %v9848_v7  ;;  %v722_v2 = vadd.f32 %v721_v13, %v720_v22  ;;  %v716_v62 = vrot.slane %v715_v4, 1  ;;  %8294 = vmatmul.mubr.msk.f32.vlgmr.msra.gmra.mrb[4].mxu1 %vm12169_vm0, %v9851_v26  ;;  %v9866_v10 = vadd.f32 %v9665_v37, %v368_v0  ;;  %v1072_v60 = vmul.f32 %v950_v16, %v9782_v54  ;;  %v378_v63 = vpop.f32.mrb[19].mxu0  ;;  %v9881_v0 = vpop.permute.xlu1 %1164 }
 0x10b   :  { %v1339_v52 = vmul.f32 %v9856_v48, %v9678_v59  ;;  %v849_v35 = vmul.f32 %v9754_v11, %v708_v38  ;;  %v727_v5 = vsel %vm12169_vm0, %v646_v31, 0.0  ;;  %v649_v58 = vmul.f32 %v9667_v39, %v9861_v18  ;;  %8296 = vmatprep.mubr.msk.f32.mxu1 %vm12169_vm0, %v9827_v12 }
 0x10c   :  { %v723_v51 = vrot.slane %v722_v2, 2  ;;  %v717_v28 = vadd.f32 %v716_v62, %v715_v4  ;;  %v729_v22 = vadd.f32 %v728_v42, %v727_v5  ;;  %v648_v54 = vmul.f32 %v9675_v53, %v9866_v10 }
 0x10d   :  { %v9884_v59 = vadd.f32 %v1339_v52, %v9769_v20  ;;  %v1288_v11 = vrot.slane %v849_v35, %v9315_v8  ;;  %v737_v39 = vsel %vm12169_vm0, %v649_v58, 0.0  ;;  %v1336_v17 = vmul.f32 %v9804_v49, %v9630_v15  ;;  %v8251_v19 = vpop.f32.mrb[20].mxu0  ;;  %v957_v52 = vpop.permute.xlu0 %956 }
 0x10e   :  { %v724_v16 = vadd.f32 %v723_v51, %v722_v2  ;;  %v851_v4 = vmul.f32 %v9762_v1, %v717_v28  ;;  %v730_v42 = vrot.slane %v729_v22, 4  ;;  %v736_v13 = vsel %vm12169_vm0, %v648_v54, 0.0  ;;  %v388_v53 = vpop.f32.mrb[21].mxu0  ;;  %v1169_v2 = vpop.permute.xlu1 %1168 }
 0x10f   :  { %12205 = vst [vmem:[#allocation12_spill] sm:$0xff] %v9884_v59  ;;  %v1341_v38 = vmul.f32 %v1288_v11, %v9736_v9  ;;  %v1342_v20 = vmul.f32 %v1288_v11, %v9764_v33  ;;  %v738_v31 = vadd.f32 %v737_v39, %v736_v13  ;;  %v9895_v62 = vadd.f32 %v1336_v17, %v9742_v27 }
 0x110   :  { %v1292_v35 = vrot.slane %v851_v4, %v9315_v8  ;;  %v731_v15 = vadd.f32 %v730_v42, %v729_v22  ;;  %v9899_v49 = vadd.f32 %v8248_v24, %v9665_v37  ;;  %v9902_v1 = vadd.f32 %v9665_v37, %v378_v63 }
 0x111   :  { %12206 = vst [vmem:[#allocation13_spill] sm:$0xff] %v9895_v62  ;;  %v9905_v5 = vadd.f32 %v1341_v38, %v9773_v50  ;;  %v9908_v33 = vadd.f32 %v1342_v20, %v9791_v40  ;;  %v739_v9 = vrot.slane %v738_v31, 4  ;;  %8297 = vmatmul.mubr.msk.f32.gmra.mrb[6].mxu1 %vm12169_vm0, %v9895_v62  ;;  %v1338_v27 = vmul.f32 %v9830_v41, %v9656_v32  ;;  %v8254_v58 = vpop.f32.mrb[22].mxu0  ;;  %v961_v41 = vpop.permute.xlu0 %960 }
 0x112   :  { %v1343_v24 = vmul.f32 %v1292_v35, %v9806_v47  ;;  %v732_v51 = vrot.slane %v731_v15, 2  ;;  %v1344_v63 = vmul.f32 %v1292_v35, %v9834_v43  ;;  %v651_v50 = vmul.f32 %v9707_v6, %v9899_v49  ;;  %8299 = vmatprep.mubr.msk.f32.mxu1 %vm12169_vm0, %v9848_v7  ;;  %v398_v40 = vpop.f32.mrb[23].mxu0  ;;  %v598_v39 = vpop.permute.xlu1 %597 }
 0x113   :  { %12207 = vst [vmem:[#allocation14_spill] sm:$0xff] %v9905_v5  ;;  %12208 = vst [vmem:[#allocation15_spill] sm:$0xff] %v9908_v33  ;;  %v740_v28 = vadd.f32 %v739_v9, %v738_v31  ;;  %v650_v22 = vmul.f32 %v9730_v30, %v9902_v1  ;;  %v9923_v54 = vadd.f32 %v1338_v27, %v9748_v46  ;;  %v725_v32 = vrot.slane %v724_v16, 1 }
 0x114   :  { %v1068_v47 = vmul.f32 %v9704_v34, %v9719_v14  ;;  %v9928_v43 = vadd.f32 %v1343_v24, %v9845_v56  ;;  %v9930_v6 = vadd.f32 %v1344_v63, %v1072_v60  ;;  %v746_v11 = vsel %vm12169_vm0, %v651_v50, 0.0 }
 0x115   :  { %12209 = vst [vmem:[#allocation16_spill] sm:$0xff] %v9923_v54  ;;  %v733_v17 = vadd.f32 %v732_v51, %v731_v15  ;;  %v745_v4 = vsel %vm12169_vm0, %v650_v22, 0.0  ;;  %8300 = vmatmul.mubr.msk.f32.gmra.mrb[8].mxu1 %vm12169_vm0, %v9923_v54  ;;  %v726_v30 = vadd.f32 %v725_v32, %v724_v16  ;;  %v9937_v46 = vadd.f32 %v8251_v19, %v9665_v37  ;;  %v8257_v42 = vpop.f32.mrb[24].mxu0  ;;  %v594_v31 = vpop.permute.xlu0 %593 }
 0x116   :  { %12210 = vst [vmem:[#allocation17_spill] sm:$0xff] %v9928_v43  ;;  %12211 = vst [vmem:[#allocation18_spill] sm:$0xff] %v9930_v6  ;;  %v741_v34 = vrot.slane %v740_v28, 2  ;;  %v747_v14 = vadd.f32 %v746_v11, %v745_v4  ;;  %v9940_v56 = vadd.f32 %v9665_v37, %v388_v53  ;;  %8302 = vmatprep.mubr.msk.f32.mxu1 %vm12169_vm0, %v9884_v59  ;;  %v408_v13 = vpop.f32.mrb[25].mxu0 }
 0x117   :  { %v1340_v60 = vmul.f32 %v9856_v48, %v9693_v23  ;;  %v853_v38 = vmul.f32 %v9766_v44, %v726_v30  ;;  %v653_v16 = vmul.f32 %v9786_v45, %v9937_v46  ;;  %v1073_v19 = vmul.f32 %v957_v52, %v9812_v55  ;;  %v9960_v48 = vpop.permute.xlu1 %1175 }
 0x118   :  { %v9951_v20 = vadd.f32 %v8254_v58, %v9665_v37  ;;  %v748_v53 = vrot.slane %v747_v14, 4  ;;  %v652_v35 = vmul.f32 %v9798_v57, %v9940_v56  ;;  %v9958_v23 = vadd.f32 %v9665_v37, %v398_v40 }
 0x119   :  { %v9955_v15 = vadd.f32 %v1340_v60, %v1068_v47  ;;  %v1296_v44 = vrot.slane %v853_v38, %v9315_v8  ;;  %v755_v45 = vsel %vm12169_vm0, %v653_v16, 0.0  ;;  %v1074_v52 = vmul.f32 %v961_v41, %v9809_v29  ;;  %v8260_v9 = vpop.f32.mrb[26].mxu0  ;;  %v968_v40 = vpop.permute.xlu0 %967 }
 0x11a   :  { %v655_v55 = vmul.f32 %v9853_v36, %v9951_v20  ;;  %v749_v27 = vadd.f32 %v748_v53, %v747_v14  ;;  %v754_v57 = vsel %vm12169_vm0, %v652_v35, 0.0  ;;  %v654_v58 = vmul.f32 %v9877_v3, %v9958_v23  ;;  %v418_v51 = vpop.f32.mrb[27].mxu0 }
 0x11b   :  { %12212 = vst [vmem:[#allocation19_spill] sm:$0xff] %v9955_v15  ;;  %8303 = vmatmul.mubr.msk.f32.gmra.mrb[10].mxu1 %vm12169_vm0, %v9955_v15  ;;  %v9973_v24 = vadd.f32 %v8257_v42, %v9665_v37  ;;  %v1345_v63 = vmul.f32 %v1296_v44, %v9881_v0  ;;  %v756_v50 = vadd.f32 %v755_v45, %v754_v57  ;;  %v1180_v41 = vpop.permute.xlu1 %1179  ;;  %v734_v14 = vrot.slane %v733_v17, 1 }
 0x11c   :  { %v1346_v36 = vmul.f32 %v1296_v44, %v1169_v2  ;;  %v764_v29 = vsel %vm12169_vm0, %v655_v55, 0.0  ;;  %8305 = vmatprep.mubr.msk.f32.mxu1 %vm12169_vm0, %v9905_v5  ;;  %v763_v22 = vsel %vm12169_vm0, %v654_v58, 0.0  ;;  %v9982_v3 = vadd.f32 %v9665_v37, %v408_v13 }
 0x11d   :  { %v657_v32 = vmul.f32 %v598_v39, %v9973_v24  ;;  %v750_v47 = vrot.slane %v749_v27, 2  ;;  %v9984_v11 = vadd.f32 %v1345_v63, %v1073_v19  ;;  %v9986_v0 = vadd.f32 %v764_v29, %v763_v22  ;;  %v8263_v4 = vpop.f32.mrb[28].mxu0  ;;  %v972_v13 = vpop.permute.xlu0 %971 }
 0x11e   :  { %v9988_v2 = vadd.f32 %v1346_v36, %v1074_v52  ;;  %v742_v30 = vadd.f32 %v741_v34, %v740_v28  ;;  %v656_v39 = vmul.f32 %v594_v31, %v9982_v3  ;;  %v428_v60 = vpop.f32.mrb[29].mxu0  ;;  %v9997_v38 = vadd.f32 %v8260_v9, %v9665_v37  ;;  %v12215_v52 = vld [vmem:[#allocation7_spill] sm:$0xff] }
 0x11f   :  { %12213 = vst [vmem:[#allocation20_spill] sm:$0xff] %v9984_v11  ;;  %8306 = vmatmul.mubr.msk.f32.gmra.mrb[12].mxu1 %vm12169_vm0, %v9908_v33  ;;  %v773_v42 = vsel %vm12169_vm0, %v657_v32, 0.0  ;;  %v817_v16 = vrot.slane %v9695_v25, 1  ;;  %v735_v34 = vadd.f32 %v734_v14, %v733_v17  ;;  %v609_v19 = vpop.permute.xlu1 %608  ;;  %v10002_v53 = vadd.f32 %v9665_v37, %v418_v51 }
 0x120   :  { %12214 = vst [vmem:[#allocation21_spill] sm:$0xff] %v9988_v2  ;;  %8308 = vmatprep.mubr.msk.f32.mxu1 %vm12169_vm0, %v9928_v43  ;;  %v772_v28 = vsel %vm12169_vm0, %v656_v39, 0.0  ;;  %v751_v35 = vadd.f32 %v750_v47, %v749_v27  ;;  %v757_v31 = vrot.slane %v756_v50, 4  ;;  %v659_v45 = vmul.f32 %v609_v19, %v9997_v38 }
 0x121   :  { %v10004_v44 = vadd.f32 %v773_v42, %v772_v28  ;;  %v8266_v55 = vpop.f32.mrb[30].mxu0  ;;  %v855_v9 = vmul.f32 %v12215_v52, %v735_v34  ;;  %v743_v57 = vrot.slane %v742_v30, 1  ;;  %v10011_v58 = vadd.f32 %v8263_v4, %v9665_v37  ;;  %v605_v36 = vpop.permute.xlu0 %604 }
 0x122   :  { %v10014_v17 = vadd.f32 %v9665_v37, %v428_v60  ;;  %v438_v51 = vpop.f32.mrb[31].mxu0  ;;  %v1075_v27 = vmul.f32 %v968_v40, %v9843_v21  ;;  %v1076_v63 = vmul.f32 %v972_v13, %v9818_v61  ;;  %9082 = vrcp.f32 %v817_v16  ;;  %v12216_v13 = vld [vmem:[#allocation8_spill] sm:$0xff] }
 0x123   :  { %8309 = vmatmul.mubr.msk.f32.gmra.mrb[14].mxu1 %vm12169_vm0, %v9930_v6  ;;  %v1300_v29 = vrot.slane %v855_v9, %v9315_v8  ;;  %v782_v22 = vsel %vm12169_vm0, %v659_v45, 0.0  ;;  %v658_v32 = vmul.f32 %v605_v36, %v10002_v53  ;;  %v1187_v47 = vpop.permute.xlu1 %1186  ;;  %v744_v4 = vadd.f32 %v743_v57, %v742_v30  ;;  %v2247_v30 = vld [vmem:[%s12199_s4 + $0x10] sm:$0xff] }
 0x124   :  { %8311 = vmatprep.mubr.msk.f32.mxu1 %vm12169_vm0, %v9984_v11  ;;  %v758_v42 = vadd.f32 %v757_v31, %v756_v50  ;;  %v752_v39 = vrot.slane %v751_v35, 1  ;;  %v10024_v14 = vadd.f32 %v8266_v55, %v9665_v37  ;;  %v10027_v60 = vadd.f32 %v9665_v37, %v438_v51  ;;  %v2248_v37 = vld [vmem:[%s12199_s4 + $0x18] sm:$0xff] }
 0x125   :  { %v1347_v21 = vmul.f32 %v1300_v29, %v9960_v48  ;;  %v1348_v61 = vmul.f32 %v1300_v29, %v1180_v41  ;;  %v781_v40 = vsel %vm12169_vm0, %v658_v32, 0.0  ;;  %v857_v16 = vmul.f32 %v12216_v13, %v744_v4  ;;  %v979_v50 = vpop.permute.xlu0 %978 }
 0x126   :  { %v10034_v28 = vadd.f32 %v782_v22, %v781_v40  ;;  %v1077_v19 = vmul.f32 %v979_v50, %v9866_v10  ;;  %v766_v45 = vrot.slane %v9986_v0, 4  ;;  %v759_v55 = vrot.slane %v758_v42, 2 }
 0x127   :  { %8312 = vmatmul.mubr.msk.f32.gmra.mrb[16].mxu1 %vm12169_vm0, %v9988_v2  ;;  %v10042_v48 = vadd.f32 %v1347_v21, %v1075_v27  ;;  %v10044_v34 = vadd.f32 %v1348_v61, %v1076_v63  ;;  %v1304_v41 = vrot.slane %v857_v16, %v9315_v8  ;;  %v1191_v31 = vpop.permute.xlu1 %1190  ;;  %v753_v9 = vadd.f32 %v752_v39, %v751_v35 }
 0x128   :  { %v8813_v57 = vpack.c.bf16 %v2248_v37, %v2247_v30  ;;  %v818_v27 = vrot.slane %v9695_v25, 2  ;;  %v767_v35 = vadd.f32 %v766_v45, %v9986_v0 }
 0x129   :  { %12217 = vst [vmem:[#allocation7_spill] sm:$0xff] %v10042_v48  ;;  %12218 = vst [vmem:[#allocation8_spill] sm:$0xff] %v10044_v34  ;;  %8314 = vmatprep.mubr.msk.f32.mxu1 %vm12169_vm0, %v10042_v48  ;;  %v1349_v52 = vmul.f32 %v1304_v41, %v1187_v47  ;;  %v983_v51 = vpop.permute.xlu0 %982  ;;  %v1350_v36 = vmul.f32 %v1304_v41, %v1191_v31  ;;  %v760_v47 = vadd.f32 %v759_v55, %v758_v42 }
 0x12a   :  { %v1078_v10 = vmul.f32 %v983_v51, %v9861_v18  ;;  %8814 = vmatprep.subr.bf16.mxu0 %v8813_v57  ;;  %9084 = vrcp.f32 %v818_v27  ;;  %v775_v42 = vrot.slane %v10004_v44, 4  ;;  %v768_v13 = vrot.slane %v767_v35, 2 }
 0x12b   :  { %8315 = vmatmul.mubr.msk.f32.gmra.mrb[18].mxu1 %vm12169_vm0, %v10044_v34  ;;  %v10054_v63 = vadd.f32 %v1349_v52, %v1077_v19  ;;  %v620_v29 = vpop.permute.xlu1 %619  ;;  %8816 = vmatpush3.bf16.msra.mxu0 %v8813_v57  ;;  %v761_v50 = vrot.slane %v760_v47, 1  ;;  %v819_v41 = vrot.slane %v9695_v25, 3 }
 0x12c   :  { %v9083_v22 = vpop.eup %9082  ;;  %v661_v32 = vmul.f32 %v620_v29, %v10011_v58  ;;  %v10059_v4 = vadd.f32 %v1350_v36, %v1078_v10  ;;  %v776_v55 = vadd.f32 %v775_v42, %v10004_v44  ;;  %v769_v52 = vadd.f32 %v768_v13, %v767_v35 }
 0x12d   :  { %12219 = vst [vmem:[#allocation22_spill] sm:$0xff] %v10054_v63  ;;  %8317 = vmatprep.mubr.msk.f32.mxu1 %vm12169_vm0, %v10054_v63  ;;  %v859_v39 = vmul.f32 %v9083_v22, %v753_v9  ;;  %v616_v21 = vpop.permute.xlu0 %615  ;;  %v762_v57 = vadd.f32 %v761_v50, %v760_v47  ;;  %9086 = vrcp.f32 %v819_v41  ;;  %v784_v44 = vrot.slane %v10034_v28, 4 }
 0x12e   :  { %12220 = vst [vmem:[#allocation23_spill] sm:$0xff] %v10059_v4  ;;  %v791_v61 = vsel %vm12169_vm0, %v661_v32, 0.0  ;;  %v660_v18 = vmul.f32 %v616_v21, %v10014_v17  ;;  %v777_v22 = vrot.slane %v776_v55, 2  ;;  %v820_v32 = vrot.slane %v9695_v25, 4 }
 0x12f   :  { %v1198_v40 = vpop.permute.xlu1 %1197  ;;  %8318 = vmatmul.mubr.msk.f32.gmra.mrb[20].mxu1 %vm12169_vm0, %v10059_v4  ;;  %v1308_v16 = vrot.slane %v859_v39, %v9315_v8  ;;  %v770_v39 = vrot.slane %v769_v52, 1  ;;  %v785_v42 = vadd.f32 %v784_v44, %v10034_v28  ;;  %v821_v28 = vrot.slane %v9695_v25, 5  ;;  %v12239_v4 = vld [vmem:[#allocation4_spill] sm:$0xff] }
 0x130   :  { %v790_v0 = vsel %vm12169_vm0, %v660_v18, 0.0  ;;  %9088 = vrcp.f32 %v820_v32  ;;  %v2709_v63 = vadd.s32 4294967288, %v12239_v4 }
 0x131   :  { %v792_v30 = vadd.f32 %v791_v61, %v790_v0  ;;  %v990_v37 = vpop.permute.xlu0 %989  ;;  %v1351_v19 = vmul.f32 %v1308_v16, %v1198_v40  ;;  %v778_v40 = vadd.f32 %v777_v22, %v776_v55  ;;  %9090 = vrcp.f32 %v821_v28 }
 0x132   :  { %v1079_v31 = vmul.f32 %v990_v37, %v9902_v1 }
 0x133   :  { %v1202_v45 = vpop.permute.xlu1 %1201 }
 0x134   :  { %v10073_v9 = vadd.f32 %v1351_v19, %v1079_v31  ;;  %v1352_v27 = vmul.f32 %v1308_v16, %v1202_v45  ;;  %v9085_v29 = vpop.eup %9084  ;;  %v771_v16 = vadd.f32 %v770_v39, %v769_v52 }
 0x135   :  { %v994_v51 = vpop.permute.xlu0 %993  ;;  %v861_v47 = vmul.f32 %v9085_v29, %v762_v57  ;;  %v779_v57 = vrot.slane %v778_v40, 1 }
 0x136   :  { %12221 = vst [vmem:[#allocation24_spill] sm:$0xff] %v10073_v9  ;;  %v1080_v36 = vmul.f32 %v994_v51, %v9899_v49  ;;  %8320 = vmatprep.mubr.msk.f32.mxu1 %vm12169_vm0, %v10073_v9  ;;  %v786_v51 = vrot.slane %v785_v42, 2 }
 0x137   :  { %v631_v10 = vpop.permute.xlu1 %630  ;;  %v1312_v0 = vrot.slane %v861_v47, %v9315_v8  ;;  %v9087_v45 = vpop.eup %9086 }
 0x138   :  { %v663_v1 = vmul.f32 %v631_v10, %v10024_v14  ;;  %v10081_v35 = vadd.f32 %v1352_v27, %v1080_v36  ;;  %v793_v27 = vrot.slane %v792_v30, 4  ;;  %v863_v55 = vmul.f32 %v9087_v45, %v771_v16 }
 0x139   :  { %v627_v21 = vpop.permute.xlu0 %626  ;;  %v787_v32 = vadd.f32 %v786_v51, %v785_v42 }
 0x13a   :  { %12222 = vst [vmem:[#allocation25_spill] sm:$0xff] %v10081_v35  ;;  %v800_v61 = vsel %vm12169_vm0, %v663_v1, 0.0  ;;  %v662_v49 = vmul.f32 %v627_v21, %v10027_v60  ;;  %8321 = vmatmul.mubr.msk.f32.gmra.mrb[22].mxu1 %vm12169_vm0, %v10081_v35  ;;  %v780_v1 = vadd.f32 %v779_v57, %v778_v40  ;;  %v794_v44 = vadd.f32 %v793_v27, %v792_v30 }
 0x13b   :  { %v1209_v18 = vpop.permute.xlu1 %1208  ;;  %v1316_v39 = vrot.slane %v863_v55, %v9315_v8 }
 0x13c   :  { %v799_v13 = vsel %vm12169_vm0, %v662_v49, 0.0  ;;  %v1353_v41 = vmul.f32 %v1312_v0, %v1209_v18  ;;  %v795_v30 = vrot.slane %v794_v44, 2 }
 0x13d   :  { %v801_v50 = vadd.f32 %v800_v61, %v799_v13  ;;  %v1001_v37 = vpop.permute.xlu0 %1000  ;;  %v9089_v61 = vpop.eup %9088 }
 0x13e   :  { %v1081_v19 = vmul.f32 %v1001_v37, %v9940_v56  ;;  %v10097_v56 = vpop.f32.mrb[0].mxu1  ;;  %v865_v40 = vmul.f32 %v9089_v61, %v780_v1 }
 0x13f   :  { %v1213_v31 = vpop.permute.xlu1 %1212  ;;  %v10102_v21 = vpop.f32.mrb[1].mxu1  ;;  %v802_v16 = vrot.slane %v801_v50, 4 }
 0x140   :  { %v10091_v36 = vadd.f32 %v1353_v41, %v1081_v19  ;;  %v1354_v29 = vmul.f32 %v1312_v0, %v1213_v31  ;;  %v9152_v0 = vmov 1966171168   ;;  %v788_v41 = vrot.slane %v787_v32, 1  ;;  %v10114_v27 = vpop.f32.mrb[2].mxu1 }
 0x141   :  { %v1005_v10 = vpop.permute.xlu0 %1004  ;;  %v1909_v42 = vunpack.c.l.s4 %v9152_v0  ;;  %v822_v31 = vrot.slane %v9695_v25, 6  ;;  %v803_v28 = vadd.f32 %v802_v16, %v801_v50  ;;  %v12228_v50 = vld [vmem:[#allocation2_spill] sm:$0xff] }
 0x142   :  { %12223 = vst [vmem:[#allocation26_spill] sm:$0xff] %v10091_v36  ;;  %v1082_v22 = vmul.f32 %v1005_v10, %v9937_v46  ;;  %8323 = vmatprep.mubr.msk.f32.mxu1 %vm12169_vm0, %v10091_v36  ;;  %v796_v10 = vadd.f32 %v795_v30, %v794_v44  ;;  %v9091_v44 = vpop.eup %9090  ;;  %v823_v30 = vrot.slane %v9695_v25, 7  ;;  %v10531_v2 = vsub.s32 %v12239_v4, %v12228_v50 }
 0x143   :  { %v1220_v52 = vpop.permute.xlu1 %1219  ;;  %v1910_v55 = vunpack.c.0.s8 %v1909_v42  ;;  %9092 = vrcp.f32 %v822_v31  ;;  %v10534_v11 = vsub.s32 %v2709_v63, %v12228_v50 }
 0x144   :  { %v10099_v47 = vadd.f32 %v1354_v29, %v1082_v22  ;;  %v1355_v18 = vmul.f32 %v1316_v39, %v1220_v52  ;;  %v789_v22 = vadd.f32 %v788_v41, %v787_v32  ;;  %v10121_v52 = vld [vmem:[%s12227_s6] ss:$0 sm:$0xff]  ;;  %v797_v0 = vrot.slane %v796_v10, 1 }
 0x145   :  { %v1012_v49 = vpop.permute.xlu0 %1011  ;;  %9094 = vrcp.f32 %v823_v30 }
 0x146   :  { %12224 = vst [vmem:[#allocation27_spill] sm:$0xff] %v10099_v47  ;;  %v1083_v46 = vmul.f32 %v1012_v49, %v9958_v23  ;;  %8324 = vmatmul.mubr.msk.f32.gmra.mrb[24].mxu1 %vm12169_vm0, %v10099_v47  ;;  %v1320_v23 = vrot.slane %v865_v40, %v9315_v8  ;;  %v867_v40 = vmul.f32 %v9091_v44, %v789_v22 }
 0x147   :  { %v1224_v13 = vpop.permute.xlu1 %1223 }
 0x148   :  { %v10107_v37 = vadd.f32 %v1355_v18, %v1083_v46  ;;  %v1356_v45 = vmul.f32 %v1316_v39, %v1224_v13  ;;  %v10127_v18 = vsub.s32 %v1910_v55, %v12228_v50  ;;  %v804_v46 = vrot.slane %v803_v28, 2 }
 0x149   :  { %v1016_v19 = vpop.permute.xlu0 %1015 }
 0x14a   :  { %12225 = vst [vmem:[#allocation28_spill] sm:$0xff] %v10107_v37  ;;  %v1084_v57 = vmul.f32 %v1016_v19, %v9951_v20  ;;  %8326 = vmatprep.mubr.msk.f32.mxu1 %vm12169_vm0, %v10107_v37  ;;  %v1573_v20 = vpop.f32.mrb[3].mxu1  ;;  %12229 = vst [vmem:[#allocation2_spill] sm:$0xff] %v10127_v18  ;;  %v805_v31 = vadd.f32 %v804_v46, %v803_v28 }
 0x14b   :  { %v1231_v51 = vpop.permute.xlu1 %1230  ;;  %v10130_v32 = vadd.f32 %v10121_v52, %v1573_v20 }
 0x14c   :  { %v10116_v29 = vadd.f32 %v1356_v45, %v1084_v57  ;;  %v1357_v39 = vmul.f32 %v1320_v23, %v1231_v51  ;;  %v1324_v57 = vrot.slane %v867_v40, %v9315_v8  ;;  %v798_v51 = vadd.f32 %v797_v0, %v796_v10 }
 0x14d   :  { %v1023_v1 = vpop.permute.xlu0 %1022  ;;  %v1914_v19 = vrot.slane %v10130_v32, %v10127_v18  ;;  %v9093_v20 = vpop.eup %9092  ;;  %v806_v10 = vrot.slane %v805_v31, 1 }
 0x14e   :  { %12226 = vst [vmem:[#allocation29_spill] sm:$0xff] %v10116_v29  ;;  %v1085_v61 = vmul.f32 %v1023_v1, %v9982_v3  ;;  %8327 = vmatmul.mubr.msk.f32.gmra.mrb[26].mxu1 %vm12169_vm0, %v10116_v29 }
 0x14f   :  { %v1235_v49 = vpop.permute.xlu1 %1234  ;;  %v1930_v28 = vrot.slane %v1914_v19, %v10127_v18  ;;  %v1922_v40 = vcombine.high %v1914_v19, %v1914_v19  ;;  %v2250_v19 = vld [vmem:[%s12199_s4 + $0x28] sm:$0xff] }
 0x150   :  { %v10132_v13 = vadd.f32 %v1357_v39, %v1085_v61  ;;  %v1358_v3 = vmul.f32 %v1320_v23, %v1235_v49  ;;  %v869_v39 = vmul.f32 %v9093_v20, %v798_v51 }
 0x151   :  { %v1027_v42 = vpop.permute.xlu0 %1026  ;;  %v2008_v0 = vrot.slane %v1930_v28, %v9315_v8 }
 0x152   :  { %12230 = vst [vmem:[#allocation30_spill] sm:$0xff] %v10132_v13  ;;  %v1086_v16 = vmul.f32 %v1027_v42, %v9973_v24  ;;  %8329 = vmatprep.mubr.msk.f32.mxu1 %vm12169_vm0, %v10132_v13  ;;  %v7626_v24 = vld [vmem:[%s12232_s27] ss:$0 sm:$0xff]  ;;  %v1328_v30 = vrot.slane %v869_v39, %v9315_v8 }
 0x153   :  { %v1242_v41 = vpop.permute.xlu1 %1241  ;;  %v10153_v49 = vadd.f32 %v10097_v56, %v7626_v24 }
 0x154   :  { %v10140_v45 = vadd.f32 %v1358_v3, %v1086_v16  ;;  %v1359_v22 = vmul.f32 %v1324_v57, %v1242_v41  ;;  %v807_v3 = vadd.f32 %v806_v10, %v805_v31  ;;  %v10163_v16 = vadd.f32 %v7626_v24, %v10102_v21  ;;  %v9095_v31 = vpop.eup %9094  ;;  %v2252_v10 = vld [vmem:[%s12199_s4 + $0x38] sm:$0xff] }
 0x155   :  { %v1034_v55 = vpop.permute.xlu0 %1033  ;;  %v10166_v41 = vadd.f32 %v2008_v0, %v10153_v49 }
 0x156   :  { %12231 = vst [vmem:[#allocation31_spill] sm:$0xff] %v10140_v45  ;;  %v1087_v25 = vmul.f32 %v1034_v55, %v10002_v53  ;;  %8330 = vmatmul.mubr.msk.f32.gmra.mrb[28].mxu1 %vm12169_vm0, %v10140_v45  ;;  %v10181_v24 = vadd.f32 %v2008_v0, %v10163_v16 }
 0x157   :  { %v1246_v23 = vpop.permute.xlu1 %1245 }
 0x158   :  { %v10150_v1 = vadd.f32 %v1359_v22, %v1087_v25  ;;  %v1360_v53 = vmul.f32 %v1324_v57, %v1246_v23  ;;  %v1944_v22 = vrot.slane %v1922_v40, %v10127_v18  ;;  %v871_v23 = vmul.f32 %v9095_v31, %v807_v3 }
 0x159   :  { %v1038_v61 = vpop.permute.xlu0 %1037  ;;  %v1907_v40 = vcombine.high %v10130_v32, %v10130_v32  ;;  %v1952_v3 = vcombine.high %v1930_v28, %v1930_v28 }
 0x15a   :  { %12233 = vst [vmem:[#allocation32_spill] sm:$0xff] %v10150_v1  ;;  %v1088_v44 = vmul.f32 %v1038_v61, %v9997_v38  ;;  %8332 = vmatprep.mubr.msk.f32.mxu1 %vm12169_vm0, %v10150_v1  ;;  %v2249_v38 = vld [vmem:[%s12199_s4 + $0x20] sm:$0xff]  ;;  %v2012_v39 = vrot.slane %v1944_v22, %v9315_v8 }
 0x15b   :  { %v1253_v46 = vpop.permute.xlu1 %1252  ;;  %v8817_v21 = vpack.c.bf16 %v2250_v19, %v2249_v38  ;;  %v1332_v38 = vrot.slane %v871_v23, %v9315_v8  ;;  %v2016_v19 = vrot.slane %v1952_v3, %v9315_v8  ;;  %v1921_v28 = vrot.slane %v1907_v40, %v10127_v18 }
 0x15c   :  { %v10159_v42 = vadd.f32 %v1360_v53, %v1088_v44  ;;  %v1361_v57 = vmul.f32 %v1328_v30, %v1253_v46  ;;  %v10196_v0 = vadd.f32 %v2012_v39, %v10153_v49 }
 0x15d   :  { %v1045_v56 = vpop.permute.xlu0 %1044  ;;  %8818 = vmatprep.subr.bf16.mxu0 %v8817_v21  ;;  %v10215_v23 = vadd.f32 %v2016_v19, %v10163_v16 }
 0x15e   :  { %12234 = vst [vmem:[#allocation33_spill] sm:$0xff] %v10159_v42  ;;  %v1089_v51 = vmul.f32 %v1045_v56, %v10014_v17  ;;  %8333 = vmatmul.mubr.msk.f32.gmra.mrb[30].mxu1 %vm12169_vm0, %v10159_v42  ;;  %8820 = vmatpush3.bf16.msra.mxu0 %v8817_v21  ;;  %v2251_v17 = vld [vmem:[%s12199_s4 + $0x30] sm:$0xff]  ;;  %v1954_v21 = vcombine.high %v1944_v22, %v1944_v22 }
 0x15f   :  { %v1257_v55 = vpop.permute.xlu1 %1256  ;;  %v8821_v46 = vpack.c.bf16 %v2252_v10, %v2251_v17  ;;  %v1923_v10 = vcombine.high %v1921_v28, %v1921_v28  ;;  %v1937_v22 = vrot.slane %v1921_v28, %v10127_v18 }
 0x160   :  { %v10178_v25 = vadd.f32 %v1361_v57, %v1089_v51  ;;  %v1362_v61 = vmul.f32 %v1328_v30, %v1257_v55  ;;  %v10202_v30 = vadd.f32 %v2012_v39, %v10163_v16  ;;  %v10210_v55 = vadd.f32 %v2016_v19, %v10153_v49 }
 0x161   :  { %v1049_v20 = vpop.permute.xlu0 %1048  ;;  %8822 = vmatprep.subr.bf16.mxu0 %v8821_v46  ;;  %v2020_v39 = vrot.slane %v1954_v21, %v9315_v8  ;;  %v2024_v40 = vrot.slane %v1937_v22, %v9315_v8  ;;  %v1951_v3 = vrot.slane %v1923_v10, %v10127_v18 }
 0x162   :  { %12235 = vst [vmem:[#allocation34_spill] sm:$0xff] %v10178_v25  ;;  %v1090_v53 = vmul.f32 %v1049_v20, %v10011_v58  ;;  %8335 = vmatprep.mubr.msk.f32.mxu1 %vm12169_vm0, %v10178_v25  ;;  %8824 = vmatpush3.bf16.msra.mxu0 %v8821_v46  ;;  %v1579_v46 = vadd.f32 %v10114_v27, %v10121_v52 }
 0x163   :  { %v1264_v44 = vpop.permute.xlu1 %1263  ;;  %v2028_v52 = vrot.slane %v1951_v3, %v9315_v8 }
 0x164   :  { %v10198_v56 = vadd.f32 %v1362_v61, %v1090_v53  ;;  %v1363_v57 = vmul.f32 %v1332_v38, %v1264_v44  ;;  %v10222_v61 = vadd.f32 %v2020_v39, %v10153_v49  ;;  %v10228_v44 = vadd.f32 %v2020_v39, %v10163_v16 }
 0x165   :  { %v1056_v58 = vpop.permute.xlu0 %1055  ;;  %v1956_v27 = vcombine.high %v1579_v46, %v1579_v46  ;;  %v10248_v19 = vadd.f32 %v2028_v52, %v10153_v49 }
 0x166   :  { %12236 = vst [vmem:[#allocation35_spill] sm:$0xff] %v10198_v56  ;;  %v1091_v51 = vmul.f32 %v1056_v58, %v10027_v60  ;;  %8336 = vmatmul.mubr.msk.f32.gmra.mrb[32].mxu1 %vm12169_vm0, %v10198_v56  ;;  %v10244_v58 = vadd.f32 %v2024_v40, %v10163_v16 }
 0x167   :  { %v1268_v32 = vpop.permute.xlu1 %1267  ;;  %v1970_v28 = vrot.slane %v1956_v27, %v10127_v18 }
 0x168   :  { %v10212_v31 = vadd.f32 %v1363_v57, %v1091_v51  ;;  %v1364_v17 = vmul.f32 %v1332_v38, %v1268_v32  ;;  %v9144_v38 = vld [vmem:[%s12196_s1] sm:$0xff]  ;;  %v1953_v57 = vcombine.high %v1937_v22, %v1937_v22  ;;  %v10251_v51 = vadd.f32 %v2028_v52, %v10163_v16 }
 0x169   :  { %v1060_v20 = vpop.permute.xlu0 %1059  ;;  %v1963_v32 = vrot.slane %v1579_v46, %v10127_v18  ;;  %v1955_v22 = vcombine.high %v1951_v3, %v1951_v3 }
 0x16a   :  { %12237 = vst [vmem:[#allocation36_spill] sm:$0xff] %v10212_v31  ;;  %v1092_v60 = vmul.f32 %v1060_v20, %v10024_v14  ;;  %8338 = vmatprep.mubr.msk.f32.mxu1 %vm12169_vm0, %v10212_v31  ;;  %v10236_v14 = vadd.f32 %v2024_v40, %v10153_v49  ;;  %v2032_v21 = vrot.slane %v1953_v57, %v9315_v8 }
 0x16b   :  { %v1979_v10 = vrot.slane %v1963_v32, %v10127_v18  ;;  %v2036_v27 = vrot.slane %v1955_v22, %v9315_v8 }
 0x16c   :  { %v10225_v53 = vadd.f32 %v1364_v17, %v1092_v60  ;;  %v10257_v20 = vadd.f32 %v2032_v21, %v10153_v49  ;;  %v10260_v39 = vadd.f32 %v2032_v21, %v10163_v16  ;;  %v1971_v17 = vcombine.high %v1963_v32, %v1963_v32 }
 0x16d   :  { %v1972_v60 = vcombine.high %v1970_v28, %v1970_v28  ;;  %v2001_v52 = vcombine.high %v1979_v10, %v1979_v10  ;;  %v10268_v21 = vadd.f32 %v2036_v27, %v10153_v49  ;;  %v10271_v56 = vadd.f32 %v2036_v27, %v10163_v16 }
 0x16e   :  { %12238 = vst [vmem:[#allocation37_spill] sm:$0xff] %v10225_v53  ;;  %8339 = vmatmul.mubr.msk.f32.gmra.mrb[34].mxu1 %vm12169_vm0, %v10225_v53  ;;  %v1993_v40 = vrot.slane %v1971_v17, %v10127_v18  ;;  %v2040_v3 = vrot.slane %v1979_v10, %v9315_v8 }
 0x16f   :  { %8413 = vmatprep.mubr.msk.f32.mxu1 %vm1414_vm4, %v9144_v38  ;;  %v1986_v38 = vrot.slane %v1970_v28, %v10127_v18  ;;  %v2000_v46 = vrot.slane %v1972_v60, %v10127_v18  ;;  %v2048_v28 = vrot.slane %v2001_v52, %v9315_v8 }
 0x170   :  { %v2003_v57 = vcombine.high %v1993_v40, %v1993_v40  ;;  %v2044_v32 = vrot.slane %v1993_v40, %v9315_v8  ;;  %v10282_v42 = vadd.f32 %v2040_v3, %v10153_v49  ;;  %v10285_v27 = vadd.f32 %v2040_v3, %v10163_v16 }
 0x171   :  { %v2002_v53 = vcombine.high %v1986_v38, %v1986_v38  ;;  %v2004_v31 = vcombine.high %v2000_v46, %v2000_v46  ;;  %v2056_v60 = vrot.slane %v1986_v38, %v9315_v8  ;;  %v2060_v22 = vrot.slane %v2000_v46, %v9315_v8 }
 0x172   :  { %v2052_v17 = vrot.slane %v2003_v57, %v9315_v8  ;;  %v10288_v10 = vadd.f32 %v2044_v32, %v10153_v49  ;;  %v10291_v40 = vadd.f32 %v2044_v32, %v10163_v16  ;;  %v10294_v38 = vadd.f32 %v2048_v28, %v10153_v49 }
 0x173   :  { %v2064_v18 = vrot.slane %v2002_v53, %v9315_v8  ;;  %v2068_v25 = vrot.slane %v2004_v31, %v9315_v8  ;;  %v10297_v46 = vadd.f32 %v2048_v28, %v10163_v16  ;;  %v10306_v52 = vadd.f32 %v2056_v60, %v10153_v49 }
 0x174   :  { %v10300_v31 = vadd.f32 %v2052_v17, %v10153_v49  ;;  %v10303_v53 = vadd.f32 %v2052_v17, %v10163_v16  ;;  %v10309_v57 = vadd.f32 %v2056_v60, %v10163_v16  ;;  %v10312_v3 = vadd.f32 %v2060_v22, %v10153_v49 }
 0x175   :  { %v10315_v32 = vadd.f32 %v2060_v22, %v10163_v16  ;;  %v10318_v28 = vadd.f32 %v2064_v18, %v10153_v49  ;;  %v10321_v8 = vadd.f32 %v2064_v18, %v10163_v16  ;;  %v10324_v17 = vadd.f32 %v2068_v25, %v10153_v49 }
 0x176   :  { %v10327_v1 = vadd.f32 %v2068_v25, %v10163_v16  ;;  %v12129_v60 = vmov 0  }
 0x177   :  { %8974 = vset.pattern.permute.xlu1 %v12129_v60  ;;  %8975 = vset.pattern.permute.xlu0 %v12129_v60 }
 0x1dd   :  { %v8295_v45 = vpop.f32.mrb[4].mxu1 }
 0x1de   :  { %v2118_v22 = vadd.f32 %v8295_v45, %v10166_v41  ;;  %v1746_v13 = vpop.f32.mrb[5].mxu1 }
 0x1df   :  { %v2117_v29 = vadd.f32 %v10181_v24, %v1746_v13 }
 0x1e0   :  { %v2182_v37 = vmul.f32 0.2, %v2118_v22  ;;  %vm2150_vm5 = vcmp.gt.f32.partialorder %v2118_v22, 0.0 }
 0x1e1   :  { %vm2149_vm6 = vcmp.gt.f32.partialorder %v2117_v29, 0.0  ;;  %v2181_v18 = vmul.f32 0.2, %v2117_v29 }
 0x1e2   :  { %v2214_v47 = vsel %vm2150_vm5, %v2118_v22, %v2182_v37 }
 0x1e3   :  { %v2213_v49 = vsel %vm2149_vm6, %v2117_v29, %v2181_v18 }
 0x1e4   :  { %v8298_v16 = vpop.f32.mrb[6].mxu1  ;;  %8357 = vmatprep.mubr.msk.f32.mxu0 %vm2253_vm7, %v2213_v49 }
 0x1e5   :  { %v2120_v25 = vadd.f32 %v8298_v16, %v10196_v0  ;;  %v1756_v36 = vpop.f32.mrb[7].mxu1  ;;  %8358 = vmatmul.mubr.msk.f32.vlgmr.msra.gmra.mrb[32].mxu0 %vm2253_vm7, %v2214_v47 }
 0x1e6   :  { %v2119_v45 = vadd.f32 %v10202_v30, %v1756_v36 }
 0x1e7   :  { %v2184_v41 = vmul.f32 0.2, %v2120_v25  ;;  %vm2152_vm8 = vcmp.gt.f32.partialorder %v2120_v25, 0.0 }
 0x1e8   :  { %vm2151_vm9 = vcmp.gt.f32.partialorder %v2119_v45, 0.0  ;;  %v2183_v13 = vmul.f32 0.2, %v2119_v45  ;;  %v8301_v24 = vpop.f32.mrb[8].mxu1 }
 0x1e9   :  { %v2122_v60 = vadd.f32 %v8301_v24, %v10210_v55  ;;  %v1766_v35 = vpop.f32.mrb[9].mxu1  ;;  %v2216_v0 = vsel %vm2152_vm8, %v2120_v25, %v2184_v41 }
 0x1ea   :  { %v2121_v37 = vadd.f32 %v10215_v23, %v1766_v35  ;;  %v2215_v29 = vsel %vm2151_vm9, %v2119_v45, %v2183_v13 }
 0x1eb   :  { %v2186_v22 = vmul.f32 0.2, %v2122_v60  ;;  %8360 = vmatprep.mubr.msk.f32.mxu0 %vm2253_vm7, %v2215_v29  ;;  %vm2154_vm10 = vcmp.gt.f32.partialorder %v2122_v60, 0.0 }
 0x1ec   :  { %vm2153_vm11 = vcmp.gt.f32.partialorder %v2121_v37, 0.0  ;;  %v2185_v47 = vmul.f32 0.2, %v2121_v37  ;;  %8361 = vmatmul.mubr.msk.f32.gmra.mrb[34].mxu0 %vm2253_vm7, %v2216_v0 }
 0x1ed   :  { %v2218_v35 = vsel %vm2154_vm10, %v2122_v60, %v2186_v22 }
 0x1ee   :  { %v8304_v36 = vpop.f32.mrb[10].mxu1  ;;  %v2217_v49 = vsel %vm2153_vm11, %v2121_v37, %v2185_v47 }
 0x1ef   :  { %v2124_v30 = vadd.f32 %v8304_v36, %v10222_v61  ;;  %v1776_v18 = vpop.f32.mrb[11].mxu1  ;;  %8363 = vmatprep.mubr.msk.f32.mxu0 %vm2253_vm7, %v2217_v49 }
 0x1f0   :  { %v2123_v55 = vadd.f32 %v10228_v44, %v1776_v18  ;;  %8364 = vmatmul.mubr.msk.f32.gmra.mrb[36].mxu0 %vm2253_vm7, %v2218_v35 }
 0x1f1   :  { %v2188_v23 = vmul.f32 0.2, %v2124_v30  ;;  %vm2156_vm12 = vcmp.gt.f32.partialorder %v2124_v30, 0.0 }
 0x1f2   :  { %vm2155_vm13 = vcmp.gt.f32.partialorder %v2123_v55, 0.0  ;;  %v2187_v16 = vmul.f32 0.2, %v2123_v55  ;;  %v8307_v25 = vpop.f32.mrb[12].mxu1 }
 0x1f3   :  { %v2126_v45 = vadd.f32 %v8307_v25, %v10236_v14  ;;  %v1786_v41 = vpop.f32.mrb[13].mxu1  ;;  %v2220_v44 = vsel %vm2156_vm12, %v2124_v30, %v2188_v23 }
 0x1f4   :  { %v2125_v13 = vadd.f32 %v10244_v58, %v1786_v41  ;;  %v2219_v61 = vsel %vm2155_vm13, %v2123_v55, %v2187_v16 }
 0x1f5   :  { %v2190_v24 = vmul.f32 0.2, %v2126_v45  ;;  %8366 = vmatprep.mubr.msk.f32.mxu0 %vm2253_vm7, %v2219_v61  ;;  %vm2158_vm14 = vcmp.gt.f32.partialorder %v2126_v45, 0.0 }
 0x1f6   :  { %vm2157_vm15 = vcmp.gt.f32.partialorder %v2125_v13, 0.0  ;;  %v2189_v60 = vmul.f32 0.2, %v2125_v13  ;;  %v8310_v37 = vpop.f32.mrb[14].mxu1  ;;  %8367 = vmatmul.mubr.msk.f32.gmra.mrb[38].mxu0 %vm2253_vm7, %v2220_v44 }
 0x1f7   :  { %v2128_v29 = vadd.f32 %v8310_v37, %v10248_v19  ;;  %v1796_v22 = vpop.f32.mrb[15].mxu1  ;;  %v2222_v58 = vsel %vm2158_vm14, %v2126_v45, %v2190_v24 }
 0x1f8   :  { %v2127_v0 = vadd.f32 %v10251_v51, %v1796_v22  ;;  %v2221_v14 = vsel %vm2157_vm15, %v2125_v13, %v2189_v60 }
 0x1f9   :  { %v2192_v47 = vmul.f32 0.2, %v2128_v29  ;;  %8369 = vmatprep.mubr.msk.f32.mxu0 %vm2253_vm7, %v2221_v14  ;;  %vm2160_vm1 = vcmp.gt.f32.partialorder %v2128_v29, 0.0 }
 0x1fa   :  { %vm2159_vm2 = vcmp.gt.f32.partialorder %v2127_v0, 0.0  ;;  %v2191_v36 = vmul.f32 0.2, %v2127_v0  ;;  %v8313_v30 = vpop.f32.mrb[16].mxu1  ;;  %8370 = vmatmul.mubr.msk.f32.gmra.mrb[40].mxu0 %vm2253_vm7, %v2222_v58 }
 0x1fb   :  { %v2130_v18 = vadd.f32 %v8313_v30, %v10257_v20  ;;  %v1806_v49 = vpop.f32.mrb[17].mxu1  ;;  %v2224_v51 = vsel %vm2160_vm1, %v2128_v29, %v2192_v47 }
 0x1fc   :  { %v2129_v55 = vadd.f32 %v10260_v39, %v1806_v49  ;;  %v2223_v19 = vsel %vm2159_vm2, %v2127_v0, %v2191_v36 }
 0x1fd   :  { %v2194_v35 = vmul.f32 0.2, %v2130_v18  ;;  %8372 = vmatprep.mubr.msk.f32.mxu0 %vm2253_vm7, %v2223_v19  ;;  %vm2162_vm3 = vcmp.gt.f32.partialorder %v2130_v18, 0.0 }
 0x1fe   :  { %vm2161_vm5 = vcmp.gt.f32.partialorder %v2129_v55, 0.0  ;;  %v2193_v23 = vmul.f32 0.2, %v2129_v55  ;;  %8373 = vmatmul.mubr.msk.f32.gmra.mrb[42].mxu0 %vm2253_vm7, %v2224_v51  ;;  %v8316_v16 = vpop.f32.mrb[18].mxu1 }
 0x1ff   :  { %v2132_v45 = vadd.f32 %v8316_v16, %v10268_v21  ;;  %v1816_v41 = vpop.f32.mrb[19].mxu1  ;;  %v2226_v20 = vsel %vm2162_vm3, %v2130_v18, %v2194_v35 }
 0x200   :  { %v2225_v25 = vsel %vm2161_vm5, %v2129_v55, %v2193_v23  ;;  %v2131_v39 = vadd.f32 %v10271_v56, %v1816_v41 }
 0x201   :  { %8375 = vmatprep.mubr.msk.f32.mxu0 %vm2253_vm7, %v2225_v25  ;;  %v2196_v13 = vmul.f32 0.2, %v2132_v45  ;;  %vm2164_vm6 = vcmp.gt.f32.partialorder %v2132_v45, 0.0 }
 0x202   :  { %8376 = vmatmul.mubr.msk.f32.gmra.mrb[44].mxu0 %vm2253_vm7, %v2226_v20  ;;  %vm2163_vm8 = vcmp.gt.f32.partialorder %v2131_v39, 0.0  ;;  %v2195_v61 = vmul.f32 0.2, %v2131_v39  ;;  %v8319_v24 = vpop.f32.mrb[20].mxu1 }
 0x203   :  { %v2134_v60 = vadd.f32 %v8319_v24, %v10282_v42  ;;  %v1826_v37 = vpop.f32.mrb[21].mxu1  ;;  %v2228_v21 = vsel %vm2164_vm6, %v2132_v45, %v2196_v13 }
 0x204   :  { %v2227_v44 = vsel %vm2163_vm8, %v2131_v39, %v2195_v61  ;;  %v2133_v29 = vadd.f32 %v10285_v27, %v1826_v37 }
 0x205   :  { %8378 = vmatprep.mubr.msk.f32.mxu0 %vm2253_vm7, %v2227_v44  ;;  %v2198_v22 = vmul.f32 0.2, %v2134_v60  ;;  %vm2166_vm9 = vcmp.gt.f32.partialorder %v2134_v60, 0.0 }
 0x206   :  { %8379 = vmatmul.mubr.msk.f32.gmra.mrb[46].mxu0 %vm2253_vm7, %v2228_v21  ;;  %vm2165_vm10 = vcmp.gt.f32.partialorder %v2133_v29, 0.0  ;;  %v2197_v56 = vmul.f32 0.2, %v2133_v29 }
 0x207   :  { %v2230_v14 = vsel %vm2166_vm9, %v2134_v60, %v2198_v22 }
 0x208   :  { %v2229_v0 = vsel %vm2165_vm10, %v2133_v29, %v2197_v56 }
 0x209   :  { %8381 = vmatprep.mubr.msk.f32.mxu0 %vm2253_vm7, %v2229_v0 }
 0x20a   :  { %8382 = vmatmul.mubr.msk.f32.gmra.mrb[48].mxu0 %vm2253_vm7, %v2230_v14 }
 0x20d   :  { %v8322_v47 = vpop.f32.mrb[22].mxu1 }
 0x20e   :  { %v2136_v42 = vadd.f32 %v8322_v47, %v10288_v10  ;;  %v1836_v58 = vpop.f32.mrb[23].mxu1 }
 0x20f   :  { %v2135_v36 = vadd.f32 %v10291_v40, %v1836_v58 }
 0x210   :  { %v2200_v30 = vmul.f32 0.2, %v2136_v42  ;;  %vm2168_vm11 = vcmp.gt.f32.partialorder %v2136_v42, 0.0 }
 0x211   :  { %vm2167_vm12 = vcmp.gt.f32.partialorder %v2135_v36, 0.0  ;;  %v2199_v27 = vmul.f32 0.2, %v2135_v36 }
 0x212   :  { %v2232_v49 = vsel %vm2168_vm11, %v2136_v42, %v2200_v30 }
 0x213   :  { %v2231_v18 = vsel %vm2167_vm12, %v2135_v36, %v2199_v27  ;;  %vm2714_vm12 = vcmask 130112  }
 0x214   :  { %8384 = vmatprep.mubr.msk.f32.mxu0 %vm2253_vm7, %v2231_v18 }
 0x215   :  { %8385 = vmatmul.mubr.msk.f32.gmra.mrb[50].mxu0 %vm2253_vm7, %v2232_v49 }
 0x219   :  { %v8325_v55 = vpop.f32.mrb[24].mxu1 }
 0x21a   :  { %v2138_v19 = vadd.f32 %v8325_v55, %v10294_v38  ;;  %v1846_v35 = vpop.f32.mrb[25].mxu1 }
 0x21b   :  { %v2137_v51 = vadd.f32 %v10297_v46, %v1846_v35 }
 0x21c   :  { %v2202_v10 = vmul.f32 0.2, %v2138_v19  ;;  %vm2170_vm13 = vcmp.gt.f32.partialorder %v2138_v19, 0.0 }
 0x21d   :  { %vm2169_vm14 = vcmp.gt.f32.partialorder %v2137_v51, 0.0  ;;  %v2201_v40 = vmul.f32 0.2, %v2137_v51 }
 0x21e   :  { %v2234_v16 = vsel %vm2170_vm13, %v2138_v19, %v2202_v10  ;;  %vm2851_vm13 = vcmask 1041409  }
 0x21f   :  { %v2233_v23 = vsel %vm2169_vm14, %v2137_v51, %v2201_v40  ;;  %vm2853_vm14 = vcmask 1042434  }
 0x220   :  { %8387 = vmatprep.mubr.msk.f32.mxu0 %vm2253_vm7, %v2233_v23 }
 0x221   :  { %v8328_v25 = vpop.f32.mrb[26].mxu1  ;;  %8388 = vmatmul.mubr.msk.f32.gmra.mrb[52].mxu0 %vm2253_vm7, %v2234_v16 }
 0x222   :  { %v2140_v45 = vadd.f32 %v8328_v25, %v10300_v31  ;;  %v1856_v41 = vpop.f32.mrb[27].mxu1 }
 0x223   :  { %v2139_v20 = vadd.f32 %v10303_v53, %v1856_v41 }
 0x224   :  { %v2204_v38 = vmul.f32 0.2, %v2140_v45  ;;  %vm2172_vm15 = vcmp.gt.f32.partialorder %v2140_v45, 0.0 }
 0x225   :  { %vm2171_vm1 = vcmp.gt.f32.partialorder %v2139_v20, 0.0  ;;  %v2203_v46 = vmul.f32 0.2, %v2139_v20 }
 0x226   :  { %v2236_v13 = vsel %vm2172_vm15, %v2140_v45, %v2204_v38  ;;  %vm2855_vm15 = vcmask 1043459  }
 0x227   :  { %v2235_v39 = vsel %vm2171_vm1, %v2139_v20, %v2203_v46  ;;  %vm2857_vm1 = vcmask 1044484  }
 0x228   :  { %8390 = vmatprep.mubr.msk.f32.mxu0 %vm2253_vm7, %v2235_v39 }
 0x229   :  { %v8331_v61 = vpop.f32.mrb[28].mxu1  ;;  %8391 = vmatmul.mubr.msk.f32.gmra.mrb[54].mxu0 %vm2253_vm7, %v2236_v13 }
 0x22a   :  { %v2142_v24 = vadd.f32 %v8331_v61, %v10306_v52  ;;  %v1866_v44 = vpop.f32.mrb[29].mxu1 }
 0x22b   :  { %v2141_v60 = vadd.f32 %v10309_v57, %v1866_v44 }
 0x22c   :  { %v2206_v31 = vmul.f32 0.2, %v2142_v24  ;;  %vm2174_vm2 = vcmp.gt.f32.partialorder %v2142_v24, 0.0 }
 0x22d   :  { %vm2173_vm3 = vcmp.gt.f32.partialorder %v2141_v60, 0.0  ;;  %v2205_v53 = vmul.f32 0.2, %v2141_v60 }
 0x22e   :  { %v2238_v21 = vsel %vm2174_vm2, %v2142_v24, %v2206_v31  ;;  %vm12172_vm2 = vcmask 1045509  }
 0x22f   :  { %v2237_v37 = vsel %vm2173_vm3, %v2141_v60, %v2205_v53  ;;  %v10452_v53 = vld [vmem:[%s12194_s30] sm:$0xff]  ;;  %vm12171_vm3 = vcmask 1046534  }
 0x230   :  { %8393 = vmatprep.mubr.msk.f32.mxu0 %vm2253_vm7, %v2237_v37  ;;  %v10457_v37 = vld [vmem:[%s12194_s30 + $0x8] sm:$0xff] }
 0x231   :  { %v8334_v29 = vpop.f32.mrb[30].mxu1  ;;  %8394 = vmatmul.mubr.msk.f32.gmra.mrb[56].mxu0 %vm2253_vm7, %v2238_v21  ;;  %v10462_v21 = vld [vmem:[%s12194_s30 + $0x10] sm:$0xff] }
 0x232   :  { %v2144_v22 = vadd.f32 %v8334_v29, %v10312_v3  ;;  %v1876_v56 = vpop.f32.mrb[31].mxu1 }
 0x233   :  { %v2143_v0 = vadd.f32 %v10315_v32, %v1876_v56  ;;  %v10471_v56 = vld [vmem:[%s12194_s30 + $0x18] sm:$0xff] }
 0x234   :  { %v2208_v52 = vmul.f32 0.2, %v2144_v22  ;;  %vm2176_vm5 = vcmp.gt.f32.partialorder %v2144_v22, 0.0 }
 0x235   :  { %vm2175_vm6 = vcmp.gt.f32.partialorder %v2143_v0, 0.0  ;;  %v2207_v57 = vmul.f32 0.2, %v2143_v0 }
 0x236   :  { %v2240_v47 = vsel %vm2176_vm5, %v2144_v22, %v2208_v52  ;;  %v8825_v22 = vpack.c.bf16 %v10457_v37, %v10452_v53  ;;  %v8829_v52 = vpack.c.bf16 %v10471_v56, %v10462_v21  ;;  %vm12170_vm5 = vcmask 1047559  }
 0x237   :  { %v2239_v14 = vsel %vm2175_vm6, %v2143_v0, %v2207_v57 }
 0x238   :  { %8396 = vmatprep.mubr.msk.f32.mxu0 %vm2253_vm7, %v2239_v14  ;;  %8826 = vmatprep.subr.bf16.mxu1 %v8825_v22 }
 0x239   :  { %v8337_v42 = vpop.f32.mrb[32].mxu1  ;;  %8397 = vmatmul.mubr.msk.f32.gmra.mrb[58].mxu0 %vm2253_vm7, %v2240_v47  ;;  %8828 = vmatpush3.bf16.msra.mxu1 %v8825_v22  ;;  %v10486_v47 = vld [vmem:[%s12196_s1 + $0x8] sm:$0xff] }
 0x23a   :  { %v2146_v58 = vadd.f32 %v8337_v42, %v10318_v28  ;;  %v1886_v36 = vpop.f32.mrb[33].mxu1  ;;  %8830 = vmatprep.subr.bf16.mxu1 %v8829_v52 }
 0x23b   :  { %v2145_v30 = vadd.f32 %v10321_v8, %v1886_v36 }
 0x23c   :  { %v2210_v3 = vmul.f32 0.2, %v2146_v58  ;;  %vm2178_vm8 = vcmp.gt.f32.partialorder %v2146_v58, 0.0 }
 0x23d   :  { %vm2177_vm9 = vcmp.gt.f32.partialorder %v2145_v30, 0.0  ;;  %v2209_v32 = vmul.f32 0.2, %v2145_v30  ;;  %8832 = vmatpush3.bf16.msra.mxu1 %v8829_v52 }
 0x23e   :  { %v2242_v18 = vsel %vm2178_vm8, %v2146_v58, %v2210_v3 }
 0x23f   :  { %v2241_v27 = vsel %vm2177_vm9, %v2145_v30, %v2209_v32 }
 0x240   :  { %8399 = vmatprep.mubr.msk.f32.mxu0 %vm2253_vm7, %v2241_v27  ;;  %8414 = vmatmul.mubr.msk.f32.vlgmr.msra.gmra.mrb[36].mxu1 %vm1414_vm4, %v10486_v47 }
 0x241   :  { %v8340_v49 = vpop.f32.mrb[34].mxu1  ;;  %8400 = vmatmul.mubr.msk.f32.gmra.mrb[60].mxu0 %vm2253_vm7, %v2242_v18 }
 0x242   :  { %v2148_v55 = vadd.f32 %v8340_v49, %v10324_v17  ;;  %v1896_v19 = vpop.f32.mrb[35].mxu1 }
 0x243   :  { %v2147_v35 = vadd.f32 %v10327_v1, %v1896_v19 }
 0x244   :  { %v2212_v28 = vmul.f32 0.2, %v2148_v55  ;;  %vm2180_vm10 = vcmp.gt.f32.partialorder %v2148_v55, 0.0 }
 0x245   :  { %vm2179_vm11 = vcmp.gt.f32.partialorder %v2147_v35, 0.0  ;;  %v2211_v8 = vmul.f32 0.2, %v2147_v35 }
 0x246   :  { %v2244_v10 = vsel %vm2180_vm10, %v2148_v55, %v2212_v28  ;;  %v12147_v28 = vmov 1  }
 0x247   :  { %v2243_v51 = vsel %vm2179_vm11, %v2147_v35, %v2211_v8 }
 0x248   :  { %8402 = vmatprep.mubr.msk.f32.mxu0 %vm2253_vm7, %v2243_v51 }
 0x249   :  { %8403 = vmatmul.mubr.msk.f32.gmra.mrb[62].mxu0 %vm2253_vm7, %v2244_v10 }
 0x2b8   :  { %v10395_v40 = vpop.f32.mrb[32].mxu0 }
 0x2b9   :  { %2613 = vperm.xlu1 %8974, %v10395_v40   ;;  %v10398_v23 = vpop.f32.mrb[33].mxu0 }
 0x2ba   :  { %2610 = vperm.xlu0 %8975, %v10398_v23  }
 0x2bf   :  { %v10401_v17 = vpop.f32.mrb[34].mxu0 }
 0x2c0   :  { %v10403_v1 = vpop.f32.mrb[35].mxu0  ;;  %2619 = vperm.xlu0 %8975, %v10401_v17  }
 0x2c1   :  { %2616 = vperm.xlu1 %8974, %v10403_v1  }
 0x2c3   :  { %v10407_v16 = vpop.f32.mrb[36].mxu0 }
 0x2c4   :  { %v10409_v25 = vpop.f32.mrb[37].mxu0  ;;  %2625 = vperm.xlu0 %8975, %v10407_v16  }
 0x2c5   :  { %2622 = vperm.xlu1 %8974, %v10409_v25  }
 0x2c9   :  { %v10413_v45 = vpop.f32.mrb[38].mxu0 }
 0x2ca   :  { %v10415_v41 = vpop.f32.mrb[39].mxu0  ;;  %2631 = vperm.xlu0 %8975, %v10413_v45  }
 0x2cb   :  { %2628 = vperm.xlu1 %8974, %v10415_v41  }
 0x2cd   :  { %v10419_v20 = vpop.f32.mrb[40].mxu0 }
 0x2ce   :  { %v10421_v38 = vpop.f32.mrb[41].mxu0  ;;  %2637 = vperm.xlu0 %8975, %v10419_v20  }
 0x2cf   :  { %2634 = vperm.xlu1 %8974, %v10421_v38  }
 0x2d1   :  { %v10425_v46 = vpop.f32.mrb[42].mxu0 }
 0x2d2   :  { %v10427_v39 = vpop.f32.mrb[43].mxu0  ;;  %2643 = vperm.xlu0 %8975, %v10425_v46  }
 0x2d3   :  { %2640 = vperm.xlu1 %8974, %v10427_v39  }
 0x2d5   :  { %v10431_v13 = vpop.f32.mrb[44].mxu0 }
 0x2d6   :  { %v10433_v61 = vpop.f32.mrb[45].mxu0  ;;  %2649 = vperm.xlu0 %8975, %v10431_v13  }
 0x2d7   :  { %2646 = vperm.xlu1 %8974, %v10433_v61  }
 0x2d9   :  { %v10437_v24 = vpop.f32.mrb[46].mxu0 }
 0x2da   :  { %2655 = vperm.xlu0 %8975, %v10437_v24   ;;  %v10440_v44 = vpop.f32.mrb[47].mxu0 }
 0x2db   :  { %2652 = vperm.xlu1 %8974, %v10440_v44  }
 0x2dd   :  { %v10443_v60 = vpop.f32.mrb[48].mxu0 }
 0x2de   :  { %2661 = vperm.xlu0 %8975, %v10443_v60   ;;  %v10446_v31 = vpop.f32.mrb[49].mxu0 }
 0x2df   :  { %2658 = vperm.xlu1 %8974, %v10446_v31  }
 0x2e8   :  { %v10477_v57 = vpop.f32.mrb[50].mxu0 }
 0x2e9   :  { %2667 = vperm.xlu0 %8975, %v10477_v57   ;;  %v10480_v14 = vpop.f32.mrb[51].mxu0 }
 0x2ea   :  { %2664 = vperm.xlu1 %8974, %v10480_v14  }
 0x2f4   :  { %v10490_v42 = vpop.f32.mrb[52].mxu0 }
 0x2f5   :  { %2673 = vperm.xlu0 %8975, %v10490_v42   ;;  %v10493_v58 = vpop.f32.mrb[53].mxu0 }
 0x2f6   :  { %2670 = vperm.xlu1 %8974, %v10493_v58  }
 0x2fc   :  { %v10496_v36 = vpop.f32.mrb[54].mxu0 }
 0x2fd   :  { %2679 = vperm.xlu0 %8975, %v10496_v36   ;;  %v10499_v30 = vpop.f32.mrb[55].mxu0 }
 0x2fe   :  { %2676 = vperm.xlu1 %8974, %v10499_v30  }
 0x304   :  { %v10502_v3 = vpop.f32.mrb[56].mxu0 }
 0x305   :  { %2685 = vperm.xlu0 %8975, %v10502_v3   ;;  %v10505_v32 = vpop.f32.mrb[57].mxu0 }
 0x306   :  { %2682 = vperm.xlu1 %8974, %v10505_v32  }
 0x30c   :  { %v10508_v27 = vpop.f32.mrb[58].mxu0 }
 0x30d   :  { %2691 = vperm.xlu0 %8975, %v10508_v27   ;;  %v10511_v18 = vpop.f32.mrb[59].mxu0 }
 0x30e   :  { %2688 = vperm.xlu1 %8974, %v10511_v18  }
 0x314   :  { %v10514_v49 = vpop.f32.mrb[60].mxu0 }
 0x315   :  { %2697 = vperm.xlu0 %8975, %v10514_v49   ;;  %v10517_v55 = vpop.f32.mrb[61].mxu0 }
 0x316   :  { %2694 = vperm.xlu1 %8974, %v10517_v55  }
 0x31c   :  { %v10520_v19 = vpop.f32.mrb[62].mxu0 }
 0x31d   :  { %2703 = vperm.xlu0 %8975, %v10520_v19   ;;  %v10523_v35 = vpop.f32.mrb[63].mxu0 }
 0x31e   :  { %2700 = vperm.xlu1 %8974, %v10523_v35  }
 0x321   :  { %8987 = vset.pattern.permute.xlu0 %v12147_v28 }
 0x322   :  { %8986 = vset.pattern.permute.xlu1 %v12147_v28 }
 0x338   :  { %v2614_v51 = vpop.permute.xlu1 %2613 }
 0x339   :  { %v2611_v8 = vpop.permute.xlu0 %2610  ;;  %v2713_v59 = vrot.slane %v2614_v51, %v10534_v11 }
 0x33a   :  { %v2708_v54 = vrot.slane %v2611_v8, %v10531_v2 }
 0x33c   :  { %v2715_v12 = vsel %vm2714_vm12, %v2713_v59, %v2708_v54 }
 0x33f   :  { %v2620_v10 = vpop.permute.xlu0 %2619 }
 0x340   :  { %v2617_v22 = vpop.permute.xlu1 %2616  ;;  %v2723_v6 = vrot.slane %v2620_v10, %v10534_v11 }
 0x341   :  { %v2719_v43 = vrot.slane %v2617_v22, %v10531_v2  ;;  %v9146_v22 = vld [vmem:[%s12187_s7] sm:$0xff] }
 0x343   :  { %v2626_v52 = vpop.permute.xlu0 %2625  ;;  %v2724_v51 = vsel %vm2714_vm12, %v2723_v6, %v2719_v43 }
 0x344   :  { %v2623_v29 = vpop.permute.xlu1 %2622  ;;  %v2732_v5 = vrot.slane %v2626_v52, %v10534_v11  ;;  %v12240_v52 = vld [vmem:[#allocation5_spill] sm:$0xff] }
 0x345   :  { %v2728_v15 = vrot.slane %v2623_v29, %v10531_v2  ;;  %v1397_v29 = vadd.f32 %v9146_v22, %v12240_v52  ;;  %v2852_v52 = vsel %vm2851_vm13, %v2724_v51, %v2715_v12 }
 0x347   :  { %v1399_v6 = vmin.f32 %v1397_v29, 1.0 }
 0x349   :  { %v2632_v0 = vpop.permute.xlu0 %2631  ;;  %vm10567_vm6 = vcmp.gt.f32.partialorder %v1399_v6, 0.0 }
 0x34a   :  { %v2629_v9 = vpop.permute.xlu1 %2628  ;;  %v2741_v4 = vrot.slane %v2632_v0, %v10534_v11 }
 0x34b   :  { %v2737_v7 = vrot.slane %v2629_v9, %v10531_v2 }
 0x34d   :  { %v2638_v34 = vpop.permute.xlu0 %2637  ;;  %v2742_v22 = vsel %vm2714_vm12, %v2741_v4, %v2737_v7 }
 0x34e   :  { %v2635_v48 = vpop.permute.xlu1 %2634  ;;  %v2750_v63 = vrot.slane %v2638_v34, %v10534_v11  ;;  %v2733_v34 = vsel %vm2714_vm12, %v2732_v5, %v2728_v15 }
 0x34f   :  { %v2746_v50 = vrot.slane %v2635_v48, %v10531_v2 }
 0x351   :  { %v2644_v28 = vpop.permute.xlu0 %2643  ;;  %v2751_v43 = vsel %vm2714_vm12, %v2750_v63, %v2746_v50 }
 0x352   :  { %v2641_v33 = vpop.permute.xlu1 %2640  ;;  %v2759_v8 = vrot.slane %v2644_v28, %v10534_v11 }
 0x353   :  { %v2755_v0 = vrot.slane %v2641_v33, %v10531_v2  ;;  %v2854_v33 = vsel %vm2853_vm14, %v2733_v34, %v2852_v52 }
 0x354   :  { %v2856_v15 = vsel %vm2855_vm15, %v2742_v22, %v2854_v33 }
 0x355   :  { %v2650_v10 = vpop.permute.xlu0 %2649  ;;  %v2760_v28 = vsel %vm2714_vm12, %v2759_v8, %v2755_v0  ;;  %v2858_v12 = vsel %vm2857_vm1, %v2751_v43, %v2856_v15  ;;  %v12243_v0 = vpack.i.bf16 %v10471_v56, %v10462_v21 }
 0x356   :  { %v2647_v9 = vpop.permute.xlu1 %2646  ;;  %v2768_v48 = vrot.slane %v2650_v10, %v10534_v11  ;;  %v2860_v63 = vsel %vm12172_vm2, %v2760_v28, %v2858_v12  ;;  %v12244_v12 = vld [vmem:[#allocation6_spill] sm:$0xff] }
 0x357   :  { %v2764_v62 = vrot.slane %v2647_v9, %v10531_v2 }
 0x359   :  { %v2656_v5 = vpop.permute.xlu0 %2655  ;;  %v2769_v10 = vsel %vm2714_vm12, %v2768_v48, %v2764_v62 }
 0x35a   :  { %v2777_v59 = vrot.slane %v2656_v5, %v10534_v11  ;;  %v2653_v54 = vpop.permute.xlu1 %2652  ;;  %v2862_v29 = vsel %vm12171_vm3, %v2769_v10, %v2860_v63 }
 0x35b   :  { %v2773_v7 = vrot.slane %v2653_v54, %v10531_v2 }
 0x35d   :  { %v2778_v50 = vsel %vm2714_vm12, %v2777_v59, %v2773_v7  ;;  %v2662_v9 = vpop.permute.xlu0 %2661 }
 0x35e   :  { %v2864_v62 = vsel %vm12170_vm5, %v2778_v50, %v2862_v29  ;;  %v2659_v34 = vpop.permute.xlu1 %2658  ;;  %v2786_v28 = vrot.slane %v2662_v9, %v10534_v11 }
 0x35f   :  { %v10577_v51 = vsel %vm10567_vm6, %v2864_v62, -1e+30 }
 0x360   :  { %v2876_v8 = vsel %vm12169_vm0, %v10577_v51, -inf }
 0x361   :  { %2877 = vmax.xlane.f32.xlu1 %v2876_v8 }
 0x368   :  { %v2668_v48 = vpop.permute.xlu0 %2667 }
 0x369   :  { %v2665_v22 = vpop.permute.xlu1 %2664 }
 0x36a   :  { %v2791_v33 = vrot.slane %v2665_v22, %v10531_v2 }
 0x372   :  { %8982 = vrot.lane.b32.xlu1 %v12243_v0, %s9155_s2 }
 0x374   :  { %v2674_v52 = vpop.permute.xlu0 %2673 }
 0x375   :  { %v2671_v43 = vpop.permute.xlu1 %2670 }
 0x376   :  { %3068 = vperm.xlu1 %8986, %v10398_v23  }
 0x37a   :  { %3074 = vperm.xlu1 %8986, %v10403_v1  }
 0x37c   :  { %v2680_v21 = vpop.permute.xlu0 %2679 }
 0x37d   :  { %v2677_v56 = vpop.permute.xlu1 %2676  ;;  %v2813_v5 = vrot.slane %v2680_v21, %v10534_v11 }
 0x37e   :  { %3077 = vperm.xlu1 %8986, %v10401_v17  }
 0x382   :  { %3083 = vperm.xlu1 %8986, %v10407_v16   ;;  %v2795_v16 = vrot.slane %v2668_v48, %v10534_v11 }
 0x384   :  { %v2686_v23 = vpop.permute.xlu0 %2685  ;;  %v2796_v63 = vsel %vm2714_vm12, %v2795_v16, %v2791_v33 }
 0x385   :  { %v2683_v1 = vpop.permute.xlu1 %2682  ;;  %v2822_v59 = vrot.slane %v2686_v23, %v10534_v11 }
 0x386   :  { %3119 = vperm.xlu1 %8986, %v10443_v60   ;;  %v2804_v60 = vrot.slane %v2674_v52, %v10534_v11  ;;  %v2818_v54 = vrot.slane %v2683_v1, %v10531_v2 }
 0x388   :  { %v2823_v22 = vsel %vm2714_vm12, %v2822_v59, %v2818_v54 }
 0x38a   :  { %3125 = vperm.xlu1 %8986, %v10477_v57   ;;  %v2800_v57 = vrot.slane %v2671_v43, %v10531_v2 }
 0x38c   :  { %v2692_v17 = vpop.permute.xlu0 %2691  ;;  %v2805_v62 = vsel %vm2714_vm12, %v2804_v60, %v2800_v57 }
 0x38d   :  { %v2689_v6 = vpop.permute.xlu1 %2688  ;;  %v2831_v50 = vrot.slane %v2692_v17, %v10534_v11 }
 0x38e   :  { %3089 = vperm.xlu1 %8986, %v10413_v45   ;;  %v2782_v45 = vrot.slane %v2659_v34, %v10531_v2  ;;  %v2827_v29 = vrot.slane %v2689_v6, %v10531_v2 }
 0x390   :  { %v2787_v9 = vsel %vm2714_vm12, %v2786_v28, %v2782_v45  ;;  %v2832_v21 = vsel %vm2714_vm12, %v2831_v50, %v2827_v29  ;;  %v9148_v29 = vld [vmem:[%s12196_s1] sm:$0xff] }
 0x391   :  { %v2865_v48 = vsel %vm2851_vm13, %v2796_v63, %v2787_v9 }
 0x392   :  { %3131 = vperm.xlu1 %8986, %v10490_v42   ;;  %v2809_v42 = vrot.slane %v2677_v56, %v10531_v2  ;;  %v2866_v43 = vsel %vm2853_vm14, %v2805_v62, %v2865_v48 }
 0x394   :  { %v2698_v15 = vpop.permute.xlu0 %2697  ;;  %v2814_v34 = vsel %vm2714_vm12, %v2813_v5, %v2809_v42  ;;  %v10651_v42 = vld [vmem:[%s12232_s27] ss:$0 sm:$0xff] }
 0x395   :  { %v2695_v10 = vpop.permute.xlu1 %2694  ;;  %v2840_v8 = vrot.slane %v2698_v15, %v10534_v11  ;;  %v2867_v56 = vsel %vm2855_vm15, %v2814_v34, %v2866_v43 }
 0x396   :  { %3095 = vperm.xlu1 %8986, %v10419_v20   ;;  %v9147_v20 = vld [vmem:[%s12187_s7 + $0x8] sm:$0xff]  ;;  %v2836_v0 = vrot.slane %v2695_v10, %v10531_v2  ;;  %v2868_v6 = vsel %vm2857_vm1, %v2823_v22, %v2867_v56 }
 0x397   :  { %v1398_v7 = vadd.f32 %v9147_v20, %v12244_v12  ;;  %v2869_v60 = vsel %vm12172_vm2, %v2832_v21, %v2868_v6 }
 0x398   :  { %v2841_v23 = vsel %vm2714_vm12, %v2840_v8, %v2836_v0 }
 0x399   :  { %v1400_v52 = vmin.f32 %v1398_v7, 1.0  ;;  %v2870_v57 = vsel %vm12171_vm3, %v2841_v23, %v2869_v60 }
 0x39a   :  { %3137 = vperm.xlu1 %8986, %v10496_v36  }
 0x39b   :  { %vm10627_vm8 = vcmp.gt.f32.partialorder %v1400_v52, 0.0 }
 0x39c   :  { %v2704_v36 = vpop.permute.xlu0 %2703 }
 0x39d   :  { %v2849_v1 = vrot.slane %v2704_v36, %v10534_v11  ;;  %v2701_v17 = vpop.permute.xlu1 %2700 }
 0x39e   :  { %3101 = vperm.xlu1 %8986, %v10425_v46   ;;  %v2845_v16 = vrot.slane %v2701_v17, %v10531_v2 }
 0x3a0   :  { %v2850_v46 = vsel %vm2714_vm12, %v2849_v1, %v2845_v16 }
 0x3a1   :  { %v2871_v28 = vsel %vm12170_vm5, %v2850_v46, %v2870_v57 }
 0x3a2   :  { %3143 = vperm.xlu1 %8986, %v10502_v3   ;;  %v2875_v45 = vsel %vm10627_vm8, %v2871_v28, -1e+30  ;;  %v12247_v3 = vpack.i.bf16 %v10457_v37, %v10452_v53 }
 0x3a3   :  { %v2879_v5 = vsel %vm12169_vm0, %v2875_v45, -inf }
 0x3a4   :  { %2880 = vmax.xlane.f32.xlu0 %v2879_v5 }
 0x3a6   :  { %3107 = vperm.xlu1 %8986, %v10431_v13   ;;  %v8415_v13 = vpop.f32.mrb[36].mxu1 }
 0x3aa   :  { %3149 = vperm.xlu1 %8986, %v10508_v27   ;;  %v2977_v27 = vadd.f32 %v8415_v13, %v10651_v42 }
 0x3ae   :  { %3113 = vperm.xlu1 %8986, %v10437_v24   ;;  %v2971_v24 = vpop.f32.mrb[37].mxu1 }
 0x3b2   :  { %3155 = vperm.xlu1 %8986, %v10514_v49   ;;  %v2972_v49 = vadd.f32 %v10651_v42, %v2971_v24 }
 0x3b4   :  { %v8833_v15 = vpack.c.bf16 %v2977_v27, %v2972_v49 }
 0x3b6   :  { %3161 = vperm.xlu1 %8986, %v10520_v19   ;;  %8834 = vmatprep.subr.bf16.mxu1 %v8833_v15 }
 0x3b7   :  { %8836 = vmatpush3.bf16.msra.mxu1 %v8833_v15 }
 0x3ba   :  { %8977 = vrot.lane.b32.xlu0 %v12247_v3, %s9155_s2 }
 0x3be   :  { %3071 = vperm.xlu0 %8987, %v10395_v40  }
 0x3c2   :  { %3080 = vperm.xlu0 %8987, %v10409_v25  }
 0x3c6   :  { %3116 = vperm.xlu0 %8987, %v10446_v31  }
 0x3ca   :  { %3122 = vperm.xlu0 %8987, %v10480_v14  }
 0x3ce   :  { %3086 = vperm.xlu0 %8987, %v10415_v41  }
 0x3d2   :  { %3128 = vperm.xlu0 %8987, %v10493_v58  }
 0x3d6   :  { %3092 = vperm.xlu0 %8987, %v10421_v38   ;;  %v12248_v38 = vmov 0  }
 0x3da   :  { %3134 = vperm.xlu0 %8987, %v10499_v30  }
 0x3de   :  { %3098 = vperm.xlu0 %8987, %v10427_v39  }
 0x3e2   :  { %3140 = vperm.xlu0 %8987, %v10505_v32  }
 0x3e6   :  { %3104 = vperm.xlu0 %8987, %v10433_v61  }
 0x3ea   :  { %3146 = vperm.xlu0 %8987, %v10511_v18  }
 0x3ee   :  { %v2878_v40 = vpop.xlane.xlu1 %2877  ;;  %3110 = vperm.xlu0 %8987, %v10440_v44  }
 0x3ef   :  { %v2882_v25 = vsub.f32 %v10577_v51, %v2878_v40 }
 0x3f1   :  { %v2884_v41 = vmul.f32 1.442695, %v2882_v25 }
 0x3f2   :  { %3152 = vperm.xlu0 %8987, %v10517_v55   ;;  %v8983_v61 = vpop.permute.xlu1 %8982 }
 0x3f3   :  { %9096 = vpow2.f32 %v2884_v41  ;;  %v8985_v59 = vunpack.i.h.bf16 %v8983_v61  ;;  %v8984_v54 = vunpack.i.l.bf16 %v8983_v61 }
 0x3f5   :  { %v8841_v50 = vpack.c.bf16 %v8985_v59, %v8984_v54 }
 0x3f6   :  { %3158 = vperm.xlu0 %8987, %v10523_v35   ;;  %v3069_v31 = vpop.permute.xlu1 %3068 }
 0x3fa   :  { %8998 = vset.pattern.permute.xlu0 %v12248_v38  ;;  %v3075_v53 = vpop.permute.xlu1 %3074 }
 0x3fb   :  { %v3175_v5 = vrot.slane %v3075_v53, %v10531_v2 }
 0x3fd   :  { %v10672_v39 = vpop.eup %9096 }
 0x3fe   :  { %8420 = vmatprep.mubr.msk.f32.mxu1 %vm12169_vm0, %v10672_v39  ;;  %v3078_v37 = vpop.permute.xlu1 %3077 }
 0x3ff   :  { %v3179_v60 = vrot.slane %v3078_v37, %v10534_v11 }
 0x401   :  { %v3180_v25 = vsel %vm2714_vm12, %v3179_v60, %v3175_v5 }
 0x402   :  { %v3084_v14 = vpop.permute.xlu1 %3083 }
 0x403   :  { %v3188_v57 = vrot.slane %v3084_v14, %v10534_v11 }
 0x406   :  { %v10676_v58 = vpop.permute.xlu1 %3119 }
 0x40a   :  { %v10678_v44 = vpop.permute.xlu1 %3125 }
 0x40e   :  { %v3090_v51 = vpop.permute.xlu1 %3089 }
 0x40f   :  { %v3197_v3 = vrot.slane %v3090_v51, %v10534_v11 }
 0x412   :  { %v10680_v20 = vpop.permute.xlu1 %3131 }
 0x416   :  { %v3096_v62 = vpop.permute.xlu1 %3095 }
 0x417   :  { %v3206_v24 = vrot.slane %v3096_v62, %v10534_v11 }
 0x41a   :  { %v10692_v0 = vpop.permute.xlu1 %3137 }
 0x41e   :  { %v3102_v48 = vpop.permute.xlu1 %3101 }
 0x41f   :  { %v3215_v41 = vrot.slane %v3102_v48, %v10534_v11 }
 0x422   :  { %v10696_v52 = vpop.permute.xlu1 %3143 }
 0x426   :  { %v3108_v36 = vpop.permute.xlu1 %3107 }
 0x427   :  { %v3224_v53 = vrot.slane %v3108_v36, %v10534_v11 }
 0x42a   :  { %v10698_v23 = vpop.permute.xlu1 %3149 }
 0x42e   :  { %v3114_v28 = vpop.permute.xlu1 %3113 }
 0x431   :  { %v2881_v30 = vpop.xlane.xlu0 %2880 }
 0x432   :  { %v2883_v32 = vsub.f32 %v2875_v45, %v2881_v30  ;;  %v3251_v30 = vrot.slane %v10678_v44, %v10534_v11 }
 0x434   :  { %v2886_v18 = vmul.f32 1.442695, %v2883_v32 }
 0x435   :  { %v8978_v55 = vpop.permute.xlu0 %8977 }
 0x436   :  { %9098 = vpow2.f32 %v2886_v18  ;;  %v8980_v19 = vunpack.i.h.bf16 %v8978_v55  ;;  %v8979_v35 = vunpack.i.l.bf16 %v8978_v55 }
 0x438   :  { %v8837_v10 = vpack.c.bf16 %v8980_v19, %v8979_v35  ;;  %v3233_v19 = vrot.slane %v3114_v28, %v10534_v11  ;;  %v3156_v35 = vpop.permute.xlu1 %3155 }
 0x43a   :  { %8838 = vmatprep.subr.bf16.mxu1 %v8837_v10 }
 0x43d   :  { %v3072_v12 = vpop.permute.xlu0 %3071 }
 0x43e   :  { %v3170_v17 = vrot.slane %v3072_v12, %v10534_v11 }
 0x440   :  { %v10682_v7 = vpop.eup %9098 }
 0x441   :  { %v3081_v63 = vpop.permute.xlu0 %3080  ;;  %8421 = vmatmul.mubr.msk.f32.vlgmr.msra.gmra.mrb[38].mxu1 %vm12169_vm0, %v10682_v7 }
 0x442   :  { %8840 = vmatpush3.bf16.msra.mxu1 %v8837_v10  ;;  %8431 = vmatprep.mubr.msk.f32.mxu1 %vm1414_vm4, %v9148_v29  ;;  %v3184_v6 = vrot.slane %v3081_v63, %v10531_v2  ;;  %v3269_v29 = vrot.slane %v10692_v0, %v10534_v11 }
 0x443   :  { %8842 = vmatprep.subr.bf16.mxu1 %v8841_v50 }
 0x444   :  { %v3189_v49 = vsel %vm2714_vm12, %v3188_v57, %v3184_v6 }
 0x445   :  { %v10690_v8 = vpop.permute.xlu0 %3116 }
 0x446   :  { %8844 = vmatpush3.bf16.msra.mxu1 %v8841_v50  ;;  %v3238_v54 = vrot.slane %v10690_v8, %v10531_v2  ;;  %v3260_v50 = vrot.slane %v10680_v20, %v10534_v11  ;;  %v3287_v20 = vrot.slane %v10698_v23, %v10534_v11 }
 0x449   :  { %8432 = vmatmul.mubr.msk.f32.vlgmr.msra.gmra.mrb[40].mxu1 %vm1414_vm4, %v10486_v47  ;;  %v3123_v9 = vpop.permute.xlu0 %3122  ;;  %v3166_v47 = vrot.slane %v3069_v31, %v10531_v2  ;;  %v3242_v31 = vrot.slane %v10676_v58, %v10534_v11 }
 0x44a   :  { %v3247_v18 = vrot.slane %v3123_v9, %v10531_v2 }
 0x44b   :  { %v3171_v13 = vsel %vm2714_vm12, %v3170_v17, %v3166_v47 }
 0x44c   :  { %v3307_v37 = vsel %vm2851_vm13, %v3180_v25, %v3171_v13 }
 0x44d   :  { %v3087_v34 = vpop.permute.xlu0 %3086  ;;  %v3308_v32 = vsel %vm2853_vm14, %v3189_v49, %v3307_v37 }
 0x44e   :  { %v3193_v46 = vrot.slane %v3087_v34, %v10531_v2  ;;  %v3252_v34 = vsel %vm2714_vm12, %v3251_v30, %v3247_v18 }
 0x450   :  { %v3198_v61 = vsel %vm2714_vm12, %v3197_v3, %v3193_v46 }
 0x451   :  { %v3129_v22 = vpop.permute.xlu0 %3128  ;;  %v3309_v58 = vsel %vm2855_vm15, %v3198_v61, %v3308_v32  ;;  %v2888_v61 = vsel %vm12169_vm0, %v10672_v39, 0.0 }
 0x452   :  { %v3256_v51 = vrot.slane %v3129_v22, %v10531_v2 }
 0x454   :  { %v3261_v0 = vsel %vm2714_vm12, %v3260_v50, %v3256_v51  ;;  %v3539_v50 = vld [vmem:[%s12069_s12 + $0x10] sm:$0xff] }
 0x455   :  { %v3093_v43 = vpop.permute.xlu0 %3092 }
 0x456   :  { %v3202_v45 = vrot.slane %v3093_v43, %v10531_v2  ;;  %v3278_v43 = vrot.slane %v10696_v52, %v10534_v11  ;;  %v3162_v52 = vpop.permute.xlu1 %3161 }
 0x457   :  { %v3305_v3 = vrot.slane %v3162_v52, %v10534_v11 }
 0x458   :  { %v3207_v14 = vsel %vm2714_vm12, %v3206_v24, %v3202_v45 }
 0x459   :  { %v3135_v21 = vpop.permute.xlu0 %3134  ;;  %v3310_v44 = vsel %vm2857_vm1, %v3207_v14, %v3309_v58 }
 0x45a   :  { %v3265_v12 = vrot.slane %v3135_v21, %v10531_v2 }
 0x45d   :  { %v3099_v56 = vpop.permute.xlu0 %3098 }
 0x45e   :  { %v3211_v27 = vrot.slane %v3099_v56, %v10531_v2  ;;  %v3243_v56 = vsel %vm2714_vm12, %v3242_v31, %v3238_v54 }
 0x45f   :  { %v3314_v47 = vsel %vm2851_vm13, %v3252_v34, %v3243_v56  ;;  %v3629_v34 = vld [vmem:[%s12070_s14] sm:$0xff] }
 0x460   :  { %v3216_v55 = vsel %vm2714_vm12, %v3215_v41, %v3211_v27  ;;  %v3315_v46 = vsel %vm2853_vm14, %v3261_v0, %v3314_v47 }
 0x461   :  { %v3141_v1 = vpop.permute.xlu0 %3140  ;;  %v3311_v9 = vsel %vm12172_vm2, %v3216_v55, %v3310_v44 }
 0x462   :  { %v3274_v62 = vrot.slane %v3141_v1, %v10531_v2  ;;  %v3270_v1 = vsel %vm2714_vm12, %v3269_v29, %v3265_v12 }
 0x463   :  { %v3316_v28 = vsel %vm2855_vm15, %v3270_v1, %v3315_v46 }
 0x464   :  { %v3279_v23 = vsel %vm2714_vm12, %v3278_v43, %v3274_v62  ;;  %v3540_v62 = vld [vmem:[%s12069_s12 + $0x18] sm:$0xff] }
 0x465   :  { %v3105_v16 = vpop.permute.xlu0 %3104  ;;  %v3317_v13 = vsel %vm2857_vm1, %v3279_v23, %v3316_v28  ;;  %v8993_v43 = vpack.i.bf16 %v3540_v62, %v3539_v50  ;;  %v7705_v28 = vld [vmem:[%s12071_s11] ss:$0 sm:$0xff] }
 0x466   :  { %v3220_v15 = vrot.slane %v3105_v16, %v10531_v2  ;;  %v3296_v16 = vrot.slane %v3156_v35, %v10534_v11  ;;  %v2891_v35 = vsel %vm12169_vm0, %v10682_v7, 0.0  ;;  %v3538_v7 = vld [vmem:[%s12069_s12 + $0x8] sm:$0xff] }
 0x468   :  { %v3225_v10 = vsel %vm2714_vm12, %v3224_v53, %v3220_v15 }
 0x469   :  { %v3147_v40 = vpop.permute.xlu0 %3146  ;;  %v3312_v22 = vsel %vm12171_vm3, %v3225_v10, %v3311_v9  ;;  %v10799_v9 = vpack.c.bf16 %v3540_v62, %v3539_v50  ;;  %v12269_v50 = vld [vmem:[#allocation27_spill] sm:$0xff]  ;;  %v12271_v62 = vld [vmem:[#allocation29_spill] sm:$0xff] }
 0x46a   :  { %v3283_v8 = vrot.slane %v3147_v40, %v10531_v2 }
 0x46c   :  { %v3288_v57 = vsel %vm2714_vm12, %v3287_v20, %v3283_v8  ;;  %v3630_v8 = vld [vmem:[%s12070_s14 + $0x8] sm:$0xff] }
 0x46d   :  { %v3111_v59 = vpop.permute.xlu0 %3110  ;;  %v3318_v24 = vsel %vm12172_vm2, %v3288_v57, %v3317_v13 }
 0x46e   :  { %v3229_v63 = vrot.slane %v3111_v59, %v10531_v2 }
 0x470   :  { %v3234_v48 = vsel %vm2714_vm12, %v3233_v19, %v3229_v63  ;;  %v3537_v63 = vld [vmem:[%s12069_s12] sm:$0xff] }
 0x471   :  { %v3153_v21 = vpop.permute.xlu0 %3152  ;;  %v3313_v36 = vsel %vm12170_vm5, %v3234_v48, %v3312_v22  ;;  %v10794_v29 = vpack.c.bf16 %v3538_v7, %v3537_v63  ;;  %v8857_v48 = vpack.c.bf16 %v3630_v8, %v3629_v34  ;;  %v8988_v22 = vpack.i.bf16 %v3538_v7, %v3537_v63  ;;  %v12267_v63 = vld [vmem:[#allocation25_spill] sm:$0xff]  ;;  %v12268_v7 = vld [vmem:[#allocation26_spill] sm:$0xff]  ;;  %v12273_v34 = vld [vmem:[#allocation31_spill] sm:$0xff] }
 0x472   :  { %v3292_v17 = vrot.slane %v3153_v21, %v10531_v2  ;;  %v3323_v6 = vsel %vm10567_vm6, %v3313_v36, -1e+30  ;;  %v12274_v8 = vld [vmem:[#allocation32_spill] sm:$0xff] }
 0x473   :  { %v3325_v60 = vsel %vm12169_vm0, %v3323_v6, -inf }
 0x474   :  { %3326 = vmax.xlane.f32.xlu0 %v3325_v60  ;;  %v3297_v45 = vsel %vm2714_vm12, %v3296_v16, %v3292_v17 }
 0x475   :  { %v3159_v5 = vpop.permute.xlu0 %3158  ;;  %v3319_v15 = vsel %vm12171_vm3, %v3297_v45, %v3318_v24  ;;  %v3631_v24 = vld [vmem:[%s12070_s14 + $0x10] sm:$0xff] }
 0x476   :  { %v3301_v27 = vrot.slane %v3159_v5, %v10531_v2 }
 0x478   :  { %v3306_v49 = vsel %vm2714_vm12, %v3305_v3, %v3301_v27 }
 0x479   :  { %v3320_v40 = vsel %vm12170_vm5, %v3306_v49, %v3319_v15  ;;  %v3632_v49 = vld [vmem:[%s12070_s14 + $0x18] sm:$0xff] }
 0x47a   :  { %v3324_v25 = vsel %vm10627_vm8, %v3320_v40, -1e+30 }
 0x47b   :  { %v3328_v41 = vsel %vm12169_vm0, %v3324_v25, -inf }
 0x47c   :  { %3329 = vmax.xlane.f32.xlu1 %v3328_v41  ;;  %v3715_v41 = vld [vmem:[%s12072_s16] sm:$0xff] }
 0x480   :  { %2889 = vadd.xlane.f32.xlu1 %v2888_v61  ;;  %v3716_v61 = vld [vmem:[%s12072_s16 + $0x8] sm:$0xff] }
 0x48a   :  { %3359 = vrot.lane.b32.xlu0 %v10651_v42, %s9155_s2 }
 0x48e   :  { %8989 = vrot.lane.b32.xlu0 %v8988_v22, %s9155_s2  ;;  %v12276_v22 = vld [vmem:[#allocation34_spill] sm:$0xff] }
 0x501   :  { %v3327_v31 = vpop.xlane.xlu0 %3326 }
 0x502   :  { %v3331_v53 = vsub.f32 %v3323_v6, %v3327_v31  ;;  %v8865_v31 = vpack.c.bf16 %v3716_v61, %v3715_v41 }
 0x504   :  { %v3333_v37 = vmul.f32 1.442695, %v3331_v53  ;;  %v12249_v53 = vld [vmem:[#allocation9_spill] sm:$0xff] }
 0x505   :  { %v3360_v51 = vpop.permute.xlu0 %3359 }
 0x506   :  { %9100 = vpow2.f32 %v3333_v37  ;;  %v12250_v37 = vld [vmem:[#allocation10_spill] sm:$0xff] }
 0x509   :  { %v3330_v14 = vpop.xlane.xlu1 %3329 }
 0x50a   :  { %v3332_v30 = vsub.f32 %v3324_v25, %v3330_v14  ;;  %v8861_v25 = vpack.c.bf16 %v3632_v49, %v3631_v24  ;;  %v12251_v14 = vld [vmem:[#allocation13_spill] sm:$0xff] }
 0x50c   :  { %v3335_v32 = vmul.f32 1.442695, %v3332_v30  ;;  %v12252_v30 = vld [vmem:[#allocation11_spill] sm:$0xff] }
 0x50d   :  { %v2890_v20 = vpop.xlane.xlu1 %2889 }
 0x50e   :  { %9102 = vpow2.f32 %v3335_v32  ;;  %v12253_v32 = vld [vmem:[#allocation16_spill] sm:$0xff] }
 0x510   :  { %v9101_v18 = vpop.eup %9100 }
 0x511   :  { %8438 = vmatprep.mubr.msk.f32.mxu1 %vm12169_vm0, %v9101_v18  ;;  %v3337_v55 = vsel %vm12169_vm0, %v9101_v18, 0.0  ;;  %v12254_v18 = vld [vmem:[#allocation12_spill] sm:$0xff] }
 0x512   :  { %3338 = vadd.xlane.f32.xlu1 %v3337_v55  ;;  %v12255_v55 = vld [vmem:[#allocation19_spill] sm:$0xff] }
 0x514   :  { %v8422_v19 = vpop.f32.mrb[38].mxu1 }
 0x515   :  { %v3052_v39 = vpop.f32.mrb[39].mxu1 }
 0x516   :  { %2892 = vadd.xlane.f32.xlu1 %v2891_v35  ;;  %v12258_v35 = vld [vmem:[#allocation17_spill] sm:$0xff] }
 0x518   :  { %v9103_v42 = vpop.eup %9102 }
 0x519   :  { %v3340_v58 = vsel %vm12169_vm0, %v9103_v42, 0.0 }
 0x51a   :  { %3341 = vadd.xlane.f32.xlu1 %v3340_v58  ;;  %v12260_v58 = vld [vmem:[#allocation20_spill] sm:$0xff] }
 0x51c   :  { %v8433_v10 = vpop.f32.mrb[40].mxu1 }
 0x51d   :  { %v3434_v59 = vadd.f32 %v8433_v10, %v3360_v51  ;;  %v3428_v54 = vpop.f32.mrb[41].mxu1  ;;  %v12262_v10 = vld [vmem:[#allocation7_spill] sm:$0xff] }
 0x51e   :  { %v3429_v44 = vadd.f32 %v3428_v54, %v3360_v51  ;;  %v12261_v51 = vld [vmem:[#allocation21_spill] sm:$0xff]  ;;  %v12264_v54 = vld [vmem:[#allocation22_spill] sm:$0xff] }
 0x520   :  { %v8845_v12 = vpack.c.bf16 %v3434_v59, %v3429_v44  ;;  %v12263_v59 = vld [vmem:[#allocation8_spill] sm:$0xff]  ;;  %v12265_v44 = vld [vmem:[#allocation23_spill] sm:$0xff] }
 0x522   :  { %8846 = vmatprep.subr.bf16.mxu1 %v8845_v12 }
 0x523   :  { %8848 = vmatpush3.bf16.msra.mxu1 %v8845_v12  ;;  %v12266_v12 = vld [vmem:[#allocation24_spill] sm:$0xff] }
 0x524   :  { %8850 = vmatprep.subr.bf16.mxu1 %v10794_v29 }
 0x526   :  { %8439 = vmatmul.mubr.msk.f32.vlgmr.msra.gmra.mrb[42].mxu1 %vm12169_vm0, %v9103_v42  ;;  %v12259_v42 = vld [vmem:[#allocation18_spill] sm:$0xff] }
 0x527   :  { %8852 = vmatpush3.bf16.msra.mxu1 %v10794_v29 }
 0x528   :  { %8854 = vmatprep.subr.bf16.mxu1 %v10799_v9 }
 0x52b   :  { %8856 = vmatpush3.bf16.msra.mxu1 %v10799_v9  ;;  %8994 = vrot.lane.b32.xlu1 %v8993_v43, %s9155_s2  ;;  %v12277_v43 = vld [vmem:[#allocation35_spill] sm:$0xff] }
 0x52c   :  { %8858 = vmatprep.subr.bf16.mxu1 %v8857_v48 }
 0x59f   :  { %v3339_v0 = vpop.xlane.xlu1 %3338 }
 0x5a3   :  { %v2893_v21 = vpop.xlane.xlu1 %2892 }
 0x5a4   :  { %9104 = vrcp.f32 %v2893_v21  ;;  %v4282_v21 = vld [vmem:[%s12073_s17] sm:$0xff] }
 0x5a5   :  { %9106 = vrcp.f32 %v2890_v20  ;;  %v12278_v20 = vld [vmem:[#allocation36_spill] sm:$0xff] }
 0x5a7   :  { %v3342_v36 = vpop.xlane.xlu1 %3341 }
 0x5a8   :  { %9108 = vrcp.f32 %v3342_v36  ;;  %v4283_v36 = vld [vmem:[%s12073_s17 + $0x8] sm:$0xff] }
 0x5a9   :  { %9110 = vrcp.f32 %v3339_v0  ;;  %v12279_v0 = vld [vmem:[#allocation37_spill] sm:$0xff] }
 0x5ab   :  { %v8995_v24 = vpop.permute.xlu1 %8994 }
 0x5ae   :  { %v9105_v56 = vpop.eup %9104 }
 0x5af   :  { %v9107_v1 = vpop.eup %9106  ;;  %v3064_v52 = vmul.f32 %v9105_v56, %v8422_v19  ;;  %v12256_v19 = vld [vmem:[#allocation14_spill] sm:$0xff]  ;;  %v8869_v56 = vpack.c.bf16 %v4283_v36, %v4282_v21  ;;  %v8996_v21 = vunpack.i.l.bf16 %v8995_v24 }
 0x5b0   :  { %v3063_v60 = vmul.f32 %v9107_v1, %v3052_v39  ;;  %v12257_v39 = vld [vmem:[#allocation15_spill] sm:$0xff]  ;;  %v4284_v1 = vld [vmem:[%s12073_s17 + $0x10] sm:$0xff]  ;;  %v12280_v36 = vld [vmem:[#allocation2_spill] sm:$0xff] }
 0x5b1   :  { %8870 = vmatprep.subr.bf16.mxu0 %v8869_v56 }
 0x5b2   :  { %v9109_v17 = vpop.eup %9108  ;;  %8872 = vmatpush3.bf16.msra.mxu0 %v8869_v56 }
 0x5b3   :  { %v9111_v16 = vpop.eup %9110 }
 0x5f9   :  { %v8440_v6 = vpop.f32.mrb[42].mxu1 }
 0x5fa   :  { %v3521_v47 = vmul.f32 %v9109_v17, %v8440_v6  ;;  %v3509_v23 = vpop.f32.mrb[43].mxu1  ;;  %v4285_v17 = vld [vmem:[%s12073_s17 + $0x18] sm:$0xff] }
 0x5fb   :  { %v3520_v46 = vmul.f32 %v9111_v16, %v3509_v23  ;;  %v8873_v6 = vpack.c.bf16 %v4285_v17, %v4284_v1  ;;  %v4286_v16 = vld [vmem:[%s12073_s17 + $0x20] sm:$0xff]  ;;  %v4288_v23 = vld [vmem:[%s12073_s17 + $0x30] sm:$0xff] }
 0x5fc   :  { %v3523_v57 = vadd.f32 %v3521_v47, %v3064_v52  ;;  %v4287_v52 = vld [vmem:[%s12073_s17 + $0x28] sm:$0xff]  ;;  %v10946_v1 = vld [vmem:[%s12075_s13] ss:$0 sm:$0xff] }
 0x5fd   :  { %v3522_v45 = vadd.f32 %v3520_v46, %v3063_v60  ;;  %8874 = vmatprep.subr.bf16.mxu0 %v8873_v6  ;;  %v8877_v47 = vpack.c.bf16 %v4287_v52, %v4286_v16  ;;  %v4289_v60 = vld [vmem:[%s12073_s17 + $0x38] sm:$0xff] }
 0x5fe   :  { %v3525_v5 = vmul.f32 0.5, %v3523_v57  ;;  %8876 = vmatpush3.bf16.msra.mxu0 %v8873_v6  ;;  %v8881_v46 = vpack.c.bf16 %v4289_v60, %v4288_v23  ;;  %v8990_v57 = vpop.permute.xlu0 %8989 }
 0x5ff   :  { %v3524_v3 = vmul.f32 0.5, %v3522_v45  ;;  %8878 = vmatprep.subr.bf16.mxu0 %v8877_v47  ;;  %v8991_v45 = vunpack.i.l.bf16 %v8990_v57 }
 0x600   :  { %v3534_v13 = vadd.f32 %v7705_v28, %v3525_v5 }
 0x601   :  { %v3533_v27 = vadd.f32 %v7705_v28, %v3524_v3  ;;  %v8992_v28 = vunpack.i.h.bf16 %v8990_v57 }
 0x602   :  { %v10824_v40 = vmax.f32 %v3534_v13, 0.0  ;;  %8880 = vmatpush3.bf16.msra.mxu0 %v8877_v47 }
 0x603   :  { %v10822_v15 = vmax.f32 %v3533_v27, 0.0  ;;  %8882 = vmatprep.subr.bf16.mxu0 %v8881_v46  ;;  %v10936_v5 = vpack.c.bf16 %v8992_v28, %v8991_v45  ;;  %v7709_v27 = vld [vmem:[%s12074_s15] ss:$0 sm:$0xff] }
 0x605   :  { %8449 = vmatprep.mubr.msk.f32.mxu1 %vm1414_vm4, %v10822_v15 }
 0x606   :  { %8450 = vmatmul.mubr.msk.f32.vlgmr.msra.gmra.mrb[44].mxu1 %vm1414_vm4, %v10824_v40  ;;  %8884 = vmatpush3.bf16.msra.mxu0 %v8881_v46 }
 0x607   :  { %8860 = vmatpush3.bf16.msra.mxu1 %v8857_v48  ;;  %8460 = vmatprep.mubr.msk.f32.mxu1 %vm1414_vm4, %v10822_v15  ;;  %v12275_v48 = vld [vmem:[#allocation33_spill] sm:$0xff] }
 0x608   :  { %8862 = vmatprep.subr.bf16.mxu1 %v8861_v25  ;;  %8898 = vmatprep.subr.bf16.mxu0 %v10936_v5 }
 0x60b   :  { %8864 = vmatpush3.bf16.msra.mxu1 %v8861_v25 }
 0x60c   :  { %8866 = vmatprep.subr.bf16.mxu1 %v8865_v31 }
 0x60e   :  { %8461 = vmatmul.mubr.msk.f32.vlgmr.msra.gmra.mrb[46].mxu1 %vm1414_vm4, %v10824_v40 }
 0x60f   :  { %8868 = vmatpush3.bf16.msra.mxu1 %v8865_v31  ;;  %8467 = vmatprep.mubr.msk.f32.mxu1 %vm12169_vm0, %v12249_v53  ;;  %v8997_v31 = vunpack.i.h.bf16 %v8995_v24 }
 0x610   :  { %8886 = vmatprep.subr.bf16.mxu1 %v10794_v29 }
 0x611   :  { %v10954_v28 = vpack.c.bf16 %v8997_v31, %v8996_v21 }
 0x612   :  { %8468 = vmatmul.mubr.msk.f32.vlgmr.msra.gmra.mrb[48].mxu1 %vm12169_vm0, %v9851_v26 }
 0x613   :  { %8470 = vmatprep.mubr.msk.f32.mxu1 %vm12169_vm0, %v12250_v37  ;;  %8888 = vmatpush3.bf16.msra.mxu1 %v10794_v29  ;;  %v12270_v29 = vld [vmem:[#allocation28_spill] sm:$0xff] }
 0x614   :  { %8890 = vmatprep.subr.bf16.mxu1 %v10799_v9 }
 0x616   :  { %8471 = vmatmul.mubr.msk.f32.gmra.mrb[50].mxu1 %vm12169_vm0, %v12251_v14 }
 0x617   :  { %8473 = vmatprep.mubr.msk.f32.mxu1 %vm12169_vm0, %v12252_v30  ;;  %8892 = vmatpush3.bf16.msra.mxu1 %v10799_v9  ;;  %v12272_v9 = vld [vmem:[#allocation30_spill] sm:$0xff] }
 0x61a   :  { %8474 = vmatmul.mubr.msk.f32.gmra.mrb[52].mxu1 %vm12169_vm0, %v12253_v32 }
 0x61b   :  { %8476 = vmatprep.mubr.msk.f32.mxu1 %vm12169_vm0, %v12254_v18 }
 0x61e   :  { %8477 = vmatmul.mubr.msk.f32.gmra.mrb[54].mxu1 %vm12169_vm0, %v12255_v55 }
 0x61f   :  { %8479 = vmatprep.mubr.msk.f32.mxu1 %vm12169_vm0, %v12256_v19 }
 0x622   :  { %8480 = vmatmul.mubr.msk.f32.gmra.mrb[56].mxu1 %vm12169_vm0, %v12257_v39 }
 0x623   :  { %8482 = vmatprep.mubr.msk.f32.mxu1 %vm12169_vm0, %v12258_v35 }
 0x626   :  { %8483 = vmatmul.mubr.msk.f32.gmra.mrb[58].mxu1 %vm12169_vm0, %v12259_v42 }
 0x627   :  { %8485 = vmatprep.mubr.msk.f32.mxu1 %vm12169_vm0, %v12260_v58 }
 0x62a   :  { %8486 = vmatmul.mubr.msk.f32.gmra.mrb[60].mxu1 %vm12169_vm0, %v12261_v51 }
 0x62b   :  { %8488 = vmatprep.mubr.msk.f32.mxu1 %vm12169_vm0, %v12262_v10 }
 0x62e   :  { %8489 = vmatmul.mubr.msk.f32.gmra.mrb[62].mxu1 %vm12169_vm0, %v12263_v59 }
 0x62f   :  { %8491 = vmatprep.mubr.msk.f32.mxu1 %vm12169_vm0, %v12264_v54 }
 0x632   :  { %8492 = vmatmul.mubr.msk.f32.gmra.mrb[64].mxu1 %vm12169_vm0, %v12265_v44 }
 0x633   :  { %8494 = vmatprep.mubr.msk.f32.mxu1 %vm12169_vm0, %v12266_v12 }
 0x636   :  { %8495 = vmatmul.mubr.msk.f32.gmra.mrb[66].mxu1 %vm12169_vm0, %v12267_v63 }
 0x637   :  { %8497 = vmatprep.mubr.msk.f32.mxu1 %vm12169_vm0, %v12268_v7 }
 0x63a   :  { %8498 = vmatmul.mubr.msk.f32.gmra.mrb[68].mxu1 %vm12169_vm0, %v12269_v50 }
 0x63b   :  { %8500 = vmatprep.mubr.msk.f32.mxu1 %vm12169_vm0, %v12270_v29 }
 0x63e   :  { %8501 = vmatmul.mubr.msk.f32.gmra.mrb[70].mxu1 %vm12169_vm0, %v12271_v62 }
 0x63f   :  { %8503 = vmatprep.mubr.msk.f32.mxu1 %vm12169_vm0, %v12272_v9 }
 0x642   :  { %8504 = vmatmul.mubr.msk.f32.gmra.mrb[72].mxu1 %vm12169_vm0, %v12273_v34 }
 0x643   :  { %8506 = vmatprep.mubr.msk.f32.mxu1 %vm12169_vm0, %v12274_v8 }
 0x646   :  { %8507 = vmatmul.mubr.msk.f32.gmra.mrb[74].mxu1 %vm12169_vm0, %v12275_v48 }
 0x647   :  { %8509 = vmatprep.mubr.msk.f32.mxu1 %vm12169_vm0, %v12276_v22 }
 0x64a   :  { %8510 = vmatmul.mubr.msk.f32.gmra.mrb[76].mxu1 %vm12169_vm0, %v12277_v43 }
 0x64b   :  { %8512 = vmatprep.mubr.msk.f32.mxu1 %vm12169_vm0, %v12278_v20 }
 0x64e   :  { %8513 = vmatmul.mubr.msk.f32.gmra.mrb[78].mxu1 %vm12169_vm0, %v12279_v0 }
 0x64f   :  { %8587 = vmatprep.mubr.msk.f32.mxu1 %vm1414_vm4, %v10822_v15 }
 0x652   :  { %8588 = vmatmul.mubr.msk.f32.vlgmr.msra.gmra.mrb[80].mxu1 %vm1414_vm4, %v10824_v40 }
 0x6d9   :  { %v8451_v3 = vpop.f32.mrb[44].mxu1 }
 0x6da   :  { %v3620_v13 = vpop.f32.mrb[45].mxu1  ;;  %v10957_v45 = vadd.f32 %v8451_v3, %v10946_v1 }
 0x6e1   :  { %v8462_v49 = vpop.f32.mrb[46].mxu1 }
 0x6e2   :  { %v3712_v25 = vadd.f32 %v8462_v49, %v7709_v27  ;;  %v3706_v41 = vpop.f32.mrb[47].mxu1  ;;  %v12281_v49 = vld [vmem:[#allocation3_spill] sm:$0xff] }
 0x6e3   :  { %v3707_v61 = vadd.f32 %v7709_v27, %v3706_v41  ;;  %v10960_v27 = vadd.f32 %v10946_v1, %v3620_v13 }
 0x6e4   :  { %v4000_v56 = vrot.slane %v3712_v25, %v12280_v36  ;;  %v3993_v52 = vcombine.high %v3712_v25, %v3712_v25 }
 0x6e5   :  { %v3944_v17 = vcombine.high %v3707_v61, %v3707_v61  ;;  %v3951_v6 = vrot.slane %v3707_v61, %v12280_v36  ;;  %v8469_v16 = vpop.f32.mrb[48].mxu1 }
 0x6e6   :  { %v10950_v47 = vrot.slane %v4000_v56, %v12280_v36  ;;  %v3783_v23 = vpop.f32.mrb[49].mxu1  ;;  %v4008_v24 = vcombine.high %v4000_v56, %v4000_v56  ;;  %v10967_v31 = vrot.slane %v3993_v52, %v12280_v36 }
 0x6e7   :  { %v3958_v60 = vrot.slane %v3944_v17, %v12280_v36  ;;  %v3959_v46 = vcombine.high %v3951_v6, %v3951_v6  ;;  %v3967_v57 = vrot.slane %v3951_v6, %v12280_v36 }
 0x6e8   :  { %v4077_v25 = vrot.slane %v10950_v47, %v12281_v49  ;;  %v4009_v59 = vcombine.high %v10967_v31, %v10967_v31 }
 0x6e9   :  { %v3960_v41 = vcombine.high %v3958_v60, %v3958_v60  ;;  %v4045_v61 = vrot.slane %v3967_v57, %v12281_v49  ;;  %v8472_v0 = vpop.f32.mrb[50].mxu1  ;;  %v3981_v17 = vrot.slane %v3959_v46, %v12280_v36  ;;  %v3989_v20 = vcombine.high %v3967_v57, %v3967_v57 }
 0x6ea   :  { %v3793_v21 = vpop.f32.mrb[51].mxu1  ;;  %v3974_v3 = vrot.slane %v3958_v60, %v12280_v36  ;;  %v10971_v13 = vadd.f32 %v4077_v25, %v10957_v45  ;;  %v10974_v56 = vadd.f32 %v4077_v25, %v10960_v27  ;;  %v10985_v60 = vrot.slane %v4008_v24, %v12280_v36 }
 0x6eb   :  { %v4123_v6 = vadd.f32 %v4045_v61, %v10957_v45  ;;  %v4122_v43 = vadd.f32 %v4045_v61, %v10960_v27  ;;  %v4049_v22 = vrot.slane %v3981_v17, %v12281_v49  ;;  %v4053_v46 = vrot.slane %v3989_v20, %v12281_v49 }
 0x6ec   :  { %v3991_v57 = vcombine.high %v3981_v17, %v3981_v17  ;;  %v4061_v52 = vrot.slane %v3974_v3, %v12281_v49  ;;  %v10982_v48 = vrot.slane %v3960_v41, %v12280_v36  ;;  %v3990_v54 = vcombine.high %v3974_v3, %v3974_v3 }
 0x6ed   :  { %v4155_v8 = vadd.f32 %v8469_v16, %v4123_v6  ;;  %v4154_v25 = vadd.f32 %v4122_v43, %v3783_v23  ;;  %v4125_v34 = vadd.f32 %v4049_v22, %v10957_v45  ;;  %v4124_v9 = vadd.f32 %v4049_v22, %v10960_v27  ;;  %v8475_v61 = vpop.f32.mrb[52].mxu1 }
 0x6ee   :  { %v4127_v62 = vadd.f32 %v4053_v46, %v10957_v45  ;;  %v3803_v29 = vpop.f32.mrb[53].mxu1  ;;  %v4126_v20 = vadd.f32 %v4053_v46, %v10960_v27  ;;  %v4057_v17 = vrot.slane %v3991_v57, %v12281_v49  ;;  %v4131_v41 = vadd.f32 %v4061_v52, %v10957_v45 }
 0x6ef   :  { %vm4187_vm9 = vcmp.gt.f32.partialorder %v4155_v8, 0.0  ;;  %v4219_v50 = vmul.f32 0.2, %v4155_v8  ;;  %vm4186_vm10 = vcmp.gt.f32.partialorder %v4154_v25, 0.0  ;;  %v4218_v24 = vmul.f32 0.2, %v4154_v25 }
 0x6f0   :  { %v4157_v16 = vadd.f32 %v8472_v0, %v4125_v34  ;;  %v4156_v43 = vadd.f32 %v4124_v9, %v3793_v21  ;;  %v4159_v23 = vadd.f32 %v8475_v61, %v4127_v62  ;;  %v4158_v6 = vadd.f32 %v4126_v20, %v3803_v29 }
 0x6f1   :  { %v4251_v7 = vsel %vm4187_vm9, %v4155_v8, %v4219_v50  ;;  %v8478_v22 = vpop.f32.mrb[54].mxu1  ;;  %v4129_v63 = vadd.f32 %v4057_v17, %v10957_v45  ;;  %v4128_v12 = vadd.f32 %v4057_v17, %v10960_v27  ;;  %v4250_v44 = vsel %vm4186_vm10, %v4154_v25, %v4218_v24 }
 0x6f2   :  { %v4221_v46 = vmul.f32 0.2, %v4157_v16  ;;  %vm4188_vm11 = vcmp.gt.f32.partialorder %v4156_v43, 0.0  ;;  %v4220_v57 = vmul.f32 0.2, %v4156_v43  ;;  %8531 = vmatprep.mubr.msk.f32.mxu0 %vm2253_vm7, %v4250_v44  ;;  %vm4189_vm0 = vcmp.gt.f32.partialorder %v4157_v16, 0.0 }
 0x6f3   :  { %v4222_v9 = vmul.f32 0.2, %v4158_v6  ;;  %8532 = vmatmul.mubr.msk.f32.vlgmr.msra.gmra.mrb[64].mxu0 %vm2253_vm7, %v4251_v7  ;;  %vm4190_vm9 = vcmp.gt.f32.partialorder %v4158_v6, 0.0  ;;  %v4161_v50 = vadd.f32 %v8478_v22, %v4129_v63  ;;  %v3813_v29 = vpop.f32.mrb[55].mxu1  ;;  %v4130_v34 = vadd.f32 %v4061_v52, %v10960_v27 }
 0x6f4   :  { %v4252_v62 = vsel %vm4188_vm11, %v4156_v43, %v4220_v57  ;;  %8900 = vmatpush3.bf16.msra.mxu0 %v10936_v5  ;;  %v4223_v8 = vmul.f32 0.2, %v4159_v23  ;;  %v4160_v0 = vadd.f32 %v4128_v12, %v3813_v29  ;;  %v4065_v21 = vrot.slane %v10982_v48, %v12281_v49 }
 0x6f5   :  { %8534 = vmatprep.mubr.msk.f32.mxu0 %vm2253_vm7, %v4252_v62  ;;  %v8481_v44 = vpop.f32.mrb[56].mxu1  ;;  %v4081_v3 = vrot.slane %v10985_v60, %v12281_v49  ;;  %vm4191_vm10 = vcmp.gt.f32.partialorder %v4159_v23, 0.0  ;;  %v4253_v25 = vsel %vm4189_vm0, %v4157_v16, %v4221_v46  ;;  %v4069_v52 = vrot.slane %v3990_v54, %v12281_v49  ;;  %8902 = vmatprep.subr.bf16.mxu0 %v10954_v28 }
 0x6f6   :  { %v4163_v7 = vadd.f32 %v8481_v44, %v4131_v41  ;;  %v3823_v63 = vpop.f32.mrb[57].mxu1  ;;  %v4224_v5 = vmul.f32 0.2, %v4160_v0  ;;  %v4254_v61 = vsel %vm4190_vm9, %v4158_v6, %v4222_v9  ;;  %v4133_v20 = vadd.f32 %v4065_v21, %v10957_v45 }
 0x6f7   :  { %v4162_v12 = vadd.f32 %v4130_v34, %v3823_v63  ;;  %8535 = vmatmul.mubr.msk.f32.gmra.mrb[66].mxu0 %vm2253_vm7, %v4253_v25  ;;  %vm4192_vm11 = vcmp.gt.f32.partialorder %v4160_v0, 0.0  ;;  %v4132_v17 = vadd.f32 %v4065_v21, %v10960_v27  ;;  %v4135_v41 = vadd.f32 %v4069_v52, %v10957_v45 }
 0x6f8   :  { %8537 = vmatprep.mubr.msk.f32.mxu0 %vm2253_vm7, %v4254_v61  ;;  %v4038_v54 = vcombine.high %v10950_v47, %v10950_v47  ;;  %8904 = vmatpush3.bf16.msra.mxu0 %v10954_v28  ;;  %vm4193_vm0 = vcmp.gt.f32.partialorder %v4161_v50, 0.0  ;;  %v4225_v24 = vmul.f32 0.2, %v4161_v50  ;;  %v4255_v43 = vsel %vm4191_vm10, %v4159_v23, %v4223_v8 }
 0x6f9   :  { %v8484_v16 = vpop.f32.mrb[58].mxu1  ;;  %v4134_v6 = vadd.f32 %v4069_v52, %v10960_v27  ;;  %vm4195_vm9 = vcmp.gt.f32.partialorder %v4163_v7, 0.0  ;;  %v4226_v22 = vmul.f32 0.2, %v4162_v12  ;;  %v3992_v9 = vcombine.high %v10982_v48, %v10982_v48 }
 0x6fa   :  { %v4165_v46 = vadd.f32 %v8484_v16, %v4133_v20  ;;  %v3833_v57 = vpop.f32.mrb[59].mxu1  ;;  %v4256_v47 = vsel %vm4192_vm11, %v4160_v0, %v4224_v5  ;;  %v11025_v28 = vadd.f32 %v4081_v3, %v10957_v45  ;;  %v11028_v62 = vadd.f32 %v4081_v3, %v10960_v27 }
 0x6fb   :  { %v4164_v29 = vadd.f32 %v4132_v17, %v3833_v57  ;;  %8538 = vmatmul.mubr.msk.f32.gmra.mrb[68].mxu0 %vm2253_vm7, %v4255_v43  ;;  %v4227_v23 = vmul.f32 0.2, %v4163_v7  ;;  %vm4194_vm10 = vcmp.gt.f32.partialorder %v4162_v12, 0.0  ;;  %v4073_v34 = vrot.slane %v3992_v9, %v12281_v49 }
 0x6fc   :  { %8540 = vmatprep.mubr.msk.f32.mxu0 %vm2253_vm7, %v4256_v47  ;;  %v4085_v8 = vrot.slane %v4038_v54, %v12281_v49  ;;  %v4257_v21 = vsel %vm4193_vm0, %v4161_v50, %v4225_v24  ;;  %v4040_v0 = vcombine.high %v10985_v60, %v10985_v60  ;;  %v4023_v63 = vrot.slane %v10967_v31, %v12280_v36 }
 0x6fd   :  { %v4228_v48 = vmul.f32 0.2, %v4164_v29  ;;  %v8487_v44 = vpop.f32.mrb[60].mxu1  ;;  %vm4196_vm11 = vcmp.gt.f32.partialorder %v4164_v29, 0.0  ;;  %v4137_v52 = vadd.f32 %v4073_v34, %v10957_v45  ;;  %v4136_v5 = vadd.f32 %v4073_v34, %v10960_v27 }
 0x6fe   :  { %v4167_v3 = vadd.f32 %v8487_v44, %v4135_v41  ;;  %v3843_v25 = vpop.f32.mrb[61].mxu1  ;;  %v4258_v20 = vsel %vm4194_vm10, %v4162_v12, %v4226_v22  ;;  %v4143_v50 = vadd.f32 %v4085_v8, %v10957_v45  ;;  %v11044_v17 = vadd.f32 %v4085_v8, %v10960_v27 }
 0x6ff   :  { %v4166_v61 = vadd.f32 %v4134_v6, %v3843_v25  ;;  %8541 = vmatmul.mubr.msk.f32.gmra.mrb[70].mxu0 %vm2253_vm7, %v4257_v21  ;;  %vm4197_vm0 = vcmp.gt.f32.partialorder %v4165_v46, 0.0  ;;  %v4259_v60 = vsel %vm4195_vm9, %v4163_v7, %v4227_v23  ;;  %v4089_v41 = vrot.slane %v4040_v0, %v12281_v49 }
 0x700   :  { %8543 = vmatprep.mubr.msk.f32.mxu0 %vm2253_vm7, %v4258_v20  ;;  %v4093_v54 = vrot.slane %v4023_v63, %v12281_v49  ;;  %v4229_v24 = vmul.f32 0.2, %v4165_v46  ;;  %v4260_v43 = vsel %vm4196_vm11, %v4164_v29, %v4228_v48  ;;  %v4037_v12 = vrot.slane %v4009_v59, %v12280_v36 }
 0x701   :  { %v8490_v16 = vpop.f32.mrb[62].mxu1  ;;  %v4039_v6 = vcombine.high %v4023_v63, %v4023_v63  ;;  %v4230_v22 = vmul.f32 0.2, %v4166_v61  ;;  %v4145_v47 = vadd.f32 %v4089_v41, %v10957_v45  ;;  %v4144_v7 = vadd.f32 %v4089_v41, %v10960_v27 }
 0x702   :  { %v4169_v57 = vadd.f32 %v8490_v16, %v4137_v52  ;;  %v3853_v9 = vpop.f32.mrb[63].mxu1  ;;  %vm4198_vm9 = vcmp.gt.f32.partialorder %v4166_v61, 0.0  ;;  %v11059_v34 = vadd.f32 %v4093_v54, %v10957_v45  ;;  %v11062_v29 = vadd.f32 %v4093_v54, %v10960_v27 }
 0x703   :  { %v4168_v23 = vadd.f32 %v4136_v5, %v3853_v9  ;;  %8544 = vmatmul.mubr.msk.f32.gmra.mrb[72].mxu0 %vm2253_vm7, %v4259_v60  ;;  %v4097_v59 = vrot.slane %v4037_v12, %v12281_v49  ;;  %v4101_v31 = vrot.slane %v4039_v6, %v12281_v49  ;;  %vm4199_vm10 = vcmp.gt.f32.partialorder %v4167_v3, 0.0 }
 0x704   :  { %8546 = vmatprep.mubr.msk.f32.mxu0 %vm2253_vm7, %v4260_v43  ;;  %v4231_v8 = vmul.f32 0.2, %v4167_v3  ;;  %v4261_v44 = vsel %vm4197_vm0, %v4165_v46, %v4229_v24  ;;  %v4041_v21 = vcombine.high %v4037_v12, %v4037_v12  ;;  %v4262_v25 = vsel %vm4198_vm9, %v4166_v61, %v4230_v22 }
 0x705   :  { %v8493_v48 = vpop.f32.mrb[64].mxu1  ;;  %v4149_v52 = vadd.f32 %v4097_v59, %v10957_v45  ;;  %v11071_v5 = vadd.f32 %v4097_v59, %v10960_v27  ;;  %v4232_v20 = vmul.f32 0.2, %v4168_v23  ;;  %v11076_v41 = vadd.f32 %v4101_v31, %v10957_v45 }
 0x706   :  { %v4171_v0 = vadd.f32 %v8493_v48, %v10971_v13  ;;  %v3863_v63 = vpop.f32.mrb[65].mxu1  ;;  %v11079_v46 = vadd.f32 %v4101_v31, %v10960_v27  ;;  %vm4200_vm11 = vcmp.gt.f32.partialorder %v4168_v23, 0.0  ;;  %v4105_v13 = vrot.slane %v4041_v21, %v12281_v49 }
 0x707   :  { %v4170_v60 = vadd.f32 %v10974_v56, %v3863_v63  ;;  %8547 = vmatmul.mubr.msk.f32.gmra.mrb[74].mxu0 %vm2253_vm7, %v4261_v44  ;;  %v4263_v54 = vsel %vm4199_vm10, %v4167_v3, %v4231_v8  ;;  %v4233_v24 = vmul.f32 0.2, %v4169_v57  ;;  %vm4201_vm0 = vcmp.gt.f32.partialorder %v4169_v57, 0.0 }
 0x708   :  { %8549 = vmatprep.mubr.msk.f32.mxu0 %vm2253_vm7, %v4262_v25  ;;  %v11086_v43 = vadd.f32 %v4105_v13, %v10957_v45  ;;  %v11089_v12 = vadd.f32 %v4105_v13, %v10960_v27  ;;  %v4264_v9 = vsel %vm4200_vm11, %v4168_v23, %v4232_v20  ;;  %v4235_v59 = vmul.f32 0.2, %v4171_v0 }
 0x709   :  { %v8496_v61 = vpop.f32.mrb[66].mxu1  ;;  %v4234_v6 = vmul.f32 0.2, %v4170_v60  ;;  %vm4202_vm9 = vcmp.gt.f32.partialorder %v4170_v60, 0.0  ;;  %v4265_v8 = vsel %vm4201_vm0, %v4169_v57, %v4233_v24  ;;  %vm4203_vm10 = vcmp.gt.f32.partialorder %v4171_v0, 0.0 }
 0x70a   :  { %v4173_v16 = vadd.f32 %v8496_v61, %v11025_v28  ;;  %v3873_v56 = vpop.f32.mrb[67].mxu1  ;;  %v4267_v63 = vsel %vm4203_vm10, %v4171_v0, %v4235_v59 }
 0x70b   :  { %v4172_v22 = vadd.f32 %v11028_v62, %v3873_v56  ;;  %8550 = vmatmul.mubr.msk.f32.gmra.mrb[76].mxu0 %vm2253_vm7, %v4263_v54  ;;  %v4266_v48 = vsel %vm4202_vm9, %v4170_v60, %v4234_v6 }
 0x70c   :  { %8552 = vmatprep.mubr.msk.f32.mxu0 %vm2253_vm7, %v4264_v9  ;;  %v4237_v23 = vmul.f32 0.2, %v4173_v16  ;;  %vm4205_vm11 = vcmp.gt.f32.partialorder %v4173_v16, 0.0 }
 0x70d   :  { %v8499_v3 = vpop.f32.mrb[68].mxu1  ;;  %v4236_v45 = vmul.f32 0.2, %v4172_v22  ;;  %vm4204_vm5 = vcmp.gt.f32.partialorder %v4172_v22, 0.0 }
 0x70e   :  { %v4175_v28 = vadd.f32 %v8499_v3, %v4143_v50  ;;  %v3883_v31 = vpop.f32.mrb[69].mxu1  ;;  %v4269_v61 = vsel %vm4205_vm11, %v4173_v16, %v4237_v23 }
 0x70f   :  { %v4174_v27 = vadd.f32 %v11044_v17, %v3883_v31  ;;  %8553 = vmatmul.mubr.msk.f32.gmra.mrb[78].mxu0 %vm2253_vm7, %v4265_v8  ;;  %v4268_v57 = vsel %vm4204_vm5, %v4172_v22, %v4236_v45 }
 0x710   :  { %8555 = vmatprep.mubr.msk.f32.mxu0 %vm2253_vm7, %v4266_v48  ;;  %v4239_v20 = vmul.f32 0.2, %v4175_v28  ;;  %vm4207_vm9 = vcmp.gt.f32.partialorder %v4175_v28, 0.0 }
 0x711   :  { %v8502_v62 = vpop.f32.mrb[70].mxu1  ;;  %v4238_v25 = vmul.f32 0.2, %v4174_v27  ;;  %vm4206_vm0 = vcmp.gt.f32.partialorder %v4174_v27, 0.0 }
 0x712   :  { %v4177_v44 = vadd.f32 %v8502_v62, %v4145_v47  ;;  %v3893_v21 = vpop.f32.mrb[71].mxu1  ;;  %v4271_v22 = vsel %vm4207_vm9, %v4175_v28, %v4239_v20 }
 0x713   :  { %v4176_v50 = vadd.f32 %v4144_v7, %v3893_v21  ;;  %8556 = vmatmul.mubr.msk.f32.gmra.mrb[80].mxu0 %vm2253_vm7, %v4267_v63  ;;  %v4270_v0 = vsel %vm4206_vm0, %v4174_v27, %v4238_v25 }
 0x714   :  { %8558 = vmatprep.mubr.msk.f32.mxu0 %vm2253_vm7, %v4268_v57  ;;  %v4241_v24 = vmul.f32 0.2, %v4177_v44  ;;  %vm4209_vm5 = vcmp.gt.f32.partialorder %v4177_v44, 0.0 }
 0x715   :  { %v8505_v17 = vpop.f32.mrb[72].mxu1  ;;  %v4240_v54 = vmul.f32 0.2, %v4176_v50  ;;  %vm4208_vm10 = vcmp.gt.f32.partialorder %v4176_v50, 0.0 }
 0x716   :  { %v4179_v60 = vadd.f32 %v8505_v17, %v11059_v34  ;;  %v3903_v13 = vpop.f32.mrb[73].mxu1  ;;  %v4273_v8 = vsel %vm4209_vm5, %v4177_v44, %v4241_v24 }
 0x717   :  { %v4178_v47 = vadd.f32 %v11062_v29, %v3903_v13  ;;  %8559 = vmatmul.mubr.msk.f32.gmra.mrb[82].mxu0 %vm2253_vm7, %v4269_v61  ;;  %v4272_v16 = vsel %vm4208_vm10, %v4176_v50, %v4240_v54 }
 0x718   :  { %8561 = vmatprep.mubr.msk.f32.mxu0 %vm2253_vm7, %v4270_v0  ;;  %v4243_v3 = vmul.f32 0.2, %v4179_v60  ;;  %vm4211_vm0 = vcmp.gt.f32.partialorder %v4179_v60, 0.0 }
 0x719   :  { %v8508_v7 = vpop.f32.mrb[74].mxu1  ;;  %v4242_v9 = vmul.f32 0.2, %v4178_v47  ;;  %vm4210_vm11 = vcmp.gt.f32.partialorder %v4178_v47, 0.0 }
 0x71a   :  { %v4181_v56 = vadd.f32 %v8508_v7, %v4149_v52  ;;  %v3913_v6 = vpop.f32.mrb[75].mxu1  ;;  %v4275_v23 = vsel %vm4211_vm0, %v4179_v60, %v4243_v3 }
 0x71b   :  { %v4180_v34 = vadd.f32 %v11071_v5, %v3913_v6  ;;  %8562 = vmatmul.mubr.msk.f32.gmra.mrb[84].mxu0 %vm2253_vm7, %v4271_v22  ;;  %v4274_v45 = vsel %vm4210_vm11, %v4178_v47, %v4242_v9 }
 0x71c   :  { %8564 = vmatprep.mubr.msk.f32.mxu0 %vm2253_vm7, %v4272_v16  ;;  %v4245_v27 = vmul.f32 0.2, %v4181_v56  ;;  %vm4213_vm10 = vcmp.gt.f32.partialorder %v4181_v56, 0.0 }
 0x71d   :  { %v8511_v29 = vpop.f32.mrb[76].mxu1  ;;  %v4244_v52 = vmul.f32 0.2, %v4180_v34  ;;  %vm4212_vm9 = vcmp.gt.f32.partialorder %v4180_v34, 0.0 }
 0x71e   :  { %v4183_v59 = vadd.f32 %v8511_v29, %v11076_v41  ;;  %v3923_v31 = vpop.f32.mrb[77].mxu1  ;;  %v4277_v57 = vsel %vm4213_vm10, %v4181_v56, %v4245_v27  ;;  %v12282_v56 = vmov 1   ;;  %vm12283_vm10 = vcmask 1047559  }
 0x71f   :  { %v4182_v28 = vadd.f32 %v11079_v46, %v3923_v31  ;;  %8565 = vmatmul.mubr.msk.f32.gmra.mrb[86].mxu0 %vm2253_vm7, %v4273_v8  ;;  %v4276_v21 = vsel %vm4212_vm9, %v4180_v34, %v4244_v52 }
 0x720   :  { %8567 = vmatprep.mubr.msk.f32.mxu0 %vm2253_vm7, %v4274_v45  ;;  %v4247_v63 = vmul.f32 0.2, %v4183_v59  ;;  %vm4215_vm11 = vcmp.gt.f32.partialorder %v4183_v59, 0.0 }
 0x721   :  { %v8514_v5 = vpop.f32.mrb[78].mxu1  ;;  %v4246_v41 = vmul.f32 0.2, %v4182_v28  ;;  %vm4214_vm5 = vcmp.gt.f32.partialorder %v4182_v28, 0.0 }
 0x722   :  { %v4185_v48 = vadd.f32 %v8514_v5, %v11086_v43  ;;  %v3933_v62 = vpop.f32.mrb[79].mxu1  ;;  %v4279_v13 = vsel %vm4215_vm11, %v4183_v59, %v4247_v63  ;;  %vm12285_vm11 = vmmov %vm12283_vm10 }
 0x723   :  { %v4184_v44 = vadd.f32 %v11089_v12, %v3933_v62  ;;  %8568 = vmatmul.mubr.msk.f32.gmra.mrb[88].mxu0 %vm2253_vm7, %v4275_v23  ;;  %v4278_v20 = vsel %vm4214_vm5, %v4182_v28, %v4246_v41  ;;  %vm12284_vm5 = vcmask 130048  }
 0x724   :  { %8570 = vmatprep.mubr.msk.f32.mxu0 %vm2253_vm7, %v4276_v21  ;;  %v4249_v60 = vmul.f32 0.2, %v4185_v48  ;;  %vm4217_vm9 = vcmp.gt.f32.partialorder %v4185_v48, 0.0 }
 0x725   :  { %v8589_v46 = vpop.f32.mrb[80].mxu1  ;;  %v4248_v43 = vmul.f32 0.2, %v4184_v44  ;;  %vm4216_vm0 = vcmp.gt.f32.partialorder %v4184_v44, 0.0 }
 0x726   :  { %v5002_v25 = vadd.f32 %v8589_v46, %v10946_v1  ;;  %v4996_v50 = vpop.f32.mrb[81].mxu1  ;;  %v4281_v54 = vsel %vm4217_vm9, %v4185_v48, %v4249_v60  ;;  %vm12287_vm9 = vmmov %vm12283_vm10 }
 0x727   :  { %v4997_v17 = vadd.f32 %v10946_v1, %v4996_v50  ;;  %8571 = vmatmul.mubr.msk.f32.gmra.mrb[90].mxu0 %vm2253_vm7, %v4277_v57  ;;  %v4280_v61 = vsel %vm4216_vm0, %v4184_v44, %v4248_v43  ;;  %vm12286_vm0 = vmmov %vm12284_vm5 }
 0x728   :  { %8573 = vmatprep.mubr.msk.f32.mxu0 %vm2253_vm7, %v4278_v20 }
 0x729   :  { %v8893_v12 = vpack.c.bf16 %v5002_v25, %v4997_v17 }
 0x72b   :  { %8574 = vmatmul.mubr.msk.f32.gmra.mrb[92].mxu0 %vm2253_vm7, %v4279_v13  ;;  %8894 = vmatprep.subr.bf16.mxu1 %v8893_v12 }
 0x72c   :  { %8576 = vmatprep.mubr.msk.f32.mxu0 %vm2253_vm7, %v4280_v61  ;;  %8896 = vmatpush3.bf16.msra.mxu1 %v8893_v12 }
 0x72f   :  { %8577 = vmatmul.mubr.msk.f32.gmra.mrb[94].mxu0 %vm2253_vm7, %v4281_v54 }
 0x730   :  { %8605 = vmatprep.mubr.msk.f32.mxu0 %vm1414_vm4, %v10822_v15 }
 0x733   :  { %8606 = vmatmul.mubr.msk.f32.vlgmr.msra.gmra.mrb[96].mxu0 %vm1414_vm4, %v10824_v40 }
 0x7c6   :  { %v8533_v1 = vpop.f32.mrb[64].mxu0 }
 0x7c7   :  { %5096 = vperm.xlu1 %8986, %v8533_v1   ;;  %4647 = vperm.xlu0 %8998, %v8533_v1   ;;  %v4452_v47 = vpop.f32.mrb[65].mxu0 }
 0x7ca   :  { %v8536_v0 = vpop.f32.mrb[66].mxu0 }
 0x7cb   :  { %9000 = vset.pattern.permute.xlu1 %v12248_v38  ;;  %4644 = vperm.xlu0 %8998, %v4452_v47   ;;  %v4462_v7 = vpop.f32.mrb[67].mxu0 }
 0x7cc   :  { %4653 = vperm.xlu1 %9000, %v8536_v0  }
 0x7ce   :  { %v8539_v24 = vpop.f32.mrb[68].mxu0 }
 0x7cf   :  { %8999 = vset.pattern.permute.xlu0 %v12282_v56  ;;  %v4472_v6 = vpop.f32.mrb[69].mxu0 }
 0x7d0   :  { %5093 = vperm.xlu0 %8999, %v4452_v47   ;;  %9002 = vset.pattern.permute.xlu1 %v12282_v56 }
 0x7d1   :  { %5099 = vperm.xlu1 %9002, %v4462_v7  }
 0x7d2   :  { %v8542_v15 = vpop.f32.mrb[70].mxu0 }
 0x7d3   :  { %v4482_v40 = vpop.f32.mrb[71].mxu0 }
 0x7d4   :  { %5102 = vperm.xlu0 %8999, %v8536_v0  }
 0x7d5   :  { %9003 = vset.pattern.permute.xlu1 %v12248_v38 }
 0x7d6   :  { %4659 = vperm.xlu1 %9003, %v8539_v24   ;;  %v8545_v22 = vpop.f32.mrb[72].mxu0 }
 0x7d7   :  { %v4492_v9 = vpop.f32.mrb[73].mxu0 }
 0x7d8   :  { %9001 = vset.pattern.permute.xlu0 %v12248_v38 }
 0x7d9   :  { %4650 = vperm.xlu0 %9001, %v4462_v7  }
 0x7da   :  { %9004 = vset.pattern.permute.xlu1 %v12282_v56  ;;  %v8548_v34 = vpop.f32.mrb[74].mxu0 }
 0x7db   :  { %5108 = vperm.xlu1 %9004, %v8539_v24   ;;  %v4502_v16 = vpop.f32.mrb[75].mxu0 }
 0x7dd   :  { %4656 = vperm.xlu0 %9001, %v4472_v6  }
 0x7de   :  { %v8551_v29 = vpop.f32.mrb[76].mxu0 }
 0x7df   :  { %9006 = vset.pattern.permute.xlu1 %v12248_v38  ;;  %v4512_v3 = vpop.f32.mrb[77].mxu0 }
 0x7e0   :  { %4665 = vperm.xlu1 %9006, %v8542_v15  }
 0x7e1   :  { %9005 = vset.pattern.permute.xlu0 %v12282_v56 }
 0x7e2   :  { %5105 = vperm.xlu0 %9005, %v4472_v6   ;;  %v8554_v59 = vpop.f32.mrb[78].mxu0 }
 0x7e3   :  { %v4522_v31 = vpop.f32.mrb[79].mxu0 }
 0x7e4   :  { %9007 = vset.pattern.permute.xlu1 %v12282_v56 }
 0x7e5   :  { %5114 = vperm.xlu1 %9007, %v8542_v15  }
 0x7e6   :  { %9008 = vset.pattern.permute.xlu0 %v12248_v38  ;;  %v8557_v8 = vpop.f32.mrb[80].mxu0 }
 0x7e7   :  { %4662 = vperm.xlu0 %9008, %v4482_v40   ;;  %v4532_v52 = vpop.f32.mrb[81].mxu0 }
 0x7e9   :  { %9010 = vset.pattern.permute.xlu1 %v12248_v38 }
 0x7ea   :  { %4671 = vperm.xlu1 %9010, %v8545_v22   ;;  %v8560_v28 = vpop.f32.mrb[82].mxu0 }
 0x7eb   :  { %9009 = vset.pattern.permute.xlu0 %v12282_v56  ;;  %v4542_v45 = vpop.f32.mrb[83].mxu0 }
 0x7ec   :  { %5111 = vperm.xlu0 %9009, %v4482_v40  }
 0x7ee   :  { %9011 = vset.pattern.permute.xlu1 %v12282_v56  ;;  %v8563_v5 = vpop.f32.mrb[84].mxu0 }
 0x7ef   :  { %5120 = vperm.xlu1 %9011, %v8545_v22   ;;  %v4552_v27 = vpop.f32.mrb[85].mxu0 }
 0x7f0   :  { %9012 = vset.pattern.permute.xlu0 %v12248_v38 }
 0x7f1   :  { %4668 = vperm.xlu0 %9012, %v4492_v9  }
 0x7f2   :  { %v11139_v48 = vpop.f32.mrb[86].mxu0 }
 0x7f3   :  { %5117 = vperm.xlu1 %9011, %v4492_v9   ;;  %v4562_v62 = vpop.f32.mrb[87].mxu0 }
 0x7f5   :  { %9014 = vset.pattern.permute.xlu0 %v12282_v56 }
 0x7f6   :  { %5126 = vperm.xlu0 %9014, %v8548_v34   ;;  %v11142_v23 = vpop.f32.mrb[88].mxu0 }
 0x7f7   :  { %9013 = vset.pattern.permute.xlu1 %v12248_v38  ;;  %v11145_v41 = vpop.f32.mrb[89].mxu0 }
 0x7f8   :  { %4677 = vperm.xlu1 %9013, %v8548_v34  }
 0x7fa   :  { %9015 = vset.pattern.permute.xlu0 %v12248_v38  ;;  %v11148_v44 = vpop.f32.mrb[90].mxu0 }
 0x7fb   :  { %4674 = vperm.xlu0 %9015, %v4502_v16   ;;  %v11150_v21 = vpop.f32.mrb[91].mxu0 }
 0x7fc   :  { %9016 = vset.pattern.permute.xlu1 %v12282_v56 }
 0x7fd   :  { %5123 = vperm.xlu1 %9016, %v4502_v16  }
 0x7fe   :  { %v11153_v46 = vpop.f32.mrb[92].mxu0 }
 0x7ff   :  { %4683 = vperm.xlu0 %9015, %v8551_v29   ;;  %v11155_v63 = vpop.f32.mrb[93].mxu0 }
 0x801   :  { %9018 = vset.pattern.permute.xlu1 %v12248_v38 }
 0x802   :  { %4680 = vperm.xlu1 %9018, %v4512_v3   ;;  %v11158_v25 = vpop.f32.mrb[94].mxu0 }
 0x803   :  { %9017 = vset.pattern.permute.xlu0 %v12282_v56  ;;  %v11161_v50 = vpop.f32.mrb[95].mxu0 }
 0x804   :  { %5132 = vperm.xlu0 %9017, %v8551_v29  }
 0x806   :  { %9019 = vset.pattern.permute.xlu1 %v12282_v56  ;;  %v11164_v57 = vpop.f32.mrb[96].mxu0 }
 0x807   :  { %5129 = vperm.xlu1 %9019, %v4512_v3   ;;  %v11166_v43 = vpop.f32.mrb[97].mxu0 }
 0x808   :  { %9020 = vset.pattern.permute.xlu0 %v12248_v38 }
 0x809   :  { %4689 = vperm.xlu0 %9020, %v8554_v59  }
 0x80b   :  { %9022 = vset.pattern.permute.xlu1 %v12248_v38 }
 0x80c   :  { %4686 = vperm.xlu1 %9022, %v4522_v31  }
 0x80d   :  { %9021 = vset.pattern.permute.xlu0 %v12282_v56 }
 0x80e   :  { %5138 = vperm.xlu0 %9021, %v8554_v59  }
 0x810   :  { %9023 = vset.pattern.permute.xlu1 %v12282_v56 }
 0x811   :  { %5135 = vperm.xlu1 %9023, %v4522_v31  }
 0x812   :  { %5144 = vperm.xlu0 %9021, %v8557_v8  }
 0x815   :  { %9024 = vset.pattern.permute.xlu1 %v12248_v38 }
 0x816   :  { %9025 = vset.pattern.permute.xlu0 %v12248_v38  ;;  %4695 = vperm.xlu1 %9024, %v8557_v8  }
 0x817   :  { %4692 = vperm.xlu0 %9025, %v4532_v52  }
 0x81a   :  { %9026 = vset.pattern.permute.xlu1 %v12282_v56 }
 0x81b   :  { %5141 = vperm.xlu1 %9026, %v4532_v52   ;;  %9028 = vset.pattern.permute.xlu0 %v12282_v56 }
 0x81c   :  { %5150 = vperm.xlu0 %9028, %v8560_v28  }
 0x81f   :  { %9027 = vset.pattern.permute.xlu1 %v12248_v38 }
 0x820   :  { %9029 = vset.pattern.permute.xlu0 %v12248_v38  ;;  %4701 = vperm.xlu1 %9027, %v8560_v28  }
 0x821   :  { %4698 = vperm.xlu0 %9029, %v4542_v45  }
 0x824   :  { %9030 = vset.pattern.permute.xlu1 %v12282_v56 }
 0x825   :  { %5147 = vperm.xlu1 %9030, %v4542_v45   ;;  %9032 = vset.pattern.permute.xlu0 %v12282_v56 }
 0x826   :  { %5156 = vperm.xlu0 %9032, %v8563_v5  }
 0x829   :  { %9031 = vset.pattern.permute.xlu1 %v12248_v38 }
 0x82a   :  { %9033 = vset.pattern.permute.xlu0 %v12248_v38  ;;  %4707 = vperm.xlu1 %9031, %v8563_v5  }
 0x82b   :  { %4704 = vperm.xlu0 %9033, %v4552_v27  }
 0x82e   :  { %9034 = vset.pattern.permute.xlu1 %v12282_v56 }
 0x82f   :  { %5153 = vperm.xlu1 %9034, %v4552_v27   ;;  %4710 = vperm.xlu0 %9033, %v4562_v62  }
 0x833   :  { %9035 = vset.pattern.permute.xlu1 %v12248_v38  ;;  %9037 = vset.pattern.permute.xlu0 %v12282_v56 }
 0x834   :  { %4713 = vperm.xlu1 %9035, %v11139_v48   ;;  %5159 = vperm.xlu0 %9037, %v4562_v62  }
 0x838   :  { %9036 = vset.pattern.permute.xlu1 %v12282_v56  ;;  %5168 = vperm.xlu0 %9037, %v11142_v23  }
 0x839   :  { %5162 = vperm.xlu1 %9036, %v11139_v48  }
 0x83c   :  { %9039 = vset.pattern.permute.xlu0 %v12248_v38 }
 0x83d   :  { %9038 = vset.pattern.permute.xlu1 %v12248_v38  ;;  %4716 = vperm.xlu0 %9039, %v11145_v41  }
 0x83e   :  { %4719 = vperm.xlu1 %9038, %v11142_v23  }
 0x841   :  { %9042 = vset.pattern.permute.xlu0 %v12282_v56 }
 0x842   :  { %9040 = vset.pattern.permute.xlu1 %v12282_v56  ;;  %5174 = vperm.xlu0 %9042, %v11148_v44  }
 0x843   :  { %5165 = vperm.xlu1 %9040, %v11145_v41  }
 0x846   :  { %v11197_v17 = vpop.permute.xlu1 %5096  ;;  %v4648_v20 = vpop.permute.xlu0 %4647  ;;  %5180 = vperm.xlu0 %9042, %v11153_v46  }
 0x847   :  { %9041 = vset.pattern.permute.xlu1 %v12248_v38  ;;  %v4746_v48 = vrot.slane %v4648_v20, %v10534_v11 }
 0x848   :  { %4725 = vperm.xlu1 %9041, %v11148_v44   ;;  %v5195_v44 = vrot.slane %v11197_v17, %v10534_v11 }
 0x84a   :  { %v4645_v12 = vpop.permute.xlu0 %4644  ;;  %9046 = vset.pattern.permute.xlu0 %v12248_v38 }
 0x84b   :  { %v4654_v60 = vpop.permute.xlu1 %4653  ;;  %4737 = vperm.xlu0 %9046, %v11158_v25   ;;  %v4742_v28 = vrot.slane %v4645_v12, %v10531_v2 }
 0x84c   :  { %4722 = vperm.xlu1 %9041, %v11150_v21  }
 0x84f   :  { %v5094_v13 = vpop.permute.xlu0 %5093  ;;  %9049 = vset.pattern.permute.xlu0 %v12282_v56 }
 0x850   :  { %v5100_v61 = vpop.permute.xlu1 %5099  ;;  %9043 = vset.pattern.permute.xlu1 %v12282_v56  ;;  %5186 = vperm.xlu0 %9049, %v11158_v25   ;;  %v5191_v62 = vrot.slane %v5094_v13, %v10531_v2 }
 0x851   :  { %5171 = vperm.xlu1 %9043, %v11150_v21   ;;  %v5200_v25 = vrot.slane %v5100_v61, %v10531_v2 }
 0x853   :  { %v5103_v54 = vpop.permute.xlu0 %5102 }
 0x854   :  { %9050 = vset.pattern.permute.xlu0 %v12248_v38  ;;  %v5204_v23 = vrot.slane %v5103_v54, %v10534_v11 }
 0x855   :  { %v4660_v1 = vpop.permute.xlu1 %4659  ;;  %9044 = vset.pattern.permute.xlu1 %v12248_v38 }
 0x856   :  { %4731 = vperm.xlu1 %9044, %v11153_v46   ;;  %v4764_v21 = vrot.slane %v4660_v1, %v10534_v11  ;;  %v5196_v1 = vsel %vm2714_vm12, %v5195_v44, %v5191_v62 }
 0x858   :  { %v4651_v47 = vpop.permute.xlu0 %4650 }
 0x859   :  { %v4751_v45 = vrot.slane %v4651_v47, %v10531_v2  ;;  %v5205_v47 = vsel %vm2714_vm12, %v5204_v23, %v5200_v25 }
 0x85a   :  { %v5109_v0 = vpop.permute.xlu1 %5108  ;;  %4728 = vperm.xlu1 %9044, %v11155_v63  }
 0x85c   :  { %v4657_v7 = vpop.permute.xlu0 %4656 }
 0x85d   :  { %v4760_v27 = vrot.slane %v4657_v7, %v10531_v2 }
 0x85e   :  { %9045 = vset.pattern.permute.xlu1 %v12282_v56 }
 0x85f   :  { %v4666_v24 = vpop.permute.xlu1 %4665  ;;  %5177 = vperm.xlu1 %9045, %v11155_v63   ;;  %v4747_v63 = vsel %vm2714_vm12, %v4746_v48, %v4742_v28  ;;  %v4765_v12 = vsel %vm2714_vm12, %v4764_v21, %v4760_v27 }
 0x861   :  { %v5106_v6 = vpop.permute.xlu0 %5105 }
 0x862   :  { %v5209_v13 = vrot.slane %v5106_v6, %v10531_v2 }
 0x863   :  { %9047 = vset.pattern.permute.xlu1 %v12248_v38 }
 0x864   :  { %v11216_v15 = vpop.permute.xlu1 %5114  ;;  %4734 = vperm.xlu1 %9047, %v11161_v50  }
 0x866   :  { %v4663_v40 = vpop.permute.xlu0 %4662 }
 0x867   :  { %v4769_v46 = vrot.slane %v4663_v40, %v10531_v2 }
 0x868   :  { %9048 = vset.pattern.permute.xlu1 %v12282_v56 }
 0x869   :  { %v4672_v22 = vpop.permute.xlu1 %4671  ;;  %5183 = vperm.xlu1 %9048, %v11161_v50  }
 0x86a   :  { %v4782_v7 = vrot.slane %v4672_v22, %v10534_v11 }
 0x86b   :  { %v5112_v9 = vpop.permute.xlu0 %5111 }
 0x86d   :  { %9051 = vset.pattern.permute.xlu1 %v12248_v38  ;;  %v4755_v38 = vrot.slane %v4654_v60, %v10534_v11  ;;  %v4773_v60 = vrot.slane %v4666_v24, %v10534_v11 }
 0x86e   :  { %v5121_v34 = vpop.permute.xlu1 %5120 }
 0x86f   :  { %v4756_v50 = vsel %vm2714_vm12, %v4755_v38, %v4751_v45  ;;  %v4774_v28 = vsel %vm2714_vm12, %v4773_v60, %v4769_v46  ;;  %v5218_v45 = vrot.slane %v5112_v9, %v10531_v2  ;;  %v5231_v62 = vrot.slane %v5121_v34, %v10534_v11 }
 0x870   :  { %v4669_v16 = vpop.permute.xlu0 %4668  ;;  %v4883_v40 = vsel %vm2851_vm13, %v4756_v50, %v4747_v63 }
 0x871   :  { %v4778_v20 = vrot.slane %v4669_v16, %v10531_v2  ;;  %v5213_v16 = vrot.slane %v5109_v0, %v10534_v11 }
 0x872   :  { %v5118_v29 = vpop.permute.xlu1 %5117 }
 0x873   :  { %v4783_v27 = vsel %vm2714_vm12, %v4782_v7, %v4778_v20  ;;  %v5214_v22 = vsel %vm2714_vm12, %v5213_v16, %v5209_v13  ;;  %v5227_v0 = vrot.slane %v5118_v29, %v10531_v2  ;;  %v5332_v29 = vsel %vm2851_vm13, %v5205_v47, %v5196_v1 }
 0x874   :  { %v5333_v13 = vsel %vm2853_vm14, %v5214_v22, %v5332_v29 }
 0x875   :  { %v11222_v3 = vpop.permute.xlu0 %5126  ;;  %v5232_v25 = vsel %vm2714_vm12, %v5231_v62, %v5227_v0 }
 0x876   :  { %v5240_v34 = vrot.slane %v11222_v3, %v10534_v11 }
 0x877   :  { %v4678_v59 = vpop.permute.xlu1 %4677 }
 0x878   :  { %v4791_v24 = vrot.slane %v4678_v59, %v10534_v11 }
 0x87a   :  { %v4675_v31 = vpop.permute.xlu0 %4674 }
 0x87b   :  { %v4787_v17 = vrot.slane %v4675_v31, %v10531_v2  ;;  %v4884_v31 = vsel %vm2853_vm14, %v4765_v12, %v4883_v40 }
 0x87c   :  { %v5124_v8 = vpop.permute.xlu1 %5123  ;;  %v4885_v59 = vsel %vm2855_vm15, %v4774_v28, %v4884_v31 }
 0x87d   :  { %v4792_v38 = vsel %vm2714_vm12, %v4791_v24, %v4787_v17  ;;  %v5236_v23 = vrot.slane %v5124_v8, %v10531_v2 }
 0x87e   :  { %v4684_v52 = vpop.permute.xlu0 %4683 }
 0x87f   :  { %v4800_v48 = vrot.slane %v4684_v52, %v10534_v11  ;;  %v4886_v52 = vsel %vm2857_vm1, %v4783_v27, %v4885_v59  ;;  %v5241_v17 = vsel %vm2714_vm12, %v5240_v34, %v5236_v23 }
 0x880   :  { %v4887_v8 = vsel %vm12172_vm2, %v4792_v38, %v4886_v52 }
 0x881   :  { %v4681_v5 = vpop.permute.xlu1 %4680 }
 0x882   :  { %v4796_v61 = vrot.slane %v4681_v5, %v10531_v2  ;;  %v5222_v5 = vrot.slane %v11216_v15, %v10534_v11 }
 0x883   :  { %v5133_v41 = vpop.permute.xlu0 %5132 }
 0x884   :  { %v4801_v9 = vsel %vm2714_vm12, %v4800_v48, %v4796_v61  ;;  %v5223_v63 = vsel %vm2714_vm12, %v5222_v5, %v5218_v45  ;;  %v5249_v50 = vrot.slane %v5133_v41, %v10534_v11 }
 0x885   :  { %v4888_v60 = vsel %vm12171_vm3, %v4801_v9, %v4887_v8  ;;  %v5334_v1 = vsel %vm2855_vm15, %v5223_v63, %v5333_v13 }
 0x886   :  { %v5130_v54 = vpop.permute.xlu1 %5129  ;;  %v5335_v41 = vsel %vm2857_vm1, %v5232_v25, %v5334_v1 }
 0x887   :  { %v5245_v21 = vrot.slane %v5130_v54, %v10531_v2  ;;  %v5336_v28 = vsel %vm12172_vm2, %v5241_v17, %v5335_v41 }
 0x888   :  { %v4690_v6 = vpop.permute.xlu0 %4689 }
 0x889   :  { %v4809_v46 = vrot.slane %v4690_v6, %v10534_v11  ;;  %v5250_v3 = vsel %vm2714_vm12, %v5249_v50, %v5245_v21 }
 0x88a   :  { %v5337_v6 = vsel %vm12171_vm3, %v5250_v3, %v5336_v28 }
 0x88b   :  { %v4687_v44 = vpop.permute.xlu1 %4686 }
 0x88c   :  { %v4805_v15 = vrot.slane %v4687_v44, %v10531_v2 }
 0x88d   :  { %v5139_v20 = vpop.permute.xlu0 %5138 }
 0x88e   :  { %v4810_v12 = vsel %vm2714_vm12, %v4809_v46, %v4805_v15  ;;  %v5258_v61 = vrot.slane %v5139_v20, %v10534_v11 }
 0x88f   :  { %v4889_v54 = vsel %vm12283_vm10, %v4810_v12, %v4888_v60  ;;  %vm12288_vm10 = vmmov %vm12286_vm0 }
 0x890   :  { %v5136_v47 = vpop.permute.xlu1 %5135  ;;  %v11284_v7 = vsel %vm10567_vm6, %v4889_v54, -1e+30 }
 0x891   :  { %v5254_v40 = vrot.slane %v5136_v47, %v10531_v2  ;;  %v4901_v16 = vsel %vm12284_vm5, %v11284_v7, -inf  ;;  %v5145_v22 = vpop.permute.xlu0 %5144  ;;  %vm12289_vm5 = vmmov %vm12287_vm9 }
 0x892   :  { %4902 = vmax.xlane.f32.xlu1 %v4901_v16 }
 0x893   :  { %v5259_v24 = vsel %vm2714_vm12, %v5258_v61, %v5254_v40 }
 0x894   :  { %v5338_v31 = vsel %vm12285_vm11, %v5259_v24, %v5337_v6  ;;  %v5267_v24 = vrot.slane %v5145_v22, %v10534_v11  ;;  %vm12290_vm11 = vmmov %vm12286_vm0 }
 0x895   :  { %v4696_v45 = vpop.permute.xlu1 %4695  ;;  %v11297_v27 = vsel %vm10567_vm6, %v5338_v31, -1e+30 }
 0x896   :  { %v5350_v48 = vsel %vm12286_vm0, %v11297_v27, -inf  ;;  %v4693_v0 = vpop.permute.xlu0 %4692  ;;  %v4818_v3 = vrot.slane %v4696_v45, %v10534_v11 }
 0x897   :  { %5351 = vmax.xlane.f32.xlu0 %v5350_v48  ;;  %v4814_v47 = vrot.slane %v4693_v0, %v10531_v2 }
 0x899   :  { %v4819_v45 = vsel %vm2714_vm12, %v4818_v3, %v4814_v47 }
 0x89a   :  { %v5142_v5 = vpop.permute.xlu1 %5141 }
 0x89b   :  { %v5151_v59 = vpop.permute.xlu0 %5150  ;;  %v5263_v28 = vrot.slane %v5142_v5, %v10531_v2 }
 0x89c   :  { %v5276_v0 = vrot.slane %v5151_v59, %v10534_v11 }
 0x89f   :  { %v4702_v38 = vpop.permute.xlu1 %4701 }
 0x8a0   :  { %v4699_v9 = vpop.permute.xlu0 %4698  ;;  %v4827_v54 = vrot.slane %v4702_v38, %v10534_v11 }
 0x8a1   :  { %v4823_v1 = vrot.slane %v4699_v9, %v10531_v2 }
 0x8a3   :  { %v4828_v6 = vsel %vm2714_vm12, %v4827_v54, %v4823_v1 }
 0x8a4   :  { %v5148_v62 = vpop.permute.xlu1 %5147 }
 0x8a5   :  { %v5157_v52 = vpop.permute.xlu0 %5156  ;;  %v5272_v31 = vrot.slane %v5148_v62, %v10531_v2  ;;  %v5268_v62 = vsel %vm2714_vm12, %v5267_v24, %v5263_v28 }
 0x8a7   :  { %v5277_v59 = vsel %vm2714_vm12, %v5276_v0, %v5272_v31 }
 0x8a9   :  { %v4708_v23 = vpop.permute.xlu1 %4707 }
 0x8aa   :  { %v4705_v46 = vpop.permute.xlu0 %4704  ;;  %v4836_v61 = vrot.slane %v4708_v23, %v10534_v11 }
 0x8ab   :  { %v4832_v40 = vrot.slane %v4705_v46, %v10531_v2 }
 0x8ad   :  { %v4837_v9 = vsel %vm2714_vm12, %v4836_v61, %v4832_v40 }
 0x8ae   :  { %v5154_v44 = vpop.permute.xlu1 %5153  ;;  %v4711_v29 = vpop.permute.xlu0 %4710 }
 0x8af   :  { %v5281_v5 = vrot.slane %v5154_v44, %v10531_v2  ;;  %v4841_v22 = vrot.slane %v4711_v29, %v10531_v2 }
 0x8b3   :  { %v4714_v21 = vpop.permute.xlu1 %4713  ;;  %v5160_v34 = vpop.permute.xlu0 %5159 }
 0x8b4   :  { %v4845_v48 = vrot.slane %v4714_v21, %v10534_v11  ;;  %v4890_v21 = vsel %vm2851_vm13, %v4828_v6, %v4819_v45 }
 0x8b5   :  { %v4891_v29 = vsel %vm2853_vm14, %v4837_v9, %v4890_v21 }
 0x8b7   :  { %v5169_v50 = vpop.permute.xlu0 %5168 }
 0x8b8   :  { %v5163_v15 = vpop.permute.xlu1 %5162 }
 0x8bc   :  { %v4717_v12 = vpop.permute.xlu0 %4716 }
 0x8bd   :  { %v4720_v63 = vpop.permute.xlu1 %4719  ;;  %v4850_v38 = vrot.slane %v4717_v12, %v10531_v2  ;;  %v5285_v12 = vrot.slane %v5157_v52, %v10534_v11 }
 0x8be   :  { %v4854_v23 = vrot.slane %v4720_v63, %v10534_v11  ;;  %v4846_v63 = vsel %vm2714_vm12, %v4845_v48, %v4841_v22 }
 0x8bf   :  { %v5286_v40 = vsel %vm2714_vm12, %v5285_v12, %v5281_v5  ;;  %v4892_v24 = vsel %vm2855_vm15, %v4846_v63, %v4891_v29 }
 0x8c0   :  { %v4855_v47 = vsel %vm2714_vm12, %v4854_v23, %v4850_v38 }
 0x8c1   :  { %v5175_v13 = vpop.permute.xlu0 %5174  ;;  %v4893_v48 = vsel %vm2857_vm1, %v4855_v47, %v4892_v24 }
 0x8c2   :  { %v5166_v8 = vpop.permute.xlu1 %5165  ;;  %v5312_v38 = vrot.slane %v5175_v13, %v10534_v11 }
 0x8c3   :  { %v5299_v28 = vrot.slane %v5166_v8, %v10531_v2  ;;  %v5339_v8 = vsel %vm2851_vm13, %v5277_v59, %v5268_v62 }
 0x8c5   :  { %v5181_v16 = vpop.permute.xlu0 %5180 }
 0x8c6   :  { %v5321_v23 = vrot.slane %v5181_v16, %v10534_v11 }
 0x8c7   :  { %v4726_v25 = vpop.permute.xlu1 %4725 }
 0x8c8   :  { %v4863_v3 = vrot.slane %v4726_v25, %v10534_v11  ;;  %v5303_v25 = vrot.slane %v5169_v50, %v10534_v11 }
 0x8ca   :  { %v4738_v44 = vpop.permute.xlu0 %4737 }
 0x8cb   :  { %v4723_v20 = vpop.permute.xlu1 %4722 }
 0x8cc   :  { %v4859_v46 = vrot.slane %v4723_v20, %v10531_v2  ;;  %v5294_v20 = vrot.slane %v5163_v15, %v10534_v11 }
 0x8ce   :  { %v4864_v52 = vsel %vm2714_vm12, %v4863_v3, %v4859_v46  ;;  %v5340_v46 = vsel %vm2853_vm14, %v5286_v40, %v5339_v8 }
 0x8cf   :  { %v4894_v50 = vsel %vm12172_vm2, %v4864_v52, %v4893_v48  ;;  %v5187_v9 = vpop.permute.xlu0 %5186 }
 0x8d0   :  { %v5172_v60 = vpop.permute.xlu1 %5171  ;;  %v5330_v12 = vrot.slane %v5187_v9, %v10534_v11 }
 0x8d1   :  { %v5308_v6 = vrot.slane %v5172_v60, %v10531_v2  ;;  %v5304_v60 = vsel %vm2714_vm12, %v5303_v25, %v5299_v28 }
 0x8d5   :  { %v4732_v17 = vpop.permute.xlu1 %4731 }
 0x8d6   :  { %v4872_v61 = vrot.slane %v4732_v17, %v10534_v11  ;;  %v4881_v17 = vrot.slane %v4738_v44, %v10534_v11 }
 0x8d9   :  { %v4729_v41 = vpop.permute.xlu1 %4728 }
 0x8da   :  { %v4868_v1 = vrot.slane %v4729_v41, %v10531_v2  ;;  %v5290_v41 = vrot.slane %v5160_v34, %v10531_v2 }
 0x8dc   :  { %v4873_v15 = vsel %vm2714_vm12, %v4872_v61, %v4868_v1  ;;  %v5295_v0 = vsel %vm2714_vm12, %v5294_v20, %v5290_v41  ;;  %v9149_v41 = vld [vmem:[%s12075_s13] ss:$0 sm:$0xff] }
 0x8dd   :  { %v4895_v22 = vsel %vm12171_vm3, %v4873_v15, %v4894_v50  ;;  %v5341_v21 = vsel %vm2855_vm15, %v5295_v0, %v5340_v46 }
 0x8de   :  { %v5178_v54 = vpop.permute.xlu1 %5177  ;;  %v5342_v16 = vsel %vm2857_vm1, %v5304_v60, %v5341_v21 }
 0x8df   :  { %v5317_v45 = vrot.slane %v5178_v54, %v10531_v2  ;;  %v5313_v54 = vsel %vm2714_vm12, %v5312_v38, %v5308_v6 }
 0x8e0   :  { %v5343_v44 = vsel %vm12172_vm2, %v5313_v54, %v5342_v16  ;;  %v11393_v54 = vld [vmem:[%s12076_s19 + $0x8] sm:$0xff]  ;;  %vm12306_vm2 = vmmov %vm12286_vm0 }
 0x8e1   :  { %v5322_v13 = vsel %vm2714_vm12, %v5321_v23, %v5317_v45 }
 0x8e2   :  { %v5344_v20 = vsel %vm12171_vm3, %v5322_v13, %v5343_v44  ;;  %v5655_v13 = vld [vmem:[%s12077_s21 + $0x8] sm:$0xff]  ;;  %vm12304_vm3 = vmmov %vm12286_vm0 }
 0x8e3   :  { %v4735_v31 = vpop.permute.xlu1 %4734 }
 0x8e4   :  { %v4877_v34 = vrot.slane %v4735_v31, %v10531_v2 }
 0x8e6   :  { %v4882_v5 = vsel %vm2714_vm12, %v4881_v17, %v4877_v34 }
 0x8e7   :  { %v4896_v62 = vsel %vm12287_vm9, %v4882_v5, %v4895_v22  ;;  %vm12291_vm9 = vmmov %vm12286_vm0 }
 0x8e8   :  { %v5184_v1 = vpop.permute.xlu1 %5183  ;;  %v4900_v59 = vsel %vm10627_vm8, %v4896_v62, -1e+30  ;;  %v5654_v62 = vld [vmem:[%s12077_s21] sm:$0xff] }
 0x8e9   :  { %v5326_v63 = vrot.slane %v5184_v1, %v10531_v2  ;;  %v4904_v3 = vsel %vm12288_vm10, %v4900_v59, -inf  ;;  %vm12292_vm10 = vmmov %vm12286_vm0  ;;  %v11408_v1 = vld [vmem:[%s12076_s19 + $0x10] sm:$0xff]  ;;  %v8917_v16 = vpack.c.bf16 %v5655_v13, %v5654_v62  ;;  %v6307_v13 = vld [vmem:[%s12080_s24] sm:$0xff] }
 0x8ea   :  { %4905 = vmax.xlane.f32.xlu0 %v4904_v3  ;;  %v5657_v3 = vld [vmem:[%s12077_s21 + $0x18] sm:$0xff]  ;;  %v12339_v62 = vld [vmem:[#allocation36_spill] sm:$0xff] }
 0x8eb   :  { %v5331_v29 = vsel %vm2714_vm12, %v5330_v12, %v5326_v63  ;;  %v5656_v63 = vld [vmem:[%s12077_s21 + $0x10] sm:$0xff]  ;;  %8918 = vmatprep.subr.bf16.mxu0 %v8917_v16 }
 0x8ec   :  { %v5345_v47 = vsel %vm12289_vm5, %v5331_v29, %v5344_v20  ;;  %vm12293_vm5 = vmmov %vm12286_vm0  ;;  %v8921_v44 = vpack.c.bf16 %v5657_v3, %v5656_v63  ;;  %v5740_v29 = vld [vmem:[%s12078_s23] sm:$0xff]  ;;  %v5741_v20 = vld [vmem:[%s12078_s23 + $0x8] sm:$0xff]  ;;  %8920 = vmatpush3.bf16.msra.mxu0 %v8917_v16 }
 0x8ed   :  { %v5349_v61 = vsel %vm10627_vm8, %v5345_v47, -1e+30  ;;  %v8925_v47 = vpack.c.bf16 %v5741_v20, %v5740_v29  ;;  %v6308_v16 = vld [vmem:[%s12080_s24 + $0x8] sm:$0xff]  ;;  %v6309_v63 = vld [vmem:[%s12080_s24 + $0x10] sm:$0xff]  ;;  %v6310_v3 = vld [vmem:[%s12080_s24 + $0x18] sm:$0xff] }
 0x8ee   :  { %v5353_v40 = vsel %vm12290_vm11, %v5349_v61, -inf  ;;  %vm12294_vm11 = vmmov %vm12286_vm0  ;;  %8922 = vmatprep.subr.bf16.mxu0 %v8921_v44  ;;  %v6311_v29 = vld [vmem:[%s12080_s24 + $0x20] sm:$0xff]  ;;  %v6312_v20 = vld [vmem:[%s12080_s24 + $0x28] sm:$0xff] }
 0x8ef   :  { %5354 = vmax.xlane.f32.xlu1 %v5353_v40 }
 0x8f0   :  { %8924 = vmatpush3.bf16.msra.mxu0 %v8921_v44  ;;  %v8933_v44 = vpack.c.bf16 %v6310_v3, %v6309_v63 }
 0x900   :  { %5384 = vrot.lane.b32.xlu0 %v9149_v41, %s9155_s2 }
 0x91f   :  { %v4903_v28 = vpop.xlane.xlu1 %4902 }
 0x920   :  { %v4907_v52 = vsub.f32 %v11284_v7, %v4903_v28 }
 0x922   :  { %v4909_v24 = vmul.f32 1.442695, %v4907_v52 }
 0x924   :  { %9112 = vpow2.f32 %v4909_v24  ;;  %v5352_v25 = vpop.xlane.xlu0 %5351 }
 0x925   :  { %v5356_v6 = vsub.f32 %v11297_v27, %v5352_v25 }
 0x927   :  { %v5358_v15 = vmul.f32 1.442695, %v5356_v6 }
 0x929   :  { %9114 = vpow2.f32 %v5358_v15 }
 0x92e   :  { %v9113_v31 = vpop.eup %9112 }
 0x92f   :  { %8594 = vmatprep.mubr.msk.f32.mxu1 %vm12286_vm0, %v9113_v31  ;;  %v4913_v48 = vsel %vm12291_vm9, %v9113_v31, 0.0  ;;  %vm12295_vm9 = vmmov %vm12286_vm0 }
 0x930   :  { %4914 = vadd.xlane.f32.xlu1 %v4913_v48 }
 0x933   :  { %v9115_v17 = vpop.eup %9114 }
 0x934   :  { %v5362_v45 = vsel %vm12292_vm10, %v9115_v17, 0.0  ;;  %vm12296_vm10 = vmmov %vm12286_vm0 }
 0x935   :  { %5363 = vadd.xlane.f32.xlu1 %v5362_v45 }
 0x977   :  { %v4906_v34 = vpop.xlane.xlu0 %4905 }
 0x978   :  { %v4908_v8 = vsub.f32 %v4900_v59, %v4906_v34  ;;  %v11413_v59 = vld [vmem:[%s12076_s19 + $0x18] sm:$0xff] }
 0x979   :  { %v8913_v12 = vpack.c.bf16 %v11413_v59, %v11408_v1 }
 0x97a   :  { %v4911_v7 = vmul.f32 1.442695, %v4908_v8 }
 0x97b   :  { %v5385_v0 = vpop.permute.xlu0 %5384 }
 0x97c   :  { %9116 = vpow2.f32 %v4911_v7  ;;  %v5454_v38 = vadd.f32 %v11166_v43, %v5385_v0  ;;  %v5459_v27 = vadd.f32 %v11164_v57, %v5385_v0  ;;  %v5355_v50 = vpop.xlane.xlu1 %5354  ;;  %v11388_v43 = vld [vmem:[%s12076_s19] sm:$0xff] }
 0x97d   :  { %v5357_v60 = vsub.f32 %v5349_v61, %v5355_v50  ;;  %v11400_v21 = vpack.c.bf16 %v11393_v54, %v11388_v43  ;;  %v7785_v50 = vld [vmem:[%s12079_s18] ss:$0 sm:$0xff] }
 0x97e   :  { %v8905_v23 = vpack.c.bf16 %v5459_v27, %v5454_v38 }
 0x97f   :  { %v5360_v9 = vmul.f32 1.442695, %v5357_v60 }
 0x980   :  { %8906 = vmatprep.subr.bf16.mxu1 %v8905_v23 }
 0x981   :  { %9118 = vpow2.f32 %v5360_v9 }
 0x986   :  { %v9117_v5 = vpop.eup %9116 }
 0x987   :  { %8595 = vmatmul.mubr.msk.f32.vlgmr.msra.gmra.mrb[82].mxu1 %vm12293_vm5, %v9117_v5  ;;  %v4916_v22 = vsel %vm12294_vm11, %v9117_v5, 0.0  ;;  %vm12299_vm5 = vmmov %vm12286_vm0 }
 0x988   :  { %8908 = vmatpush3.bf16.msra.mxu1 %v8905_v23  ;;  %8612 = vmatprep.mubr.msk.f32.mxu1 %vm12286_vm0, %v9115_v17  ;;  %vm12300_vm11 = vmmov %vm12286_vm0 }
 0x989   :  { %4917 = vadd.xlane.f32.xlu1 %v4916_v22  ;;  %8910 = vmatprep.subr.bf16.mxu1 %v11400_v21 }
 0x98b   :  { %v9119_v46 = vpop.eup %9118 }
 0x98c   :  { %8613 = vmatmul.mubr.msk.f32.vlgmr.msra.gmra.mrb[84].mxu1 %vm12295_vm9, %v9119_v46  ;;  %v5365_v57 = vsel %vm12296_vm10, %v9119_v46, 0.0  ;;  %vm12301_vm9 = vmmov %vm12286_vm0 }
 0x98d   :  { %5366 = vadd.xlane.f32.xlu1 %v5365_v57  ;;  %8912 = vmatpush3.bf16.msra.mxu1 %v11400_v21  ;;  %vm12302_vm10 = vmmov %vm12286_vm0 }
 0x98e   :  { %8914 = vmatprep.subr.bf16.mxu1 %v8913_v12 }
 0x991   :  { %8916 = vmatpush3.bf16.msra.mxu1 %v8913_v12 }
 0x992   :  { %8926 = vmatprep.subr.bf16.mxu1 %v8925_v47 }
 0x9bd   :  { %v4915_v41 = vpop.xlane.xlu1 %4914 }
 0x9be   :  { %9120 = vrcp.f32 %v4915_v41  ;;  %v6313_v41 = vld [vmem:[%s12080_s24 + $0x30] sm:$0xff] }
 0x9c2   :  { %v5364_v28 = vpop.xlane.xlu1 %5363 }
 0x9c8   :  { %v9121_v15 = vpop.eup %9120 }
 0xa16   :  { %v4918_v52 = vpop.xlane.xlu1 %4917 }
 0xa17   :  { %9122 = vrcp.f32 %v4918_v52 }
 0xa1a   :  { %v5367_v24 = vpop.xlane.xlu1 %5366 }
 0xa1b   :  { %9124 = vrcp.f32 %v5367_v24  ;;  %v7789_v24 = vld [vmem:[%s12081_s22] ss:$0 sm:$0xff] }
 0xa1c   :  { %9126 = vrcp.f32 %v5364_v28  ;;  %v6314_v28 = vld [vmem:[%s12080_s24 + $0x38] sm:$0xff] }
 0xa1d   :  { %v8941_v52 = vpack.c.bf16 %v6314_v28, %v6313_v41 }
 0xa21   :  { %v9123_v31 = vpop.eup %9122 }
 0xa25   :  { %v9125_v48 = vpop.eup %9124 }
 0xa26   :  { %v9127_v45 = vpop.eup %9126 }
 0xa5a   :  { %v8596_v25 = vpop.f32.mrb[82].mxu1 }
 0xa5b   :  { %v5077_v6 = vpop.f32.mrb[83].mxu1  ;;  %v5089_v34 = vmul.f32 %v9123_v31, %v8596_v25 }
 0xa5c   :  { %v5088_v0 = vmul.f32 %v9121_v15, %v5077_v6 }
 0xa5f   :  { %v8614_v17 = vpop.f32.mrb[84].mxu1 }
 0xa60   :  { %v5546_v8 = vmul.f32 %v9125_v48, %v8614_v17  ;;  %v5534_v7 = vpop.f32.mrb[85].mxu1 }
 0xa61   :  { %v5545_v38 = vmul.f32 %v9127_v45, %v5534_v7 }
 0xa62   :  { %v5548_v27 = vadd.f32 %v5546_v8, %v5089_v34  ;;  %v11551_v34 = vld [vmem:[%s12082_s20] ss:$0 sm:$0xff] }
 0xa63   :  { %v5547_v60 = vadd.f32 %v5545_v38, %v5088_v0 }
 0xa64   :  { %v5550_v23 = vmul.f32 0.5, %v5548_v27 }
 0xa65   :  { %v5549_v9 = vmul.f32 0.5, %v5547_v60 }
 0xa66   :  { %v5559_v5 = vadd.f32 %v7785_v50, %v5550_v23 }
 0xa67   :  { %v5558_v22 = vadd.f32 %v7785_v50, %v5549_v9 }
 0xa68   :  { %v11440_v57 = vmax.f32 %v5559_v5, 0.0 }
 0xa69   :  { %v11438_v46 = vmax.f32 %v5558_v22, 0.0 }
 0xa6a   :  { %12298 = vst [vmem:[#allocation5_spill] sm:$0xff] %v11440_v57 }
 0xa6b   :  { %12297 = vst [vmem:[#allocation4_spill] sm:$0xff] %v11438_v46  ;;  %8623 = vmatprep.mubr.msk.f32.mxu1 %vm1414_vm4, %v11438_v46  ;;  %8634 = vmatprep.mubr.msk.f32.mxu0 %vm1414_vm4, %v11438_v46 }
 0xa6c   :  { %8624 = vmatmul.mubr.msk.f32.vlgmr.msra.gmra.mrb[86].mxu1 %vm1414_vm4, %v11440_v57  ;;  %8635 = vmatmul.mubr.msk.f32.vlgmr.msra.gmra.mrb[98].mxu0 %vm1414_vm4, %v11440_v57 }
 0xa6d   :  { %8928 = vmatpush3.bf16.msra.mxu1 %v8925_v47  ;;  %8641 = vmatprep.mubr.msk.f32.mxu1 %vm12299_vm5, %v12249_v53  ;;  %vm12303_vm5 = vmmov %vm12286_vm0  ;;  %v12313_v53 = vld [vmem:[#allocation22_spill] sm:$0xff]  ;;  %v8937_v47 = vpack.c.bf16 %v6312_v20, %v6311_v29 }
 0xa6e   :  { %8946 = vmatprep.subr.bf16.mxu1 %v11400_v21 }
 0xa70   :  { %8642 = vmatmul.mubr.msk.f32.vlgmr.msra.gmra.mrb[88].mxu1 %vm12300_vm11, %v9851_v26  ;;  %vm12305_vm11 = vmmov %vm12286_vm0  ;;  %v12312_v26 = vld [vmem:[#allocation8_spill] sm:$0xff] }
 0xa71   :  { %8644 = vmatprep.mubr.msk.f32.mxu1 %vm12286_vm0, %v12250_v37  ;;  %8948 = vmatpush3.bf16.msra.mxu1 %v11400_v21  ;;  %v12315_v37 = vld [vmem:[#allocation23_spill] sm:$0xff]  ;;  %v12341_v21 = vld [vmem:[#allocation37_spill] sm:$0xff] }
 0xa72   :  { %8950 = vmatprep.subr.bf16.mxu1 %v8913_v12 }
 0xa74   :  { %8645 = vmatmul.mubr.msk.f32.gmra.mrb[90].mxu1 %vm12301_vm9, %v12251_v14  ;;  %vm12307_vm9 = vmmov %vm12286_vm0  ;;  %v12317_v14 = vld [vmem:[#allocation24_spill] sm:$0xff] }
 0xa75   :  { %8647 = vmatprep.mubr.msk.f32.mxu1 %vm12302_vm10, %v12252_v30  ;;  %8952 = vmatpush3.bf16.msra.mxu1 %v8913_v12  ;;  %vm12308_vm10 = vmmov %vm12286_vm0  ;;  %v12319_v30 = vld [vmem:[#allocation25_spill] sm:$0xff]  ;;  %v8929_v12 = vpack.c.bf16 %v6308_v16, %v6307_v13 }
 0xa77   :  { %8930 = vmatprep.subr.bf16.mxu0 %v8929_v12 }
 0xa78   :  { %8648 = vmatmul.mubr.msk.f32.gmra.mrb[92].mxu1 %vm12303_vm5, %v12253_v32  ;;  %vm12309_vm5 = vmmov %vm12286_vm0  ;;  %v12321_v32 = vld [vmem:[#allocation26_spill] sm:$0xff]  ;;  %8932 = vmatpush3.bf16.msra.mxu0 %v8929_v12 }
 0xa79   :  { %8650 = vmatprep.mubr.msk.f32.mxu1 %vm12304_vm3, %v12254_v18  ;;  %vm12310_vm3 = vmmov %vm12286_vm0  ;;  %v12323_v18 = vld [vmem:[#allocation27_spill] sm:$0xff]  ;;  %8934 = vmatprep.subr.bf16.mxu0 %v8933_v44 }
 0xa7c   :  { %8651 = vmatmul.mubr.msk.f32.gmra.mrb[94].mxu1 %vm12305_vm11, %v12255_v55  ;;  %vm12311_vm11 = vmmov %vm12286_vm0  ;;  %v12325_v55 = vld [vmem:[#allocation28_spill] sm:$0xff]  ;;  %8936 = vmatpush3.bf16.msra.mxu0 %v8933_v44 }
 0xa7d   :  { %8653 = vmatprep.mubr.msk.f32.mxu1 %vm12286_vm0, %v12256_v19  ;;  %v12326_v19 = vld [vmem:[#allocation29_spill] sm:$0xff]  ;;  %8938 = vmatprep.subr.bf16.mxu0 %v8937_v47 }
 0xa80   :  { %8654 = vmatmul.mubr.msk.f32.gmra.mrb[96].mxu1 %vm12306_vm2, %v12257_v39  ;;  %vm12314_vm2 = vmmov %vm12286_vm0  ;;  %v12328_v39 = vld [vmem:[#allocation30_spill] sm:$0xff]  ;;  %8940 = vmatpush3.bf16.msra.mxu0 %v8937_v47 }
 0xa81   :  { %8656 = vmatprep.mubr.msk.f32.mxu1 %vm12307_vm9, %v12258_v35  ;;  %vm12316_vm9 = vmmov %vm12286_vm0  ;;  %v12330_v35 = vld [vmem:[#allocation31_spill] sm:$0xff]  ;;  %8942 = vmatprep.subr.bf16.mxu0 %v8941_v52 }
 0xa84   :  { %8657 = vmatmul.mubr.msk.f32.gmra.mrb[98].mxu1 %vm12308_vm10, %v12259_v42  ;;  %vm12318_vm10 = vmmov %vm12286_vm0  ;;  %v12332_v42 = vld [vmem:[#allocation32_spill] sm:$0xff]  ;;  %8944 = vmatpush3.bf16.msra.mxu0 %v8941_v52 }
 0xa85   :  { %8659 = vmatprep.mubr.msk.f32.mxu1 %vm12309_vm5, %v12260_v58  ;;  %vm12320_vm5 = vmmov %vm12286_vm0  ;;  %v12334_v58 = vld [vmem:[#allocation33_spill] sm:$0xff] }
 0xa88   :  { %8660 = vmatmul.mubr.msk.f32.gmra.mrb[100].mxu1 %vm12310_vm3, %v12261_v51  ;;  %vm12322_vm3 = vmmov %vm12286_vm0  ;;  %v12336_v51 = vld [vmem:[#allocation34_spill] sm:$0xff] }
 0xa89   :  { %8662 = vmatprep.mubr.msk.f32.mxu1 %vm12311_vm11, %v12262_v10  ;;  %vm12324_vm11 = vmmov %vm12286_vm0  ;;  %v12338_v10 = vld [vmem:[#allocation35_spill] sm:$0xff] }
 0xa8c   :  { %8663 = vmatmul.mubr.msk.f32.gmra.mrb[102].mxu1 %vm12286_vm0, %v12312_v26 }
 0xa8d   :  { %8665 = vmatprep.mubr.msk.f32.mxu1 %vm12314_vm2, %v12313_v53  ;;  %vm12327_vm2 = vmmov %vm12286_vm0 }
 0xa90   :  { %8666 = vmatmul.mubr.msk.f32.gmra.mrb[104].mxu1 %vm12316_vm9, %v12315_v37  ;;  %vm12329_vm9 = vmmov %vm12286_vm0 }
 0xa91   :  { %8668 = vmatprep.mubr.msk.f32.mxu1 %vm12318_vm10, %v12317_v14  ;;  %vm12331_vm10 = vmmov %vm12286_vm0 }
 0xa94   :  { %8669 = vmatmul.mubr.msk.f32.gmra.mrb[106].mxu1 %vm12320_vm5, %v12319_v30  ;;  %vm12333_vm5 = vmmov %vm12286_vm0 }
 0xa95   :  { %8671 = vmatprep.mubr.msk.f32.mxu1 %vm12322_vm3, %v12321_v32  ;;  %vm12335_vm3 = vmmov %vm12286_vm0 }
 0xa98   :  { %8672 = vmatmul.mubr.msk.f32.gmra.mrb[108].mxu1 %vm12324_vm11, %v12323_v18  ;;  %vm12337_vm11 = vmmov %vm12286_vm0 }
 0xa99   :  { %8674 = vmatprep.mubr.msk.f32.mxu1 %vm12286_vm0, %v12325_v55 }
 0xa9c   :  { %8675 = vmatmul.mubr.msk.f32.gmra.mrb[110].mxu1 %vm12327_vm2, %v12326_v19  ;;  %vm12340_vm2 = vmmov %vm12286_vm0 }
 0xa9d   :  { %8677 = vmatprep.mubr.msk.f32.mxu1 %vm12329_vm9, %v12328_v39  ;;  %vm12342_vm9 = vmmov %vm12286_vm0 }
 0xaa0   :  { %8678 = vmatmul.mubr.msk.f32.gmra.mrb[112].mxu1 %vm12331_vm10, %v12330_v35 }
 0xaa1   :  { %8680 = vmatprep.mubr.msk.f32.mxu1 %vm12333_vm5, %v12332_v42 }
 0xaa4   :  { %8681 = vmatmul.mubr.msk.f32.gmra.mrb[114].mxu1 %vm12335_vm3, %v12334_v58 }
 0xaa5   :  { %8683 = vmatprep.mubr.msk.f32.mxu1 %vm12337_vm11, %v12336_v51 }
 0xaa8   :  { %8684 = vmatmul.mubr.msk.f32.gmra.mrb[116].mxu1 %vm12286_vm0, %v12338_v10 }
 0xaa9   :  { %8686 = vmatprep.mubr.msk.f32.mxu1 %vm12340_vm2, %v12339_v62 }
 0xaac   :  { %8687 = vmatmul.mubr.msk.f32.gmra.mrb[118].mxu1 %vm12342_vm9, %v12341_v21 }
 0xaad   :  { %8761 = vmatprep.mubr.msk.f32.mxu1 %vm1414_vm4, %v11438_v46 }
 0xab0   :  { %8762 = vmatmul.mubr.msk.f32.vlgmr.msra.gmra.mrb[120].mxu1 %vm1414_vm4, %v11440_v57 }
 0xb3f   :  { %v8625_v25 = vpop.f32.mrb[86].mxu1  ;;  %v8636_v6 = vpop.f32.mrb[98].mxu0 }
 0xb40   :  { %v5737_v15 = vadd.f32 %v8636_v6, %v7789_v24  ;;  %v5645_v31 = vpop.f32.mrb[87].mxu1  ;;  %v5731_v48 = vpop.f32.mrb[99].mxu0  ;;  %v11560_v5 = vadd.f32 %v8625_v25, %v11551_v34 }
 0xb41   :  { %v5732_v17 = vadd.f32 %v7789_v24, %v5731_v48  ;;  %v11563_v26 = vadd.f32 %v11551_v34, %v5645_v31 }
 0xb42   :  { %v6025_v45 = vrot.slane %v5737_v15, %v12280_v36  ;;  %v6018_v38 = vcombine.high %v5737_v15, %v5737_v15 }
 0xb43   :  { %v5969_v8 = vcombine.high %v5732_v17, %v5732_v17  ;;  %v5976_v7 = vrot.slane %v5732_v17, %v12280_v36  ;;  %v8643_v0 = vpop.f32.mrb[88].mxu1 }
 0xb44   :  { %v11555_v27 = vrot.slane %v6025_v45, %v12280_v36  ;;  %v5808_v50 = vpop.f32.mrb[89].mxu1  ;;  %v6033_v22 = vcombine.high %v6025_v45, %v6025_v45  ;;  %v11570_v55 = vrot.slane %v6018_v38, %v12280_v36 }
 0xb45   :  { %v5983_v60 = vrot.slane %v5969_v8, %v12280_v36  ;;  %v5984_v23 = vcombine.high %v5976_v7, %v5976_v7  ;;  %v5992_v9 = vrot.slane %v5976_v7, %v12280_v36 }
 0xb46   :  { %v6102_v53 = vrot.slane %v11555_v27, %v12281_v49  ;;  %v11588_v12 = vrot.slane %v6033_v22, %v12280_v36 }
 0xb47   :  { %v5985_v37 = vcombine.high %v5983_v60, %v5983_v60  ;;  %v6070_v14 = vrot.slane %v5992_v9, %v12281_v49  ;;  %v8646_v30 = vpop.f32.mrb[90].mxu1  ;;  %v6006_v32 = vrot.slane %v5984_v23, %v12280_v36  ;;  %v6014_v18 = vcombine.high %v5992_v9, %v5992_v9 }
 0xb48   :  { %v5818_v19 = vpop.f32.mrb[91].mxu1  ;;  %v5999_v39 = vrot.slane %v5983_v60, %v12280_v36  ;;  %v11574_v35 = vadd.f32 %v6102_v53, %v11560_v5  ;;  %v11577_v42 = vadd.f32 %v6102_v53, %v11563_v26  ;;  %v6034_v9 = vcombine.high %v11570_v55, %v11570_v55 }
 0xb49   :  { %v6148_v58 = vadd.f32 %v6070_v14, %v11560_v5  ;;  %v6147_v51 = vadd.f32 %v6070_v14, %v11563_v26  ;;  %v6074_v10 = vrot.slane %v6006_v32, %v12281_v49  ;;  %v6078_v62 = vrot.slane %v6014_v18, %v12281_v49 }
 0xb4a   :  { %v6016_v21 = vcombine.high %v6006_v32, %v6006_v32  ;;  %v6086_v13 = vrot.slane %v5999_v39, %v12281_v49  ;;  %v11585_v16 = vrot.slane %v5985_v37, %v12280_v36  ;;  %v6015_v23 = vcombine.high %v5999_v39, %v5999_v39 }
 0xb4b   :  { %v6180_v63 = vadd.f32 %v8643_v0, %v6148_v58  ;;  %v6179_v3 = vadd.f32 %v6147_v51, %v5808_v50  ;;  %v6150_v44 = vadd.f32 %v6074_v10, %v11560_v5  ;;  %v6149_v29 = vadd.f32 %v6074_v10, %v11563_v26  ;;  %v8649_v20 = vpop.f32.mrb[92].mxu1 }
 0xb4c   :  { %v6152_v47 = vadd.f32 %v6078_v62, %v11560_v5  ;;  %v5828_v41 = vpop.f32.mrb[93].mxu1  ;;  %v6151_v28 = vadd.f32 %v6078_v62, %v11563_v26  ;;  %v6082_v52 = vrot.slane %v6016_v21, %v12281_v49  ;;  %v6156_v24 = vadd.f32 %v6086_v13, %v11560_v5 }
 0xb4d   :  { %vm6212_vm10 = vcmp.gt.f32.partialorder %v6180_v63, 0.0  ;;  %v6244_v25 = vmul.f32 0.2, %v6180_v63  ;;  %vm6211_vm5 = vcmp.gt.f32.partialorder %v6179_v3, 0.0  ;;  %v6243_v6 = vmul.f32 0.2, %v6179_v3 }
 0xb4e   :  { %v6182_v15 = vadd.f32 %v8646_v30, %v6150_v44  ;;  %v6181_v31 = vadd.f32 %v6149_v29, %v5818_v19  ;;  %v6184_v48 = vadd.f32 %v8649_v20, %v6152_v47  ;;  %v6183_v17 = vadd.f32 %v6151_v28, %v5828_v41 }
 0xb4f   :  { %v6276_v45 = vsel %vm6212_vm10, %v6180_v63, %v6244_v25  ;;  %v8652_v8 = vpop.f32.mrb[94].mxu1  ;;  %v6154_v7 = vadd.f32 %v6082_v52, %v11560_v5  ;;  %v6153_v0 = vadd.f32 %v6082_v52, %v11563_v26  ;;  %v6275_v38 = vsel %vm6211_vm5, %v6179_v3, %v6243_v6 }
 0xb50   :  { %v6246_v50 = vmul.f32 0.2, %v6182_v15  ;;  %vm6213_vm3 = vcmp.gt.f32.partialorder %v6181_v31, 0.0  ;;  %v6245_v60 = vmul.f32 0.2, %v6181_v31  ;;  %8705 = vmatprep.mubr.msk.f32.mxu0 %vm2253_vm7, %v6275_v38  ;;  %vm6214_vm11 = vcmp.gt.f32.partialorder %v6182_v15, 0.0 }
 0xb51   :  { %v6247_v22 = vmul.f32 0.2, %v6183_v17  ;;  %8706 = vmatmul.mubr.msk.f32.vlgmr.msra.gmra.mrb[100].mxu0 %vm2253_vm7, %v6276_v45  ;;  %vm6215_vm0 = vcmp.gt.f32.partialorder %v6183_v17, 0.0  ;;  %v6186_v53 = vadd.f32 %v8652_v8, %v6154_v7  ;;  %v5838_v37 = vpop.f32.mrb[95].mxu1  ;;  %v6155_v30 = vadd.f32 %v6086_v13, %v11563_v26 }
 0xb52   :  { %v6277_v14 = vsel %vm6213_vm3, %v6181_v31, %v6245_v60  ;;  %v6248_v32 = vmul.f32 0.2, %v6184_v48  ;;  %v6185_v18 = vadd.f32 %v6153_v0, %v5838_v37  ;;  %v6090_v39 = vrot.slane %v11585_v16, %v12281_v49 }
 0xb53   :  { %8708 = vmatprep.mubr.msk.f32.mxu0 %vm2253_vm7, %v6277_v14  ;;  %v8655_v19 = vpop.f32.mrb[96].mxu1  ;;  %v6106_v58 = vrot.slane %v11588_v12, %v12281_v49  ;;  %vm6216_vm2 = vcmp.gt.f32.partialorder %v6184_v48, 0.0  ;;  %v6278_v62 = vsel %vm6214_vm11, %v6182_v15, %v6246_v50  ;;  %v6094_v21 = vrot.slane %v6015_v23, %v12281_v49 }
 0xb54   :  { %v6188_v51 = vadd.f32 %v8655_v19, %v6156_v24  ;;  %v5848_v10 = vpop.f32.mrb[97].mxu1  ;;  %v6249_v63 = vmul.f32 0.2, %v6185_v18  ;;  %v6279_v3 = vsel %vm6215_vm0, %v6183_v17, %v6247_v22  ;;  %v6158_v44 = vadd.f32 %v6090_v39, %v11560_v5 }
 0xb55   :  { %v6187_v13 = vadd.f32 %v6155_v30, %v5848_v10  ;;  %8709 = vmatmul.mubr.msk.f32.gmra.mrb[102].mxu0 %vm2253_vm7, %v6278_v62  ;;  %vm6217_vm9 = vcmp.gt.f32.partialorder %v6185_v18, 0.0  ;;  %v6157_v29 = vadd.f32 %v6090_v39, %v11563_v26  ;;  %v6160_v20 = vadd.f32 %v6094_v21, %v11560_v5 }
 0xb56   :  { %8711 = vmatprep.mubr.msk.f32.mxu0 %vm2253_vm7, %v6279_v3  ;;  %v6063_v47 = vcombine.high %v11555_v27, %v11555_v27  ;;  %vm6218_vm10 = vcmp.gt.f32.partialorder %v6186_v53, 0.0  ;;  %v6250_v41 = vmul.f32 0.2, %v6186_v53  ;;  %v6280_v52 = vsel %vm6216_vm2, %v6184_v48, %v6248_v32 }
 0xb57   :  { %v8658_v28 = vpop.f32.mrb[98].mxu1  ;;  %v6159_v24 = vadd.f32 %v6094_v21, %v11563_v26  ;;  %vm6220_vm5 = vcmp.gt.f32.partialorder %v6188_v51, 0.0  ;;  %v6251_v25 = vmul.f32 0.2, %v6187_v13  ;;  %v6017_v31 = vcombine.high %v11585_v16, %v11585_v16 }
 0xb58   :  { %v6190_v6 = vadd.f32 %v8658_v28, %v6158_v44  ;;  %v5858_v15 = vpop.f32.mrb[99].mxu1  ;;  %v6281_v45 = vsel %vm6217_vm9, %v6185_v18, %v6249_v63  ;;  %v11625_v27 = vadd.f32 %v6106_v58, %v11560_v5  ;;  %v11628_v8 = vadd.f32 %v6106_v58, %v11563_v26 }
 0xb59   :  { %v6189_v17 = vadd.f32 %v6157_v29, %v5858_v15  ;;  %8712 = vmatmul.mubr.msk.f32.gmra.mrb[104].mxu0 %vm2253_vm7, %v6280_v52  ;;  %v6252_v48 = vmul.f32 0.2, %v6188_v51  ;;  %vm6219_vm3 = vcmp.gt.f32.partialorder %v6187_v13, 0.0  ;;  %v6098_v7 = vrot.slane %v6017_v31, %v12281_v49 }
 0xb5a   :  { %8714 = vmatprep.mubr.msk.f32.mxu0 %vm2253_vm7, %v6281_v45  ;;  %v6110_v0 = vrot.slane %v6063_v47, %v12281_v49  ;;  %v6282_v50 = vsel %vm6218_vm10, %v6186_v53, %v6250_v41  ;;  %v6065_v60 = vcombine.high %v11588_v12, %v11588_v12  ;;  %v6048_v23 = vrot.slane %v11570_v55, %v12280_v36 }
 0xb5b   :  { %v6253_v16 = vmul.f32 0.2, %v6189_v17  ;;  %v8661_v38 = vpop.f32.mrb[100].mxu1  ;;  %vm6221_vm11 = vcmp.gt.f32.partialorder %v6189_v17, 0.0  ;;  %v6162_v14 = vadd.f32 %v6098_v7, %v11560_v5  ;;  %v6161_v30 = vadd.f32 %v6098_v7, %v11563_v26 }
 0xb5c   :  { %v6192_v22 = vadd.f32 %v8661_v38, %v6160_v20  ;;  %v5868_v37 = vpop.f32.mrb[101].mxu1  ;;  %v6283_v18 = vsel %vm6219_vm3, %v6187_v13, %v6251_v25  ;;  %v6168_v53 = vadd.f32 %v6110_v0, %v11560_v5  ;;  %v11644_v19 = vadd.f32 %v6110_v0, %v11563_v26 }
 0xb5d   :  { %v6191_v32 = vadd.f32 %v6159_v24, %v5868_v37  ;;  %8715 = vmatmul.mubr.msk.f32.gmra.mrb[106].mxu0 %vm2253_vm7, %v6282_v50  ;;  %vm6222_vm0 = vcmp.gt.f32.partialorder %v6190_v6, 0.0  ;;  %v6284_v12 = vsel %vm6220_vm5, %v6188_v51, %v6252_v48  ;;  %v6114_v39 = vrot.slane %v6065_v60, %v12281_v49 }
 0xb5e   :  { %8717 = vmatprep.mubr.msk.f32.mxu0 %vm2253_vm7, %v6283_v18  ;;  %v6118_v58 = vrot.slane %v6048_v23, %v12281_v49  ;;  %v6254_v10 = vmul.f32 0.2, %v6190_v6  ;;  %v6285_v21 = vsel %vm6221_vm11, %v6189_v17, %v6253_v16  ;;  %v6062_v63 = vrot.slane %v6034_v9, %v12280_v36 }
 0xb5f   :  { %v8664_v62 = vpop.f32.mrb[102].mxu1  ;;  %v6064_v13 = vcombine.high %v6048_v23, %v6048_v23  ;;  %v6255_v3 = vmul.f32 0.2, %v6191_v32  ;;  %v6170_v20 = vadd.f32 %v6114_v39, %v11560_v5  ;;  %v6169_v51 = vadd.f32 %v6114_v39, %v11563_v26 }
 0xb60   :  { %v6194_v44 = vadd.f32 %v8664_v62, %v6162_v14  ;;  %v5878_v29 = vpop.f32.mrb[103].mxu1  ;;  %vm6223_vm2 = vcmp.gt.f32.partialorder %v6191_v32, 0.0  ;;  %v11659_v41 = vadd.f32 %v6118_v58, %v11560_v5  ;;  %v11662_v28 = vadd.f32 %v6118_v58, %v11563_v26 }
 0xb61   :  { %v6193_v47 = vadd.f32 %v6161_v30, %v5878_v29  ;;  %8718 = vmatmul.mubr.msk.f32.gmra.mrb[108].mxu0 %vm2253_vm7, %v6284_v12  ;;  %v6122_v36 = vrot.slane %v6062_v63, %v12281_v49  ;;  %v6126_v55 = vrot.slane %v6064_v13, %v12281_v49  ;;  %vm6224_vm9 = vcmp.gt.f32.partialorder %v6192_v22, 0.0 }
 0xb62   :  { %8720 = vmatprep.mubr.msk.f32.mxu0 %vm2253_vm7, %v6285_v21  ;;  %v6256_v9 = vmul.f32 0.2, %v6192_v22  ;;  %v6286_v24 = vsel %vm6222_vm0, %v6190_v6, %v6254_v10  ;;  %v6066_v25 = vcombine.high %v6062_v63, %v6062_v63  ;;  %v6287_v17 = vsel %vm6223_vm2, %v6191_v32, %v6255_v3 }
 0xb63   :  { %v8667_v52 = vpop.f32.mrb[104].mxu1  ;;  %v6174_v45 = vadd.f32 %v6122_v36, %v11560_v5  ;;  %v11671_v48 = vadd.f32 %v6122_v36, %v11563_v26  ;;  %v6257_v7 = vmul.f32 0.2, %v6193_v47  ;;  %v11676_v16 = vadd.f32 %v6126_v55, %v11560_v5 }
 0xb64   :  { %v6196_v15 = vadd.f32 %v8667_v52, %v11574_v35  ;;  %v5888_v31 = vpop.f32.mrb[105].mxu1  ;;  %v11679_v6 = vadd.f32 %v6126_v55, %v11563_v26  ;;  %vm6225_vm10 = vcmp.gt.f32.partialorder %v6193_v47, 0.0  ;;  %v6130_v35 = vrot.slane %v6066_v25, %v12281_v49 }
 0xb65   :  { %v6195_v0 = vadd.f32 %v11577_v42, %v5888_v31  ;;  %8721 = vmatmul.mubr.msk.f32.gmra.mrb[110].mxu0 %vm2253_vm7, %v6286_v24  ;;  %v6288_v50 = vsel %vm6224_vm9, %v6192_v22, %v6256_v9  ;;  %v6258_v60 = vmul.f32 0.2, %v6194_v44  ;;  %vm6226_vm5 = vcmp.gt.f32.partialorder %v6194_v44, 0.0 }
 0xb66   :  { %8723 = vmatprep.mubr.msk.f32.mxu0 %vm2253_vm7, %v6287_v17  ;;  %v11686_v37 = vadd.f32 %v6130_v35, %v11560_v5  ;;  %v11689_v14 = vadd.f32 %v6130_v35, %v11563_v26  ;;  %v6289_v49 = vsel %vm6225_vm10, %v6193_v47, %v6257_v7  ;;  %v6260_v18 = vmul.f32 0.2, %v6196_v15 }
 0xb67   :  { %v8670_v38 = vpop.f32.mrb[106].mxu1  ;;  %v6259_v30 = vmul.f32 0.2, %v6195_v0  ;;  %vm6227_vm3 = vcmp.gt.f32.partialorder %v6195_v0, 0.0  ;;  %v6290_v39 = vsel %vm6226_vm5, %v6194_v44, %v6258_v60  ;;  %vm6228_vm11 = vcmp.gt.f32.partialorder %v6196_v15, 0.0 }
 0xb68   :  { %v6198_v23 = vadd.f32 %v8670_v38, %v11625_v27  ;;  %v5898_v42 = vpop.f32.mrb[107].mxu1  ;;  %v6292_v63 = vsel %vm6228_vm11, %v6196_v15, %v6260_v18 }
 0xb69   :  { %v6197_v32 = vadd.f32 %v11628_v8, %v5898_v42  ;;  %8724 = vmatmul.mubr.msk.f32.gmra.mrb[112].mxu0 %vm2253_vm7, %v6288_v50  ;;  %v6291_v58 = vsel %vm6227_vm3, %v6195_v0, %v6259_v30 }
 0xb6a   :  { %8726 = vmatprep.mubr.msk.f32.mxu0 %vm2253_vm7, %v6289_v49  ;;  %v6262_v10 = vmul.f32 0.2, %v6198_v23  ;;  %vm6230_vm2 = vcmp.gt.f32.partialorder %v6198_v23, 0.0 }
 0xb6b   :  { %v8673_v22 = vpop.f32.mrb[108].mxu1  ;;  %v6261_v5 = vmul.f32 0.2, %v6197_v32  ;;  %vm6229_vm0 = vcmp.gt.f32.partialorder %v6197_v32, 0.0 }
 0xb6c   :  { %v6200_v27 = vadd.f32 %v8673_v22, %v6168_v53  ;;  %v5908_v12 = vpop.f32.mrb[109].mxu1  ;;  %v6294_v36 = vsel %vm6230_vm2, %v6198_v23, %v6262_v10 }
 0xb6d   :  { %v6199_v26 = vadd.f32 %v11644_v19, %v5908_v12  ;;  %8727 = vmatmul.mubr.msk.f32.gmra.mrb[114].mxu0 %vm2253_vm7, %v6290_v39  ;;  %v6293_v3 = vsel %vm6229_vm0, %v6197_v32, %v6261_v5 }
 0xb6e   :  { %8729 = vmatprep.mubr.msk.f32.mxu0 %vm2253_vm7, %v6291_v58  ;;  %v6264_v44 = vmul.f32 0.2, %v6200_v27  ;;  %vm6232_vm10 = vcmp.gt.f32.partialorder %v6200_v27, 0.0 }
 0xb6f   :  { %v8676_v8 = vpop.f32.mrb[110].mxu1  ;;  %v6263_v13 = vmul.f32 0.2, %v6199_v26  ;;  %vm6231_vm9 = vcmp.gt.f32.partialorder %v6199_v26, 0.0 }
 0xb70   :  { %v6202_v62 = vadd.f32 %v8676_v8, %v6170_v20  ;;  %v5918_v21 = vpop.f32.mrb[111].mxu1  ;;  %v6296_v15 = vsel %vm6232_vm10, %v6200_v27, %v6264_v44 }
 0xb71   :  { %v6201_v53 = vadd.f32 %v6169_v51, %v5918_v21  ;;  %8730 = vmatmul.mubr.msk.f32.gmra.mrb[116].mxu0 %vm2253_vm7, %v6292_v63  ;;  %v6295_v9 = vsel %vm6231_vm9, %v6199_v26, %v6263_v13 }
 0xb72   :  { %8732 = vmatprep.mubr.msk.f32.mxu0 %vm2253_vm7, %v6293_v3  ;;  %v6266_v52 = vmul.f32 0.2, %v6202_v62  ;;  %vm6234_vm3 = vcmp.gt.f32.partialorder %v6202_v62, 0.0 }
 0xb73   :  { %v8679_v19 = vpop.f32.mrb[112].mxu1  ;;  %v6265_v55 = vmul.f32 0.2, %v6201_v53  ;;  %vm6233_vm5 = vcmp.gt.f32.partialorder %v6201_v53, 0.0 }
 0xb74   :  { %v6204_v29 = vadd.f32 %v8679_v19, %v11659_v41  ;;  %v5928_v47 = vpop.f32.mrb[113].mxu1  ;;  %v6298_v38 = vsel %vm6234_vm3, %v6202_v62, %v6266_v52 }
 0xb75   :  { %v6203_v20 = vadd.f32 %v11662_v28, %v5928_v47  ;;  %8733 = vmatmul.mubr.msk.f32.gmra.mrb[118].mxu0 %vm2253_vm7, %v6294_v36  ;;  %v6297_v17 = vsel %vm6233_vm5, %v6201_v53, %v6265_v55 }
 0xb76   :  { %8735 = vmatprep.mubr.msk.f32.mxu0 %vm2253_vm7, %v6295_v9  ;;  %v6268_v7 = vmul.f32 0.2, %v6204_v29  ;;  %vm6236_vm0 = vcmp.gt.f32.partialorder %v6204_v29, 0.0 }
 0xb77   :  { %v8682_v51 = vpop.f32.mrb[114].mxu1  ;;  %v6267_v31 = vmul.f32 0.2, %v6203_v20  ;;  %vm6235_vm11 = vcmp.gt.f32.partialorder %v6203_v20, 0.0 }
 0xb78   :  { %v6206_v24 = vadd.f32 %v8682_v51, %v6174_v45  ;;  %v5938_v25 = vpop.f32.mrb[115].mxu1  ;;  %v6300_v32 = vsel %vm6236_vm0, %v6204_v29, %v6268_v7  ;;  %vm12344_vm0 = vcmask 1046534  }
 0xb79   :  { %v6205_v41 = vadd.f32 %v11671_v48, %v5938_v25  ;;  %8736 = vmatmul.mubr.msk.f32.gmra.mrb[120].mxu0 %vm2253_vm7, %v6296_v15  ;;  %v6299_v60 = vsel %vm6235_vm11, %v6203_v20, %v6267_v31 }
 0xb7a   :  { %8738 = vmatprep.mubr.msk.f32.mxu0 %vm2253_vm7, %v6297_v17  ;;  %v6270_v23 = vmul.f32 0.2, %v6206_v24  ;;  %vm6238_vm9 = vcmp.gt.f32.partialorder %v6206_v24, 0.0 }
 0xb7b   :  { %v8685_v28 = vpop.f32.mrb[116].mxu1  ;;  %v6269_v45 = vmul.f32 0.2, %v6205_v41  ;;  %vm6237_vm2 = vcmp.gt.f32.partialorder %v6205_v41, 0.0 }
 0xb7c   :  { %v6208_v0 = vadd.f32 %v8685_v28, %v11676_v16  ;;  %v5948_v35 = vpop.f32.mrb[117].mxu1  ;;  %v6302_v39 = vsel %vm6238_vm9, %v6206_v24, %v6270_v23  ;;  %vm12346_vm9 = vcmask 130048  }
 0xb7d   :  { %v6207_v50 = vadd.f32 %v11679_v6, %v5948_v35  ;;  %8739 = vmatmul.mubr.msk.f32.gmra.mrb[122].mxu0 %vm2253_vm7, %v6298_v38  ;;  %v6301_v22 = vsel %vm6237_vm2, %v6205_v41, %v6269_v45  ;;  %vm12345_vm2 = vcmask 1047559  }
 0xb7e   :  { %8741 = vmatprep.mubr.msk.f32.mxu0 %vm2253_vm7, %v6299_v60  ;;  %v6272_v18 = vmul.f32 0.2, %v6208_v0  ;;  %vm6240_vm5 = vcmp.gt.f32.partialorder %v6208_v0, 0.0 }
 0xb7f   :  { %v8688_v48 = vpop.f32.mrb[118].mxu1  ;;  %v6271_v16 = vmul.f32 0.2, %v6207_v50  ;;  %vm6239_vm10 = vcmp.gt.f32.partialorder %v6207_v50, 0.0 }
 0xb80   :  { %v6210_v42 = vadd.f32 %v8688_v48, %v11686_v37  ;;  %v5958_v30 = vpop.f32.mrb[119].mxu1  ;;  %v6304_v8 = vsel %vm6240_vm5, %v6208_v0, %v6272_v18  ;;  %vm12349_vm5 = vmmov %vm12344_vm0 }
 0xb81   :  { %v6209_v49 = vadd.f32 %v11689_v14, %v5958_v30  ;;  %8742 = vmatmul.mubr.msk.f32.gmra.mrb[124].mxu0 %vm2253_vm7, %v6300_v32  ;;  %v6303_v26 = vsel %vm6239_vm10, %v6207_v50, %v6271_v16 }
 0xb82   :  { %8744 = vmatprep.mubr.msk.f32.mxu0 %vm2253_vm7, %v6301_v22  ;;  %v6274_v58 = vmul.f32 0.2, %v6210_v42  ;;  %vm6242_vm11 = vcmp.gt.f32.partialorder %v6210_v42, 0.0 }
 0xb83   :  { %v8763_v6 = vpop.f32.mrb[120].mxu1  ;;  %v6273_v37 = vmul.f32 0.2, %v6209_v49  ;;  %vm6241_vm3 = vcmp.gt.f32.partialorder %v6209_v49, 0.0 }
 0xb84   :  { %v7027_v27 = vadd.f32 %v8763_v6, %v11551_v34  ;;  %v7021_v12 = vpop.f32.mrb[121].mxu1  ;;  %v6306_v62 = vsel %vm6242_vm11, %v6210_v42, %v6274_v58  ;;  %vm12351_vm11 = vmmov %vm12346_vm9 }
 0xb85   :  { %v7022_v5 = vadd.f32 %v11551_v34, %v7021_v12  ;;  %8745 = vmatmul.mubr.msk.f32.gmra.mrb[126].mxu0 %vm2253_vm7, %v6302_v39  ;;  %v6305_v10 = vsel %vm6241_vm3, %v6209_v49, %v6273_v37  ;;  %vm12350_vm3 = vmmov %vm12345_vm2 }
 0xb86   :  { %8747 = vmatprep.mubr.msk.f32.mxu0 %vm2253_vm7, %v6303_v26 }
 0xb87   :  { %v8953_v14 = vpack.c.bf16 %v7027_v27, %v7022_v5 }
 0xb89   :  { %8748 = vmatmul.mubr.msk.f32.gmra.mrb[128].mxu0 %vm2253_vm7, %v6304_v8  ;;  %8954 = vmatprep.subr.bf16.mxu1 %v8953_v14 }
 0xb8a   :  { %8750 = vmatprep.mubr.msk.f32.mxu0 %vm2253_vm7, %v6305_v10  ;;  %8956 = vmatpush3.bf16.msra.mxu1 %v8953_v14 }
 0xb8d   :  { %8751 = vmatmul.mubr.msk.f32.gmra.mrb[130].mxu0 %vm2253_vm7, %v6306_v62  ;;  %vm12343_vm7 = vcmask 1045509  }
 0xb8e   :  { %vm12348_vm10 = vmmov %vm12343_vm7 }
 0xc24   :  { %v11721_v34 = vpop.f32.mrb[100].mxu0 }
 0xc25   :  { %6672 = vperm.xlu0 %9050, %v11721_v34   ;;  %v11724_v21 = vpop.f32.mrb[101].mxu0 }
 0xc26   :  { %6669 = vperm.xlu1 %9051, %v11724_v21  }
 0xc28   :  { %v11727_v63 = vpop.f32.mrb[102].mxu0 }
 0xc29   :  { %6678 = vperm.xlu0 %9050, %v11727_v63   ;;  %v11730_v13 = vpop.f32.mrb[103].mxu0 }
 0xc2c   :  { %v11732_v53 = vpop.f32.mrb[104].mxu0 }
 0xc2d   :  { %6675 = vperm.xlu0 %9050, %v11730_v13   ;;  %v11735_v3 = vpop.f32.mrb[105].mxu0 }
 0xc2e   :  { %6681 = vperm.xlu1 %9051, %v11735_v3  }
 0xc30   :  { %v11738_v19 = vpop.f32.mrb[106].mxu0 }
 0xc31   :  { %6684 = vperm.xlu0 %9050, %v11732_v53   ;;  %v11741_v44 = vpop.f32.mrb[107].mxu0 }
 0xc32   :  { %6687 = vperm.xlu1 %9051, %v11741_v44  }
 0xc34   :  { %v11744_v29 = vpop.f32.mrb[108].mxu0 }
 0xc35   :  { %6690 = vperm.xlu0 %9050, %v11738_v19   ;;  %v11747_v47 = vpop.f32.mrb[109].mxu0 }
 0xc36   :  { %6693 = vperm.xlu1 %9051, %v11747_v47  }
 0xc38   :  { %v11750_v36 = vpop.f32.mrb[110].mxu0 }
 0xc39   :  { %6696 = vperm.xlu0 %9050, %v11744_v29   ;;  %v11753_v55 = vpop.f32.mrb[111].mxu0 }
 0xc3a   :  { %6699 = vperm.xlu1 %9051, %v11753_v55  }
 0xc3c   :  { %v11756_v20 = vpop.f32.mrb[112].mxu0 }
 0xc3d   :  { %6702 = vperm.xlu0 %9050, %v11750_v36   ;;  %v11759_v9 = vpop.f32.mrb[113].mxu0 }
 0xc3e   :  { %6705 = vperm.xlu1 %9051, %v11759_v9  }
 0xc40   :  { %v11762_v51 = vpop.f32.mrb[114].mxu0 }
 0xc41   :  { %6708 = vperm.xlu0 %9050, %v11756_v20   ;;  %v11765_v52 = vpop.f32.mrb[115].mxu0 }
 0xc42   :  { %6711 = vperm.xlu1 %9051, %v11765_v52  }
 0xc44   :  { %v11768_v24 = vpop.f32.mrb[116].mxu0 }
 0xc45   :  { %6714 = vperm.xlu0 %9050, %v11762_v51   ;;  %v11771_v25 = vpop.f32.mrb[117].mxu0 }
 0xc46   :  { %6717 = vperm.xlu1 %9051, %v11771_v25  }
 0xc48   :  { %v11774_v15 = vpop.f32.mrb[118].mxu0 }
 0xc49   :  { %6720 = vperm.xlu0 %9050, %v11768_v24   ;;  %v11777_v31 = vpop.f32.mrb[119].mxu0 }
 0xc4a   :  { %6723 = vperm.xlu1 %9051, %v11777_v31  }
 0xc4c   :  { %v11780_v41 = vpop.f32.mrb[120].mxu0 }
 0xc4d   :  { %6726 = vperm.xlu0 %9050, %v11774_v15   ;;  %v11783_v17 = vpop.f32.mrb[121].mxu0 }
 0xc4e   :  { %6729 = vperm.xlu1 %9051, %v11783_v17  }
 0xc50   :  { %v11786_v28 = vpop.f32.mrb[122].mxu0 }
 0xc51   :  { %6732 = vperm.xlu0 %9050, %v11780_v41   ;;  %v11789_v7 = vpop.f32.mrb[123].mxu0 }
 0xc52   :  { %6735 = vperm.xlu1 %9051, %v11789_v7  }
 0xc54   :  { %v11792_v0 = vpop.f32.mrb[124].mxu0 }
 0xc55   :  { %6738 = vperm.xlu0 %9050, %v11786_v28   ;;  %v11795_v35 = vpop.f32.mrb[125].mxu0 }
 0xc56   :  { %6741 = vperm.xlu1 %9051, %v11795_v35  }
 0xc58   :  { %v11798_v38 = vpop.f32.mrb[126].mxu0 }
 0xc59   :  { %6744 = vperm.xlu0 %9050, %v11792_v0   ;;  %v11801_v45 = vpop.f32.mrb[127].mxu0 }
 0xc5a   :  { %6747 = vperm.xlu1 %9051, %v11801_v45  }
 0xc5c   :  { %v11804_v50 = vpop.f32.mrb[128].mxu0 }
 0xc5d   :  { %6750 = vperm.xlu0 %9050, %v11798_v38   ;;  %v11807_v60 = vpop.f32.mrb[129].mxu0 }
 0xc5e   :  { %6753 = vperm.xlu1 %9051, %v11807_v60  }
 0xc60   :  { %v11810_v48 = vpop.f32.mrb[130].mxu0 }
 0xc61   :  { %6756 = vperm.xlu0 %9050, %v11804_v50   ;;  %v11813_v23 = vpop.f32.mrb[131].mxu0 }
 0xc62   :  { %6759 = vperm.xlu1 %9051, %v11813_v23  }
 0xc65   :  { %6762 = vperm.xlu0 %9050, %v11810_v48  }
 0xc66   :  { %9062 = vset.pattern.permute.xlu1 %v12282_v56 }
 0xc69   :  { %9063 = vset.pattern.permute.xlu0 %v12282_v56 }
 0xca4   :  { %v6673_v42 = vpop.permute.xlu0 %6672 }
 0xca5   :  { %v6670_v32 = vpop.permute.xlu1 %6669  ;;  %v6771_v14 = vrot.slane %v6673_v42, %v10534_v11 }
 0xca6   :  { %v6767_v56 = vrot.slane %v6670_v32, %v10531_v2 }
 0xca8   :  { %v6679_v30 = vpop.permute.xlu0 %6678 }
 0xca9   :  { %v6780_v58 = vrot.slane %v6679_v30, %v10534_v11  ;;  %v6772_v30 = vsel %vm2714_vm12, %v6771_v14, %v6767_v56 }
 0xcac   :  { %v6676_v16 = vpop.permute.xlu0 %6675 }
 0xcad   :  { %v6682_v49 = vpop.permute.xlu1 %6681  ;;  %v6776_v37 = vrot.slane %v6676_v16, %v10531_v2 }
 0xcae   :  { %v6785_v62 = vrot.slane %v6682_v49, %v10531_v2 }
 0xcaf   :  { %v6781_v40 = vsel %vm2714_vm12, %v6780_v58, %v6776_v37 }
 0xcb0   :  { %v6685_v22 = vpop.permute.xlu0 %6684  ;;  %v6908_v37 = vsel %vm2851_vm13, %v6781_v40, %v6772_v30 }
 0xcb1   :  { %v6688_v6 = vpop.permute.xlu1 %6687  ;;  %v6789_v5 = vrot.slane %v6685_v22, %v10534_v11 }
 0xcb2   :  { %v6794_v16 = vrot.slane %v6688_v6, %v10531_v2 }
 0xcb3   :  { %v6790_v57 = vsel %vm2714_vm12, %v6789_v5, %v6785_v62 }
 0xcb4   :  { %v6691_v18 = vpop.permute.xlu0 %6690  ;;  %v6909_v5 = vsel %vm2853_vm14, %v6790_v57, %v6908_v37 }
 0xcb5   :  { %v6694_v27 = vpop.permute.xlu1 %6693  ;;  %v6798_v8 = vrot.slane %v6691_v18, %v10534_v11 }
 0xcb6   :  { %v6803_v42 = vrot.slane %v6694_v27, %v10531_v2 }
 0xcb7   :  { %v6799_v18 = vsel %vm2714_vm12, %v6798_v8, %v6794_v16 }
 0xcb8   :  { %v6697_v12 = vpop.permute.xlu0 %6696  ;;  %v6910_v58 = vsel %vm2855_vm15, %v6799_v18, %v6909_v5 }
 0xcb9   :  { %v6700_v39 = vpop.permute.xlu1 %6699  ;;  %v6807_v61 = vrot.slane %v6697_v12, %v10534_v11 }
 0xcba   :  { %v6812_v46 = vrot.slane %v6700_v39, %v10531_v2 }
 0xcbb   :  { %v6808_v6 = vsel %vm2714_vm12, %v6807_v61, %v6803_v42 }
 0xcbc   :  { %v6703_v26 = vpop.permute.xlu0 %6702  ;;  %v6911_v39 = vsel %vm2857_vm1, %v6808_v6, %v6910_v58 }
 0xcbd   :  { %v6706_v10 = vpop.permute.xlu1 %6705  ;;  %v6816_v22 = vrot.slane %v6703_v26, %v10534_v11 }
 0xcbe   :  { %v6821_v26 = vrot.slane %v6706_v10, %v10531_v2 }
 0xcbf   :  { %v6817_v27 = vsel %vm2714_vm12, %v6816_v22, %v6812_v46 }
 0xcc0   :  { %v6709_v32 = vpop.permute.xlu0 %6708  ;;  %v6912_v61 = vsel %vm12343_vm7, %v6817_v27, %v6911_v39  ;;  %vm12353_vm7 = vmmov %vm12346_vm9 }
 0xcc1   :  { %v6825_v49 = vrot.slane %v6709_v32, %v10534_v11  ;;  %v6712_v12 = vpop.permute.xlu1 %6711 }
 0xcc2   :  { %v6830_v8 = vrot.slane %v6712_v12, %v10531_v2 }
 0xcc3   :  { %v6826_v14 = vsel %vm2714_vm12, %v6825_v49, %v6821_v26 }
 0xcc4   :  { %v6715_v56 = vpop.permute.xlu0 %6714  ;;  %v6913_v57 = vsel %vm12344_vm0, %v6826_v14, %v6912_v61  ;;  %vm12354_vm0 = vmmov %vm12353_vm7 }
 0xcc5   :  { %v6834_v62 = vrot.slane %v6715_v56, %v10534_v11  ;;  %v6718_v40 = vpop.permute.xlu1 %6717  ;;  %v12347_v56 = vpack.i.bf16 %v11413_v59, %v11408_v1 }
 0xcc7   :  { %v6835_v10 = vsel %vm2714_vm12, %v6834_v62, %v6830_v8 }
 0xcc8   :  { %v6721_v16 = vpop.permute.xlu0 %6720  ;;  %v6914_v46 = vsel %vm12345_vm2, %v6835_v10, %v6913_v57  ;;  %vm12357_vm2 = vmmov %vm12348_vm10 }
 0xcc9   :  { %v6724_v22 = vpop.permute.xlu1 %6723  ;;  %v11852_v42 = vsel %vm10567_vm6, %v6914_v46, -1e+30  ;;  %v6843_v39 = vrot.slane %v6721_v16, %v10534_v11  ;;  %v6839_v46 = vrot.slane %v6718_v40, %v10531_v2 }
 0xcca   :  { %v6926_v32 = vsel %vm12346_vm9, %v11852_v42, -inf  ;;  %v6848_v8 = vrot.slane %v6724_v22, %v10531_v2  ;;  %vm12358_vm9 = vmmov %vm12349_vm5 }
 0xccb   :  { %6927 = vmax.xlane.f32.xlu1 %v6926_v32 }
 0xccc   :  { %v6727_v30 = vpop.permute.xlu0 %6726 }
 0xccd   :  { %v6730_v18 = vpop.permute.xlu1 %6729  ;;  %v6852_v27 = vrot.slane %v6727_v30, %v10534_v11 }
 0xcce   :  { %v6857_v10 = vrot.slane %v6730_v18, %v10531_v2 }
 0xccf   :  { %v6853_v32 = vsel %vm2714_vm12, %v6852_v27, %v6848_v8 }
 0xcd0   :  { %v6733_v49 = vpop.permute.xlu0 %6732 }
 0xcd1   :  { %v6736_v12 = vpop.permute.xlu1 %6735  ;;  %v6861_v58 = vrot.slane %v6733_v49, %v10534_v11  ;;  %v6844_v49 = vsel %vm2714_vm12, %v6843_v39, %v6839_v46 }
 0xcd2   :  { %v6866_v30 = vrot.slane %v6736_v12, %v10531_v2 }
 0xcd3   :  { %v6862_v59 = vsel %vm2714_vm12, %v6861_v58, %v6857_v10 }
 0xcd4   :  { %v6739_v37 = vpop.permute.xlu0 %6738 }
 0xcd5   :  { %v6742_v6 = vpop.permute.xlu1 %6741  ;;  %v6870_v62 = vrot.slane %v6739_v37, %v10534_v11 }
 0xcd6   :  { %v6875_v16 = vrot.slane %v6742_v6, %v10531_v2 }
 0xcd7   :  { %v6871_v18 = vsel %vm2714_vm12, %v6870_v62, %v6866_v30 }
 0xcd8   :  { %v6745_v26 = vpop.permute.xlu0 %6744 }
 0xcd9   :  { %v6748_v5 = vpop.permute.xlu1 %6747  ;;  %v6879_v57 = vrot.slane %v6745_v26, %v10534_v11  ;;  %v6915_v26 = vsel %vm2851_vm13, %v6853_v32, %v6844_v49 }
 0xcda   :  { %v6884_v37 = vrot.slane %v6748_v5, %v10531_v2  ;;  %v6916_v6 = vsel %vm2853_vm14, %v6862_v59, %v6915_v26 }
 0xcdb   :  { %v6880_v12 = vsel %vm2714_vm12, %v6879_v57, %v6875_v16 }
 0xcdc   :  { %v6751_v14 = vpop.permute.xlu0 %6750  ;;  %9058 = vrot.lane.b32.xlu1 %v12347_v56, %s9155_s2 }
 0xcdd   :  { %v6754_v61 = vpop.permute.xlu1 %6753  ;;  %v6888_v1 = vrot.slane %v6751_v14, %v10534_v11 }
 0xcde   :  { %v6893_v27 = vrot.slane %v6754_v61, %v10531_v2 }
 0xcdf   :  { %v6889_v14 = vsel %vm2714_vm12, %v6888_v1, %v6884_v37 }
 0xce0   :  { %v6757_v22 = vpop.permute.xlu0 %6756  ;;  %7118 = vperm.xlu1 %9062, %v11724_v21   ;;  %v6917_v21 = vsel %vm2855_vm15, %v6871_v18, %v6916_v6 }
 0xce1   :  { %v6897_v40 = vrot.slane %v6757_v22, %v10534_v11  ;;  %v6760_v58 = vpop.permute.xlu1 %6759  ;;  %v6918_v5 = vsel %vm2857_vm1, %v6880_v12, %v6917_v21 }
 0xce2   :  { %v6902_v8 = vrot.slane %v6760_v58, %v10531_v2  ;;  %v6919_v61 = vsel %vm12348_vm10, %v6889_v14, %v6918_v5  ;;  %vm12359_vm10 = vmmov %vm12350_vm3 }
 0xce3   :  { %v6898_v56 = vsel %vm2714_vm12, %v6897_v40, %v6893_v27 }
 0xce4   :  { %v6763_v39 = vpop.permute.xlu0 %6762  ;;  %7124 = vperm.xlu1 %9062, %v11730_v13   ;;  %v6920_v57 = vsel %vm12349_vm5, %v6898_v56, %v6919_v61  ;;  %vm12360_vm5 = vmmov %vm12354_vm0 }
 0xce5   :  { %v6906_v62 = vrot.slane %v6763_v39, %v10534_v11 }
 0xce7   :  { %v6907_v10 = vsel %vm2714_vm12, %v6906_v62, %v6902_v8 }
 0xce8   :  { %7127 = vperm.xlu1 %9062, %v11727_v63   ;;  %v6921_v46 = vsel %vm12350_vm3, %v6907_v10, %v6920_v57  ;;  %v12352_v63 = vpack.i.bf16 %v11393_v54, %v11388_v43 }
 0xce9   :  { %v6925_v32 = vsel %vm10627_vm8, %v6921_v46, -1e+30 }
 0xcea   :  { %v6929_v13 = vsel %vm12351_vm11, %v6925_v32, -inf  ;;  %vm12369_vm11 = vmmov %vm12354_vm0 }
 0xceb   :  { %6930 = vmax.xlane.f32.xlu0 %v6929_v13 }
 0xcec   :  { %7133 = vperm.xlu1 %9062, %v11732_v53  }
 0xcf0   :  { %7169 = vperm.xlu1 %9062, %v11768_v24  }
 0xcf4   :  { %7175 = vperm.xlu1 %9062, %v11774_v15  }
 0xcf8   :  { %7139 = vperm.xlu1 %9062, %v11738_v19  }
 0xcfc   :  { %7181 = vperm.xlu1 %9062, %v11780_v41  }
 0xd00   :  { %7145 = vperm.xlu1 %9062, %v11744_v29  }
 0xd01   :  { %9053 = vrot.lane.b32.xlu0 %v12352_v63, %s9155_s2 }
 0xd04   :  { %7187 = vperm.xlu1 %9062, %v11786_v28  }
 0xd05   :  { %7121 = vperm.xlu0 %9063, %v11721_v34  }
 0xd08   :  { %7151 = vperm.xlu1 %9062, %v11750_v36  }
 0xd09   :  { %7130 = vperm.xlu0 %9063, %v11735_v3  }
 0xd0c   :  { %7193 = vperm.xlu1 %9062, %v11792_v0  }
 0xd0d   :  { %7166 = vperm.xlu0 %9063, %v11771_v25  }
 0xd10   :  { %7157 = vperm.xlu1 %9062, %v11756_v20  }
 0xd11   :  { %7172 = vperm.xlu0 %9063, %v11777_v31  }
 0xd14   :  { %7199 = vperm.xlu1 %9062, %v11798_v38  }
 0xd15   :  { %7136 = vperm.xlu0 %9063, %v11741_v44  }
 0xd18   :  { %7163 = vperm.xlu1 %9062, %v11762_v51  }
 0xd19   :  { %7178 = vperm.xlu0 %9063, %v11783_v17  }
 0xd1c   :  { %7205 = vperm.xlu1 %9062, %v11804_v50  }
 0xd1d   :  { %7142 = vperm.xlu0 %9063, %v11747_v47  }
 0xd20   :  { %7211 = vperm.xlu1 %9062, %v11810_v48  }
 0xd21   :  { %7184 = vperm.xlu0 %9063, %v11789_v7  }
 0xd25   :  { %7148 = vperm.xlu0 %9063, %v11753_v55  }
 0xd29   :  { %7190 = vperm.xlu0 %9063, %v11795_v35  }
 0xd2d   :  { %7154 = vperm.xlu0 %9063, %v11759_v9  }
 0xd31   :  { %7196 = vperm.xlu0 %9063, %v11801_v45   ;;  %v12355_v45 = vld [vmem:[#allocation4_spill] sm:$0xff] }
 0xd35   :  { %7160 = vperm.xlu0 %9063, %v11765_v52  }
 0xd39   :  { %7202 = vperm.xlu0 %9063, %v11807_v60  }
 0xd3d   :  { %7208 = vperm.xlu0 %9063, %v11813_v23   ;;  %v12356_v23 = vld [vmem:[#allocation5_spill] sm:$0xff] }
 0xd58   :  { %v6928_v43 = vpop.xlane.xlu1 %6927 }
 0xd59   :  { %v6932_v54 = vsub.f32 %v11852_v42, %v6928_v43 }
 0xd5b   :  { %v6934_v34 = vmul.f32 1.442695, %v6932_v54 }
 0xd5c   :  { %v9059_v53 = vpop.permute.xlu1 %9058 }
 0xd5d   :  { %9128 = vpow2.f32 %v6934_v34  ;;  %v9061_v41 = vunpack.i.h.bf16 %v9059_v53  ;;  %v9060_v17 = vunpack.i.l.bf16 %v9059_v53 }
 0xd5f   :  { %v8961_v35 = vpack.c.bf16 %v9061_v41, %v9060_v17 }
 0xd60   :  { %v7119_v3 = vpop.permute.xlu1 %7118 }
 0xd61   :  { %v7216_v6 = vrot.slane %v7119_v3, %v10531_v2 }
 0xd64   :  { %v11931_v19 = vpop.permute.xlu1 %7124 }
 0xd65   :  { %v7225_v8 = vrot.slane %v11931_v19, %v10531_v2 }
 0xd67   :  { %v11933_v44 = vpop.eup %9128 }
 0xd68   :  { %8768 = vmatprep.mubr.msk.f32.mxu1 %vm12353_vm7, %v11933_v44  ;;  %v7128_v29 = vpop.permute.xlu1 %7127  ;;  %vm12370_vm7 = vmmov %vm12354_vm0 }
 0xd69   :  { %v7229_v14 = vrot.slane %v7128_v29, %v10534_v11 }
 0xd6b   :  { %v7230_v63 = vsel %vm2714_vm12, %v7229_v14, %v7225_v8 }
 0xd6c   :  { %v7134_v47 = vpop.permute.xlu1 %7133 }
 0xd6d   :  { %v7238_v56 = vrot.slane %v7134_v47, %v10534_v11 }
 0xd70   :  { %v11937_v36 = vpop.permute.xlu1 %7169 }
 0xd71   :  { %v7292_v34 = vrot.slane %v11937_v36, %v10534_v11 }
 0xd74   :  { %v11939_v55 = vpop.permute.xlu1 %7175 }
 0xd75   :  { %v7301_v29 = vrot.slane %v11939_v55, %v10534_v11 }
 0xd78   :  { %v6931_v20 = vpop.xlane.xlu0 %6930  ;;  %v7140_v15 = vpop.permute.xlu1 %7139 }
 0xd79   :  { %v6933_v9 = vsub.f32 %v6925_v32, %v6931_v20  ;;  %v7247_v62 = vrot.slane %v7140_v15, %v10534_v11 }
 0xd7b   :  { %v6936_v51 = vmul.f32 1.442695, %v6933_v9 }
 0xd7c   :  { %v9054_v52 = vpop.permute.xlu0 %9053  ;;  %v11941_v28 = vpop.permute.xlu1 %7181 }
 0xd7d   :  { %9130 = vpow2.f32 %v6936_v51  ;;  %v9056_v24 = vunpack.i.h.bf16 %v9054_v52  ;;  %v9055_v25 = vunpack.i.l.bf16 %v9054_v52 }
 0xd7f   :  { %v8957_v31 = vpack.c.bf16 %v9056_v24, %v9055_v25 }
 0xd80   :  { %v7146_v50 = vpop.permute.xlu1 %7145 }
 0xd81   :  { %8958 = vmatprep.subr.bf16.mxu1 %v8957_v31  ;;  %v7256_v57 = vrot.slane %v7146_v50, %v10534_v11 }
 0xd84   :  { %v7122_v7 = vpop.permute.xlu0 %7121  ;;  %v11951_v48 = vpop.permute.xlu1 %7187 }
 0xd85   :  { %v7220_v12 = vrot.slane %v7122_v7, %v10534_v11  ;;  %v7310_v7 = vrot.slane %v11941_v28, %v10534_v11 }
 0xd87   :  { %v11943_v0 = vpop.eup %9130  ;;  %v7221_v61 = vsel %vm2714_vm12, %v7220_v12, %v7216_v6 }
 0xd88   :  { %v7131_v38 = vpop.permute.xlu0 %7130  ;;  %8769 = vmatmul.mubr.msk.f32.vlgmr.msra.gmra.mrb[122].mxu1 %vm12354_vm0, %v11943_v0  ;;  %v7152_v1 = vpop.permute.xlu1 %7151  ;;  %v7357_v53 = vsel %vm2851_vm13, %v7230_v63, %v7221_v61 }
 0xd89   :  { %8960 = vmatpush3.bf16.msra.mxu1 %v8957_v31  ;;  %8779 = vmatprep.mubr.msk.f32.mxu1 %vm1414_vm4, %v12355_v45  ;;  %v7234_v27 = vrot.slane %v7131_v38, %v10531_v2  ;;  %v7265_v43 = vrot.slane %v7152_v1, %v10534_v11 }
 0xd8a   :  { %8962 = vmatprep.subr.bf16.mxu1 %v8961_v35 }
 0xd8b   :  { %v7239_v46 = vsel %vm2714_vm12, %v7238_v56, %v7234_v27 }
 0xd8c   :  { %v11949_v60 = vpop.permute.xlu0 %7166  ;;  %v11955_v16 = vpop.permute.xlu1 %7193  ;;  %v7358_v47 = vsel %vm2853_vm14, %v7239_v46, %v7357_v53 }
 0xd8d   :  { %8964 = vmatpush3.bf16.msra.mxu1 %v8961_v35  ;;  %v7288_v51 = vrot.slane %v11949_v60, %v10531_v2  ;;  %v7319_v35 = vrot.slane %v11951_v48, %v10534_v11  ;;  %v7328_v28 = vrot.slane %v11955_v16, %v10534_v11 }
 0xd90   :  { %8780 = vmatmul.mubr.msk.f32.vlgmr.msra.gmra.mrb[124].mxu1 %vm1414_vm4, %v12356_v23  ;;  %v7173_v42 = vpop.permute.xlu0 %7172  ;;  %v7158_v18 = vpop.permute.xlu1 %7157 }
 0xd91   :  { %v7274_v3 = vrot.slane %v7158_v18, %v10534_v11  ;;  %v7297_v20 = vrot.slane %v7173_v42, %v10531_v2 }
 0xd93   :  { %v7302_v50 = vsel %vm2714_vm12, %v7301_v29, %v7297_v20 }
 0xd94   :  { %v7137_v30 = vpop.permute.xlu0 %7136  ;;  %v11957_v40 = vpop.permute.xlu1 %7199 }
 0xd95   :  { %v7243_v21 = vrot.slane %v7137_v30, %v10531_v2  ;;  %v7293_v30 = vsel %vm2714_vm12, %v7292_v34, %v7288_v51 }
 0xd97   :  { %v7248_v54 = vsel %vm2714_vm12, %v7247_v62, %v7243_v21 }
 0xd98   :  { %v7179_v59 = vpop.permute.xlu0 %7178  ;;  %v7164_v39 = vpop.permute.xlu1 %7163  ;;  %v7359_v36 = vsel %vm2855_vm15, %v7248_v54, %v7358_v47 }
 0xd99   :  { %v7306_v52 = vrot.slane %v7179_v59, %v10531_v2  ;;  %v7283_v31 = vrot.slane %v7164_v39, %v10534_v11 }
 0xd9b   :  { %v7311_v1 = vsel %vm2714_vm12, %v7310_v7, %v7306_v52 }
 0xd9c   :  { %v7143_v22 = vpop.permute.xlu0 %7142  ;;  %v7206_v24 = vpop.permute.xlu1 %7205 }
 0xd9d   :  { %v7252_v5 = vrot.slane %v7143_v22, %v10531_v2  ;;  %v7337_v22 = vrot.slane %v11957_v40, %v10534_v11  ;;  %v7346_v12 = vrot.slane %v7206_v24, %v10534_v11 }
 0xd9f   :  { %v7257_v19 = vsel %vm2714_vm12, %v7256_v57, %v7252_v5 }
 0xda0   :  { %v7185_v49 = vpop.permute.xlu0 %7184  ;;  %v7360_v55 = vsel %vm2857_vm1, %v7257_v19, %v7359_v36  ;;  %v7212_v16 = vpop.permute.xlu1 %7211 }
 0xda1   :  { %v7315_v41 = vrot.slane %v7185_v49, %v10531_v2  ;;  %v7355_v56 = vrot.slane %v7212_v16, %v10534_v11 }
 0xda3   :  { %v7320_v49 = vsel %vm2714_vm12, %v7319_v35, %v7315_v41 }
 0xda4   :  { %v7149_v37 = vpop.permute.xlu0 %7148 }
 0xda5   :  { %v7261_v10 = vrot.slane %v7149_v37, %v10531_v2 }
 0xda7   :  { %v7266_v9 = vsel %vm2714_vm12, %v7265_v43, %v7261_v10 }
 0xda8   :  { %v7191_v26 = vpop.permute.xlu0 %7190  ;;  %v7361_v38 = vsel %vm12357_vm2, %v7266_v9, %v7360_v55 }
 0xda9   :  { %v7324_v45 = vrot.slane %v7191_v26, %v10531_v2  ;;  %v7364_v26 = vsel %vm2851_vm13, %v7302_v50, %v7293_v30  ;;  %vm12361_vm13 = vmmov %vm12357_vm2  ;;  %v7865_v30 = vld [vmem:[%s12083_s25] ss:$0 sm:$0xff] }
 0xdaa   :  { %v7365_v6 = vsel %vm2853_vm14, %v7311_v1, %v7364_v26  ;;  %vm12363_vm14 = vmmov %vm12350_vm3 }
 0xdab   :  { %v7329_v27 = vsel %vm2714_vm12, %v7328_v28, %v7324_v45  ;;  %v7366_v14 = vsel %vm2855_vm15, %v7320_v49, %v7365_v6  ;;  %vm12364_vm15 = vmmov %vm12354_vm0 }
 0xdac   :  { %v7155_v58 = vpop.permute.xlu0 %7154  ;;  %v7367_v39 = vsel %vm2857_vm1, %v7329_v27, %v7366_v14  ;;  %vm12365_vm3 = vmmov %vm12354_vm0 }
 0xdad   :  { %v7270_v32 = vrot.slane %v7155_v58, %v10531_v2  ;;  %v6938_v11 = vsel %vm12365_vm3, %v11933_v44, 0.0  ;;  %vm12367_vm1 = vmmov %vm12354_vm0 }
 0xdaf   :  { %v7275_v25 = vsel %vm2714_vm12, %v7274_v3, %v7270_v32 }
 0xdb0   :  { %v7197_v13 = vpop.permute.xlu0 %7196  ;;  %v7362_v42 = vsel %vm12358_vm9, %v7275_v25, %v7361_v38 }
 0xdb1   :  { %v7333_v60 = vrot.slane %v7197_v13, %v10531_v2 }
 0xdb3   :  { %v7338_v40 = vsel %vm2714_vm12, %v7337_v22, %v7333_v60 }
 0xdb4   :  { %v7161_v15 = vpop.permute.xlu0 %7160  ;;  %v7368_v8 = vsel %vm12361_vm13, %v7338_v40, %v7367_v39 }
 0xdb5   :  { %v7279_v17 = vrot.slane %v7161_v15, %v10531_v2 }
 0xdb7   :  { %v7284_v23 = vsel %vm2714_vm12, %v7283_v31, %v7279_v17 }
 0xdb8   :  { %v7203_v48 = vpop.permute.xlu0 %7202  ;;  %v7363_v59 = vsel %vm12359_vm10, %v7284_v23, %v7362_v42 }
 0xdb9   :  { %v7342_v18 = vrot.slane %v7203_v48, %v10531_v2  ;;  %v7373_v37 = vsel %vm10567_vm6, %v7363_v59, -1e+30  ;;  %vm12362_vm6 = vmmov %vm12358_vm9 }
 0xdba   :  { %v7375_v58 = vsel %vm12360_vm5, %v7373_v37, -inf }
 0xdbb   :  { %7376 = vmax.xlane.f32.xlu0 %v7375_v58  ;;  %v7347_v21 = vsel %vm2714_vm12, %v7346_v12, %v7342_v18 }
 0xdbc   :  { %v7209_v4 = vpop.permute.xlu0 %7208  ;;  %v7369_v61 = vsel %vm12362_vm6, %v7347_v21, %v7368_v8 }
 0xdbd   :  { %v7351_v5 = vrot.slane %v7209_v4, %v10531_v2  ;;  %v9150_v2 = vld [vmem:[%s12082_s20] ss:$0 sm:$0xff] }
 0xdbf   :  { %v7356_v62 = vsel %vm2714_vm12, %v7355_v56, %v7351_v5  ;;  %vm12366_vm12 = vmmov %vm12354_vm0 }
 0xdc0   :  { %v7370_v10 = vsel %vm12363_vm14, %v7356_v62, %v7369_v61 }
 0xdc1   :  { %v7374_v57 = vsel %vm10627_vm8, %v7370_v10, -1e+30  ;;  %vm12368_vm8 = vmmov %vm12354_vm0 }
 0xdc2   :  { %v7378_v46 = vsel %vm12364_vm15, %v7374_v57, -inf  ;;  %v6941_v19 = vsel %vm12368_vm8, %v11943_v0, 0.0 }
 0xdc3   :  { %7379 = vmax.xlane.f32.xlu1 %v7378_v46 }
 0xdc7   :  { %6939 = vadd.xlane.f32.xlu1 %v6938_v11 }
 0xdd1   :  { %7409 = vrot.lane.b32.xlu0 %v9150_v2, %s9155_s2 }
 0xe48   :  { %v7377_v32 = vpop.xlane.xlu0 %7376 }
 0xe49   :  { %v7381_v13 = vsub.f32 %v7373_v37, %v7377_v32 }
 0xe4b   :  { %v7383_v63 = vmul.f32 1.442695, %v7381_v13 }
 0xe4c   :  { %v7410_v20 = vpop.permute.xlu0 %7409 }
 0xe4d   :  { %9132 = vpow2.f32 %v7383_v63 }
 0xe50   :  { %v7380_v43 = vpop.xlane.xlu1 %7379 }
 0xe51   :  { %v7382_v33 = vsub.f32 %v7374_v57, %v7380_v43 }
 0xe53   :  { %v7385_v54 = vmul.f32 1.442695, %v7382_v33 }
 0xe54   :  { %v6940_v25 = vpop.xlane.xlu1 %6939 }
 0xe55   :  { %9134 = vpow2.f32 %v7385_v54 }
 0xe57   :  { %v9133_v34 = vpop.eup %9132 }
 0xe58   :  { %8786 = vmatprep.mubr.msk.f32.mxu0 %vm12366_vm12, %v9133_v34  ;;  %v7387_v44 = vsel %vm12367_vm1, %v9133_v34, 0.0 }
 0xe59   :  { %7388 = vadd.xlane.f32.xlu1 %v7387_v44 }
 0xe5b   :  { %v8770_v53 = vpop.f32.mrb[122].mxu1 }
 0xe5c   :  { %v7102_v3 = vpop.f32.mrb[123].mxu1 }
 0xe5d   :  { %6942 = vadd.xlane.f32.xlu1 %v6941_v19 }
 0xe5f   :  { %v9135_v29 = vpop.eup %9134 }
 0xe60   :  { %v7390_v47 = vsel %vm12369_vm11, %v9135_v29, 0.0 }
 0xe61   :  { %7391 = vadd.xlane.f32.xlu1 %v7390_v47 }
 0xe63   :  { %v8781_v9 = vpop.f32.mrb[124].mxu1 }
 0xe64   :  { %v7484_v51 = vadd.f32 %v8781_v9, %v7410_v20  ;;  %v7478_v36 = vpop.f32.mrb[125].mxu1 }
 0xe65   :  { %v7479_v52 = vadd.f32 %v7478_v36, %v7410_v20 }
 0xe67   :  { %v8965_v24 = vpack.c.bf16 %v7484_v51, %v7479_v52 }
 0xe69   :  { %8966 = vmatprep.subr.bf16.mxu0 %v8965_v24 }
 0xe6a   :  { %8968 = vmatpush3.bf16.msra.mxu0 %v8965_v24 }
 0xe6d   :  { %8787 = vmatmul.mubr.msk.f32.vlgmr.msra.gmra.mrb[132].mxu0 %vm12370_vm7, %v9135_v29 }
 0xee6   :  { %v7389_v15 = vpop.xlane.xlu1 %7388 }
 0xeea   :  { %v6943_v31 = vpop.xlane.xlu1 %6942 }
 0xeeb   :  { %9136 = vrcp.f32 %v6943_v31 }
 0xeec   :  { %9138 = vrcp.f32 %v6940_v25 }
 0xeee   :  { %v7392_v55 = vpop.xlane.xlu1 %7391 }
 0xeef   :  { %9140 = vrcp.f32 %v7392_v55 }
 0xef0   :  { %9142 = vrcp.f32 %v7389_v15 }
 0xef5   :  { %v9137_v0 = vpop.eup %9136 }
 0xef6   :  { %v9139_v41 = vpop.eup %9138  ;;  %v7114_v38 = vmul.f32 %v9137_v0, %v8770_v53 }
 0xef7   :  { %v7113_v60 = vmul.f32 %v9139_v41, %v7102_v3 }
 0xef9   :  { %v9141_v17 = vpop.eup %9140 }
 0xefa   :  { %v9143_v35 = vpop.eup %9142 }
 0xf40   :  { %v8788_v7 = vpop.f32.mrb[132].mxu0 }
 0xf41   :  { %v7571_v45 = vmul.f32 %v9141_v17, %v8788_v7  ;;  %v7559_v50 = vpop.f32.mrb[133].mxu0 }
 0xf42   :  { %v7570_v23 = vmul.f32 %v9143_v35, %v7559_v50 }
 0xf43   :  { %v7573_v42 = vadd.f32 %v7571_v45, %v7114_v38 }
 0xf44   :  { %v7572_v28 = vadd.f32 %v7570_v23, %v7113_v60 }
 0xf45   :  { %v7575_v1 = vmul.f32 0.5, %v7573_v42 }
 0xf46   :  { %v7574_v48 = vmul.f32 0.5, %v7572_v28 }
 0xf47   :  { %v7584_v59 = vadd.f32 %v7865_v30, %v7575_v1 }
 0xf48   :  { %v7583_v22 = vadd.f32 %v7865_v30, %v7574_v48 }
 0xf49   :  { %7586 = vst.msk [vmem:[%s12084_s26 + $0x8] sm:$0xff] %vm1414_vm4, %v7584_v59 }
 0xf4a   :  { %7585 = vst.msk [vmem:[%s12084_s26] sm:$0xff] %vm1414_vm4, %v7583_v22 }

</bundles_post_ra>
